<compile_context>
chip_gen: v7x
topology: tpu7x:2x2x1
jax: 0.10.0
libtpu: 0.0.40
codegen_flags: <defaults>
</compile_context>

<pallas_src>
from functools import partial

import jax
import jax.numpy as jnp
import numpy as np
from jax.experimental import pallas as pl
from jax.experimental.pallas import tpu as pltpu

EMBED_DIM = 10
KERNEL_SIZES = (3, 4, 5)
NUM_FILTERS = (77, 77, 77)
NUM_CLASSES = 3

KMAX = max(KERNEL_SIZES)
KMIN = min(KERNEL_SIZES)
F_TOTAL = int(sum(NUM_FILTERS))      # 231
F_PAD = 256                          # lane-dense fused filter dim (231 -> 256)
OUT_PAD = 128                        # lane-dense logits dim (3 -> 128)
SUB = 16                             # batch-tile granularity (bf16 sublane packing)


def _round_up(x, m):
    return (x + m - 1) // m * m


def _textcnn_kernel(ids_ref, wfold_ref, bias_ref, mask_ref, fcw_ref, fcb_ref,
                    out_ref, *, t_pad, kmax, vocab):
    """One batch tile.

    ids_ref  : (TB, Lp)      int32  token ids, lane-dense (Lp = T_pad + kmax - 1)
    wfold_ref: (KV, F_PAD)   bf16   embedding-folded fused conv weight
    bias_ref : (1, F_PAD)    f32    fused conv bias
    mask_ref : (T_pad, F_PAD) f32   1.0 where time step t is valid for that channel
    fcw_ref  : (F_PAD, OUT_PAD) bf16 fc weight, zero-padded lane-dense
    fcb_ref  : (1, OUT_PAD)  f32    fc bias, zero-padded
    out_ref  : (TB, OUT_PAD) bf16   logits slab (cols >= NUM_CLASSES are junk zeros)
    """
    tb = ids_ref.shape[0]
    kv, f_pad = wfold_ref.shape

    ids = ids_ref[...]                                             # (TB, Lp) int32

    # Fused one-hot im2col: row (b, t) has hot lanes {j*V + ids[b, t+j]}.
    # Built per tap via an iota compare — no lane concat, no embedding gather.
    kv_iota = jax.lax.broadcasted_iota(jnp.int32, (tb, t_pad, kv), 2)
    onehot3 = None
    for j in range(kmax):
        tgt = (ids[:, j:j + t_pad] + j * vocab)[:, :, None]        # (TB, T, 1)
        hit = (kv_iota == tgt).astype(jnp.bfloat16)                # (TB, T, KV)
        onehot3 = hit if onehot3 is None else onehot3 + hit
    onehot = onehot3.reshape(tb * t_pad, kv)                       # aligned -> free

    # Single fused conv matmul for all taps of all 3 branches (bf16 in, f32 acc).
    conv = jnp.dot(onehot, wfold_ref[...], preferred_element_type=jnp.float32)
    conv = jnp.maximum(conv + bias_ref[...], 0.0)                  # bias + ReLU
    conv = conv.reshape(tb, t_pad, f_pad) * mask_ref[...][None, :, :]
    pooled = jnp.max(conv, axis=1)                                 # (TB, F_PAD)

    # TODO(synk): nn.Dropout(p=0.5) is identity in eval mode; training-mode
    # stochastic dropout is not implemented here.
    logits = jnp.dot(pooled.astype(jnp.bfloat16), fcw_ref[...],
                     preferred_element_type=jnp.float32) + fcb_ref[...]
    out_ref[...] = logits.astype(out_ref.dtype)                    # (TB, 128) bf16


def pack_params(params, max_word_ct):
    """One-time repack of PyTorch-layout params into the fused, embedding-folded
    kernel layout (hoisted off the per-call hot path)."""
    L = int(max_word_ct)
    assert L >= KMAX, f"sequence length {L} must be >= max kernel size {KMAX}"
    T = L - KMIN + 1                         # longest branch output length (k=3)
    T_pad = _round_up(T, 8)                  # sublane-aligned time dim
    Lp = T_pad + KMAX - 1                    # padded sequence length
    E = EMBED_DIM

    emb = np.asarray(params['embedding'], np.float64)              # (V, E)
    V, Ein = emb.shape
    assert Ein == E
    KV = _round_up(KMAX * V, 128)            # lane-dense fused contraction dim
    # TODO(synk): large-vocab path — beyond a few thousand tokens the folded
    # (KMAX*V, F_PAD) weight / in-kernel one-hot no longer fit VMEM; switch to a
    # scalar-prefetch row gather of the folded per-tap tables instead.
    assert KV * F_PAD * 2 <= 8 * 1024 * 1024, \
        "folded conv weight too large for resident VMEM; implement gather path"

    # Invariant (correctness): taps j >= k of branch k stay all-zero in wfold,
    # and the mask zeroes every invalid/padded time step, so zero-padded token
    # slots can never leak into a branch's max-pool.
    wfold = np.zeros((KV, F_PAD), np.float64)
    bias = np.zeros((1, F_PAD), np.float32)
    limits = np.zeros((F_PAD,), np.int32)    # valid time-step count per channel
    col = 0
    for k, f in zip(KERNEL_SIZES, NUM_FILTERS):
        w = np.asarray(params[f'conv{k}_w'], np.float64)           # (F, E, k)
        b = np.asarray(params[f'conv{k}_b'], np.float32)           # (F,)
        for j in range(k):                   # fold embedding into tap j
            wfold[j * V:(j + 1) * V, col:col + f] = emb @ w[:, :, j].T
        bias[0, col:col + f] = b
        limits[col:col + f] = L - k + 1
        col += f
    mask = (np.arange(T_pad)[:, None] < limits[None, :]).astype(np.float32)

    fcw = np.zeros((F_PAD, OUT_PAD), np.float32)
    fcw[:F_TOTAL, :NUM_CLASSES] = np.asarray(params['fc_w'], np.float32).T
    fcb = np.zeros((1, OUT_PAD), np.float32)
    fcb[0, :NUM_CLASSES] = np.asarray(params['fc_b'], np.float32)

    return {
        'wfold': jnp.asarray(wfold, jnp.bfloat16),
        'bias': jnp.asarray(bias, jnp.float32),
        'mask': jnp.asarray(mask, jnp.float32),
        'fcw': jnp.asarray(fcw, jnp.bfloat16),
        'fcb': jnp.asarray(fcb, jnp.float32),
        'L': L, 'T_pad': T_pad, 'Lp': Lp, 'V': V, 'KV': KV,
    }


def textcnn_forward(line_list, packed, *, batch_tile=128):
    """line_list: (B, L) int token indices.  Returns (B, NUM_CLASSES) f32 logits."""
    L, T_pad, Lp, V = packed['L'], packed['T_pad'], packed['Lp'], packed['V']
    wfold, bias, mask, fcw, fcb = (packed[k] for k in
                                   ('wfold', 'bias', 'mask', 'fcw', 'fcb'))
    B, Lin = line_list.shape
    assert Lin == L, f"expected sequence length {L}, got {Lin}"

    # Batch tiling: multiples of 16 (bf16 sublane packing).  Cap the tile at half
    # the rounded batch so v7x's two TensorCores both get a grid step; on v6e,
    # batch_tile can be raised to 256-512 together with vmem_limit_bytes.
    b_ceil = _round_up(B, SUB)
    tb = min(_round_up(batch_tile, SUB), b_ceil)
    if b_ceil >= 2 * SUB:
        tb = min(tb, _round_up((b_ceil + 1) // 2, SUB))
    b_pad = _round_up(B, tb)

    ids = jnp.asarray(line_list, jnp.int32)
    # Pad batch rows (sliced off at the end) and (Lp - L) trailing token slots:
    # padded positions only ever reach mask-zeroed time steps.
    ids = jnp.pad(ids, ((0, b_pad - B), (0, Lp - L)))              # (b_pad, Lp)

    def full2d(a):   # resident, un-tiled 2-D operand
        return pl.BlockSpec(a.shape, lambda i: (0, 0))

    KV = wfold.shape[0]
    flops = b_pad * (2 * T_pad * KV * F_PAD + 2 * F_PAD * OUT_PAD)
    bytes_accessed = (4 * ids.size
                      + 2 * (wfold.size + fcw.size)
                      + 4 * (bias.size + mask.size + fcb.size)
                      + 2 * b_pad * OUT_PAD)

    out = pl.pallas_call(
        partial(_textcnn_kernel, t_pad=T_pad, kmax=KMAX, vocab=V),
        out_shape=jax.ShapeDtypeStruct((b_pad, OUT_PAD), jnp.bfloat16),
        grid=(b_pad // tb,),
        in_specs=[
            pl.BlockSpec((tb, Lp), lambda i: (i, 0)),              # lane-dense ids
            full2d(wfold), full2d(bias), full2d(mask), full2d(fcw), full2d(fcb),
        ],
        out_specs=pl.BlockSpec((tb, OUT_PAD), lambda i: (i, 0)),
        compiler_params=pltpu.CompilerParams(
            dimension_semantics=("parallel",),       # 2 TCs on v7x share batch tiles
            vmem_limit_bytes=32 * 1024 * 1024),
        cost_estimate=pl.CostEstimate(flops=flops, transcendentals=0,
                                      bytes_accessed=bytes_accessed),
    )(ids, wfold, bias, mask, fcw, fcb)

    return out[:B, :NUM_CLASSES].astype(jnp.float32)


def init_params(key, vocab_size, embed_dim=EMBED_DIM, pad_idx=0):
    """Deterministic synthetic parameters matching the module's shapes."""
    keys = jax.random.split(key, 10)
    emb = jax.random.normal(keys[0], (vocab_size, embed_dim), jnp.float32) * 0.1
    emb = emb.at[pad_idx].set(0.0)                   # padding_idx row = 0
    params = {'embedding': emb}
    ki = 1
    for k, f in zip(KERNEL_SIZES, NUM_FILTERS):
        fan_in = embed_dim * k
        bound = 1.0 / np.sqrt(fan_in)
        params[f'conv{k}_w'] = jax.random.uniform(
            keys[ki], (f, embed_dim, k), jnp.float32, -bound, bound)
        params[f'conv{k}_b'] = jax.random.uniform(
            keys[ki + 1], (f,), jnp.float32, -bound, bound)
        ki += 2
    bound = 1.0 / np.sqrt(F_TOTAL)
    params['fc_w'] = jax.random.uniform(
        keys[ki], (NUM_CLASSES, F_TOTAL), jnp.float32, -bound, bound)
    params['fc_b'] = jax.random.uniform(
        keys[ki + 1], (NUM_CLASSES,), jnp.float32, -bound, bound)
    return params


def reference_forward(line_list, params):
    """Pure-JAX f32 reference mirroring the PyTorch forward (eval mode)."""
    x = jnp.take(jnp.asarray(params['embedding'], jnp.float32), line_list, axis=0)
    pooled = []
    for k in KERNEL_SIZES:
        w = jnp.asarray(params[f'conv{k}_w'], jnp.float32)       # (F, E, k)
        b = jnp.asarray(params[f'conv{k}_b'], jnp.float32)
        L = x.shape[1]
        T = L - k + 1
        acc = jnp.zeros((x.shape[0], T, w.shape[0]), jnp.float32)
        for j in range(k):
            acc = acc + jnp.einsum('bte,fe->btf', x[:, j:j + T, :], w[:, :, j])
        acc = jax.nn.relu(acc + b[None, None, :])
        pooled.append(jnp.max(acc, axis=1))
    feat = jnp.concatenate(pooled, axis=-1)
    return feat @ jnp.asarray(params['fc_w'], jnp.float32).T + \
        jnp.asarray(params['fc_b'], jnp.float32)


if __name__ == "__main__":
    key = jax.random.PRNGKey(0)
    k_param, k_data = jax.random.split(key)

    vocab_size = 50
    batch = 2
    max_word_ct = 16     # maxWordCt (sequence length)

    params = init_params(k_param, vocab_size)
    packed = pack_params(params, max_word_ct)    # one-time fold/repack, off hot path

    line_list = jax.random.randint(k_data, (batch, max_word_ct), 0, vocab_size,
                                   dtype=jnp.int32)

    out = textcnn_forward(line_list, packed)
    out = jax.block_until_ready(out)

    ref = reference_forward(line_list, params)
    # bf16 MXU operands / bf16 logits slab -> relaxed tolerance vs the f32 reference.
    np.testing.assert_allclose(np.asarray(out), np.asarray(ref),
                               rtol=2e-2, atol=2e-2)
    assert out.shape == (batch, NUM_CLASSES)
    print("KERNEL_OK")
</pallas_src>

<mosaic_0001>
module attributes {stable_mosaic.version = 11 : i64} {
  func.func @_textcnn_kernel(%arg0: i32, %arg1: memref<16x20xi32, #tpu.memory_space<vmem>>, %arg2: memref<256x256xbf16, #tpu.memory_space<vmem>>, %arg3: memref<1x256xf32, #tpu.memory_space<vmem>>, %arg4: memref<16x256xf32, #tpu.memory_space<vmem>>, %arg5: memref<256x128xbf16, #tpu.memory_space<vmem>>, %arg6: memref<1x128xf32, #tpu.memory_space<vmem>>, %arg7: memref<16x128xbf16, #tpu.memory_space<vmem>>) attributes {dimension_semantics = [#tpu.dimension_semantics<parallel>], iteration_bounds = array<i64: 1>, scalar_prefetch = 0 : i64, scratch_operands = 0 : i64, tpu.core_type = #tpu.core_type<tc>, window_params = [{transform_indices = @transform_0, window_bounds = array<i64: 16, 20>}, {pipeline_mode = #tpu.pipeline_mode<synchronous>, transform_indices = @transform_1, window_bounds = array<i64: 256, 256>}, {pipeline_mode = #tpu.pipeline_mode<synchronous>, transform_indices = @transform_2, window_bounds = array<i64: 1, 256>}, {pipeline_mode = #tpu.pipeline_mode<synchronous>, transform_indices = @transform_3, window_bounds = array<i64: 16, 256>}, {pipeline_mode = #tpu.pipeline_mode<synchronous>, transform_indices = @transform_4, window_bounds = array<i64: 256, 128>}, {pipeline_mode = #tpu.pipeline_mode<synchronous>, transform_indices = @transform_5, window_bounds = array<i64: 1, 128>}, {transform_indices = @transform_6, window_bounds = array<i64: 16, 128>}]} {
    %c0 = arith.constant 0 : index
    %c0_0 = arith.constant 0 : index
    %0 = vector.load %arg1[%c0, %c0_0] : memref<16x20xi32, #tpu.memory_space<vmem>>, vector<16x20xi32>
    %1 = tpu.iota {dimensions = array<i32: 2>} : vector<16x16x256xi32>
    %2 = vector.extract_strided_slice %0 {offsets = [0, 0], sizes = [16, 16], strides = [1, 1]} : vector<16x20xi32> to vector<16x16xi32>
    %c0_i32 = arith.constant 0 : i32
    %3 = vector.broadcast %c0_i32 : i32 to vector<16x16xi32>
    %4 = arith.addi %2, %3 : vector<16x16xi32>
    %5 = vector.shape_cast %4 : vector<16x16xi32> to vector<16x16x1xi32>
    %6 = vector.broadcast %5 : vector<16x16x1xi32> to vector<16x16x256xi32>
    %7 = arith.cmpi eq, %1, %6 : vector<16x16x256xi32>
    %8 = arith.extui %7 : vector<16x16x256xi1> to vector<16x16x256xi32>
    %9 = arith.sitofp %8 : vector<16x16x256xi32> to vector<16x16x256xf32>
    %10 = arith.truncf %9 : vector<16x16x256xf32> to vector<16x16x256xbf16>
    %11 = vector.extract_strided_slice %0 {offsets = [0, 1], sizes = [16, 16], strides = [1, 1]} : vector<16x20xi32> to vector<16x16xi32>
    %c50_i32 = arith.constant 50 : i32
    %12 = vector.broadcast %c50_i32 : i32 to vector<16x16xi32>
    %13 = arith.addi %11, %12 : vector<16x16xi32>
    %14 = vector.shape_cast %13 : vector<16x16xi32> to vector<16x16x1xi32>
    %15 = vector.broadcast %14 : vector<16x16x1xi32> to vector<16x16x256xi32>
    %16 = arith.cmpi eq, %1, %15 : vector<16x16x256xi32>
    %17 = arith.extui %16 : vector<16x16x256xi1> to vector<16x16x256xi32>
    %18 = arith.sitofp %17 : vector<16x16x256xi32> to vector<16x16x256xf32>
    %19 = arith.truncf %18 : vector<16x16x256xf32> to vector<16x16x256xbf16>
    %20 = arith.addf %10, %19 : vector<16x16x256xbf16>
    %21 = vector.extract_strided_slice %0 {offsets = [0, 2], sizes = [16, 16], strides = [1, 1]} : vector<16x20xi32> to vector<16x16xi32>
    %c100_i32 = arith.constant 100 : i32
    %22 = vector.broadcast %c100_i32 : i32 to vector<16x16xi32>
    %23 = arith.addi %21, %22 : vector<16x16xi32>
    %24 = vector.shape_cast %23 : vector<16x16xi32> to vector<16x16x1xi32>
    %25 = vector.broadcast %24 : vector<16x16x1xi32> to vector<16x16x256xi32>
    %26 = arith.cmpi eq, %1, %25 : vector<16x16x256xi32>
    %27 = arith.extui %26 : vector<16x16x256xi1> to vector<16x16x256xi32>
    %28 = arith.sitofp %27 : vector<16x16x256xi32> to vector<16x16x256xf32>
    %29 = arith.truncf %28 : vector<16x16x256xf32> to vector<16x16x256xbf16>
    %30 = arith.addf %20, %29 : vector<16x16x256xbf16>
    %31 = vector.extract_strided_slice %0 {offsets = [0, 3], sizes = [16, 16], strides = [1, 1]} : vector<16x20xi32> to vector<16x16xi32>
    %c150_i32 = arith.constant 150 : i32
    %32 = vector.broadcast %c150_i32 : i32 to vector<16x16xi32>
    %33 = arith.addi %31, %32 : vector<16x16xi32>
    %34 = vector.shape_cast %33 : vector<16x16xi32> to vector<16x16x1xi32>
    %35 = vector.broadcast %34 : vector<16x16x1xi32> to vector<16x16x256xi32>
    %36 = arith.cmpi eq, %1, %35 : vector<16x16x256xi32>
    %37 = arith.extui %36 : vector<16x16x256xi1> to vector<16x16x256xi32>
    %38 = arith.sitofp %37 : vector<16x16x256xi32> to vector<16x16x256xf32>
    %39 = arith.truncf %38 : vector<16x16x256xf32> to vector<16x16x256xbf16>
    %40 = arith.addf %30, %39 : vector<16x16x256xbf16>
    %41 = vector.extract_strided_slice %0 {offsets = [0, 4], sizes = [16, 16], strides = [1, 1]} : vector<16x20xi32> to vector<16x16xi32>
    %c200_i32 = arith.constant 200 : i32
    %42 = vector.broadcast %c200_i32 : i32 to vector<16x16xi32>
    %43 = arith.addi %41, %42 : vector<16x16xi32>
    %44 = vector.shape_cast %43 : vector<16x16xi32> to vector<16x16x1xi32>
    %45 = vector.broadcast %44 : vector<16x16x1xi32> to vector<16x16x256xi32>
    %46 = arith.cmpi eq, %1, %45 : vector<16x16x256xi32>
    %47 = arith.extui %46 : vector<16x16x256xi1> to vector<16x16x256xi32>
    %48 = arith.sitofp %47 : vector<16x16x256xi32> to vector<16x16x256xf32>
    %49 = arith.truncf %48 : vector<16x16x256xf32> to vector<16x16x256xbf16>
    %50 = arith.addf %40, %49 : vector<16x16x256xbf16>
    %51 = vector.shape_cast %50 : vector<16x16x256xbf16> to vector<256x256xbf16>
    %c0_1 = arith.constant 0 : index
    %c0_2 = arith.constant 0 : index
    %52 = vector.load %arg2[%c0_1, %c0_2] : memref<256x256xbf16, #tpu.memory_space<vmem>>, vector<256x256xbf16>
    %cst = arith.constant dense<0.000000e+00> : vector<256x256xf32>
    %53 = tpu.matmul %51, %52, %cst {dimension_numbers = #tpu.dot_dimension_numbers<[1], [0], [0], [1], [0, 0, 1, 1], [], []>} : vector<256x256xbf16>, vector<256x256xbf16>, vector<256x256xf32> -> vector<256x256xf32>
    %c0_3 = arith.constant 0 : index
    %c0_4 = arith.constant 0 : index
    %54 = vector.load %arg3[%c0_3, %c0_4] : memref<1x256xf32, #tpu.memory_space<vmem>>, vector<1x256xf32>
    %55 = vector.broadcast %54 : vector<1x256xf32> to vector<256x256xf32>
    %56 = arith.addf %53, %55 : vector<256x256xf32>
    %cst_5 = arith.constant 0.000000e+00 : f32
    %57 = vector.broadcast %cst_5 : f32 to vector<256x256xf32>
    %58 = arith.maximumf %56, %57 : vector<256x256xf32>
    %59 = vector.shape_cast %58 : vector<256x256xf32> to vector<16x16x256xf32>
    %c0_6 = arith.constant 0 : index
    %c0_7 = arith.constant 0 : index
    %60 = vector.load %arg4[%c0_6, %c0_7] : memref<16x256xf32, #tpu.memory_space<vmem>>, vector<16x256xf32>
    %61 = vector.shape_cast %60 : vector<16x256xf32> to vector<1x16x256xf32>
    %62 = vector.broadcast %61 : vector<1x16x256xf32> to vector<16x16x256xf32>
    %63 = arith.mulf %59, %62 : vector<16x16x256xf32>
    %cst_8 = arith.constant dense<0xFF800000> : vector<16x256xf32>
    %64 = vector.multi_reduction <maximumf>, %63, %cst_8 [1] : vector<16x16x256xf32> to vector<16x256xf32>
    %65 = arith.truncf %64 : vector<16x256xf32> to vector<16x256xbf16>
    %c0_9 = arith.constant 0 : index
    %c0_10 = arith.constant 0 : index
    %66 = vector.load %arg5[%c0_9, %c0_10] : memref<256x128xbf16, #tpu.memory_space<vmem>>, vector<256x128xbf16>
    %cst_11 = arith.constant dense<0.000000e+00> : vector<16x128xf32>
    %67 = tpu.matmul %65, %66, %cst_11 {dimension_numbers = #tpu.dot_dimension_numbers<[1], [0], [0], [1], [0, 0, 1, 1], [], []>} : vector<16x256xbf16>, vector<256x128xbf16>, vector<16x128xf32> -> vector<16x128xf32>
    %c0_12 = arith.constant 0 : index
    %c0_13 = arith.constant 0 : index
    %68 = vector.load %arg6[%c0_12, %c0_13] : memref<1x128xf32, #tpu.memory_space<vmem>>, vector<1x128xf32>
    %69 = vector.broadcast %68 : vector<1x128xf32> to vector<16x128xf32>
    %70 = arith.addf %67, %69 : vector<16x128xf32>
    %71 = arith.truncf %70 : vector<16x128xf32> to vector<16x128xbf16>
    %c0_14 = arith.constant 0 : index
    %c0_15 = arith.constant 0 : index
    %72 = vector.load %arg7[%c0_14, %c0_15] : memref<16x128xbf16, #tpu.memory_space<vmem>>, vector<16x128xbf16>
    tpu.vector_store %arg7[%c0_14, %c0_15], %71 {strides = array<i32>} : memref<16x128xbf16, #tpu.memory_space<vmem>>, vector<16x128xbf16>,
    return
  }
  func.func @transform_0(%arg0: i32) -> (i32, i32) {
    %c0_i32 = arith.constant 0 : i32
    %c0_i32_0 = arith.constant 0 : i32
    return %arg0, %c0_i32 : i32, i32
  }
  func.func @transform_1(%arg0: i32) -> (i32, i32) {
    %c0_i32 = arith.constant 0 : i32
    %c0_i32_0 = arith.constant 0 : i32
    %c0_i32_1 = arith.constant 0 : i32
    return %c0_i32, %c0_i32_0 : i32, i32
  }
  func.func @transform_2(%arg0: i32) -> (i32, i32) {
    %c0_i32 = arith.constant 0 : i32
    %c0_i32_0 = arith.constant 0 : i32
    %c0_i32_1 = arith.constant 0 : i32
    return %c0_i32, %c0_i32_0 : i32, i32
  }
  func.func @transform_3(%arg0: i32) -> (i32, i32) {
    %c0_i32 = arith.constant 0 : i32
    %c0_i32_0 = arith.constant 0 : i32
    %c0_i32_1 = arith.constant 0 : i32
    return %c0_i32, %c0_i32_0 : i32, i32
  }
  func.func @transform_4(%arg0: i32) -> (i32, i32) {
    %c0_i32 = arith.constant 0 : i32
    %c0_i32_0 = arith.constant 0 : i32
    %c0_i32_1 = arith.constant 0 : i32
    return %c0_i32, %c0_i32_0 : i32, i32
  }
  func.func @transform_5(%arg0: i32) -> (i32, i32) {
    %c0_i32 = arith.constant 0 : i32
    %c0_i32_0 = arith.constant 0 : i32
    %c0_i32_1 = arith.constant 0 : i32
    return %c0_i32, %c0_i32_0 : i32, i32
  }
  func.func @transform_6(%arg0: i32) -> (i32, i32) {
    %c0_i32 = arith.constant 0 : i32
    %c0_i32_0 = arith.constant 0 : i32
    return %arg0, %c0_i32 : i32, i32
  }
}

</mosaic_0001>

<bundles_post_ra>
// kernel: tpu_custom_call.1
= control target key start
LH: loop header
LB: loop body
LE: loop exit
PB: predicated region body
PF: predicated region fallthrough
CT: control target
= control target key end

     0   :  { %11 = vsyncpa [#allocation3], 0  ;;  %s5659_s0 = inlined_call_operand.hbm [shape: s32[16,20], index: 0, kind: input, shape index: {}]   ;;  %s5660_s1 = inlined_call_operand.hbm [shape: bf16[256,256], index: 1, kind: input, shape index: {}]   ;;  %s5661_s2 = inlined_call_operand.vmem [shape: f32[1,256], index: 2, kind: input, shape index: {}]   ;;  %s5662_s3 = inlined_call_operand.hbm [shape: f32[16,256], index: 3, kind: input, shape index: {}]   ;;  %s5663_s4 = inlined_call_operand.hbm [shape: bf16[256,128], index: 4, kind: input, shape index: {}]   ;;  %s5664_s5 = inlined_call_operand.vmem [shape: f32[1,128], index: 5, kind: input, shape index: {}]   ;;  %s5665_s6 = inlined_call_operand.hbm [shape: bf16[16,128], index: 6, kind: output, shape index: {}]  }
   0x1   :  { %12 = vsyncpa [#allocation6], 0 }
   0x2   :  { %13 = vsyncpa [#allocation9], 0 }
   0x3   :  { %14 = vsyncpa [#allocation4], 0  ;;  %s4010_s21 = smov [#allocation5]   ;;  %s4011_s23 = smov [#allocation2]  }
   0x4   :  { %s32_s22 = sshll.u32 %s4010_s21, 4  ;;  %s20_s24 = sshll.u32 %s4011_s23, 4  ;;  %s33_s22 = int_to_ptr.vmem [resolvable:$true] %s32_s22  ;;  %s4057_s24 = int_to_ptr.vmem [resolvable:$true] %s20_s24 }
   0x5   :  { %s3892_s27 = scalar_lea.hbm %s5660_s1, 4096 }
   0x6   :  { %p3893_p0 = scmp.ne.s32.totalorder %s5660_s1, %s3892_s27  ;;  %p3896_p1 = scmp.lt.u32.totalorder %s3892_s27, %s5660_s1 }
   0x8   :  { %p3898_p2 = pnand %p3896_p1, %p3893_p0 }
   0xa   :  { %3901 = shalt.err (!%p3898_p2)
}
   0xb   :  { %s3902_s8 = scalar_lea.vmem %s33_s22, 4096  ;;  %p3907_p4 = scmp.lt.s32.totalorder %s33_s22, %s33_s22 }
   0xc   :  { %p3903_p3 = scmp.ne.s32.totalorder %s33_s22, %s3902_s8  ;;  %p3908_p5 = scmp.lt.s32.totalorder %s3902_s8, %s3902_s8 }
   0xe   :  { %p3909_p6 = por %p3908_p5, %p3907_p4 }
  0x10   :  { %p3910_p7 = pnand %p3909_p6, %p3903_p3 }
  0x12   :  { %3913 = shalt.err (!%p3910_p7)
}
  0x13   :  { %s4012_s9 = smov 128   ;;  %s4013_s10 = smov 8  }
  0x14   :  { %38 = dma.hbm_to_vmem [thread:$0]  %s5660_s1, 4096, %s33_s22, [#allocation6], %s4012_s9, %s4012_s9, %s4013_s10  }
  0x15   :  { %s3914_s15 = scalar_lea.hbm %s5659_s0, 256 }
  0x16   :  { %p3915_p8 = scmp.ne.s32.totalorder %s5659_s0, %s3914_s15  ;;  %p3918_p9 = scmp.lt.u32.totalorder %s3914_s15, %s5659_s0 }
  0x18   :  { %p3920_p10 = pnand %p3918_p9, %p3915_p8 }
  0x1a   :  { %3923 = shalt.err (!%p3920_p10)
}
  0x1b   :  { %s3924_s20 = scalar_lea.vmem %s4057_s24, 256  ;;  %p3929_p12 = scmp.lt.s32.totalorder %s4057_s24, %s4057_s24 }
  0x1c   :  { %p3925_p11 = scmp.ne.s32.totalorder %s4057_s24, %s3924_s20  ;;  %p3930_p13 = scmp.lt.s32.totalorder %s3924_s20, %s3924_s20 }
  0x1e   :  { %p3931_p0 = por %p3930_p13, %p3929_p12 }
  0x20   :  { %p3932_p1 = pnand %p3931_p0, %p3925_p11 }
  0x22   :  { %3935 = shalt.err (!%p3932_p1)
}
  0x23   :  { %26 = dma.hbm_to_vmem [thread:$0]  %s5659_s0, 256, %s4057_s24, [#allocation3], %s4012_s9, %s4012_s9, %s4013_s10  }
  0x24   :  { %s4014_s22 = smov [#allocation7]   ;;  %s3936_s27 = scalar_lea.hbm %s5662_s3, 512 }
  0x25   :  { %s46_s23 = sshll.u32 %s4014_s22, 4  ;;  %p3937_p2 = scmp.ne.s32.totalorder %s5662_s3, %s3936_s27  ;;  %s47_s23 = int_to_ptr.vmem [resolvable:$true] %s46_s23 }
  0x26   :  { %p3940_p3 = scmp.lt.u32.totalorder %s3936_s27, %s5662_s3 }
  0x28   :  { %p3942_p4 = pnand %p3940_p3, %p3937_p2 }
  0x2a   :  { %3945 = shalt.err (!%p3942_p4)
}
  0x2b   :  { %s3946_s8 = scalar_lea.vmem %s47_s23, 512  ;;  %p3951_p6 = scmp.lt.s32.totalorder %s47_s23, %s47_s23 }
  0x2c   :  { %p3947_p5 = scmp.ne.s32.totalorder %s47_s23, %s3946_s8  ;;  %p3952_p7 = scmp.lt.s32.totalorder %s3946_s8, %s3946_s8 }
  0x2e   :  { %p3953_p8 = por %p3952_p7, %p3951_p6 }
  0x30   :  { %p3954_p9 = pnand %p3953_p8, %p3947_p5 }
  0x32   :  { %3957 = shalt.err (!%p3954_p9)
}
  0x33   :  { %s4015_s0 = smov 256   ;;  %s4016_s24 = smov 16  }
  0x34   :  { %52 = dma.hbm_to_vmem [thread:$0]  %s5662_s3, 512, %s47_s23, [#allocation6], %s4015_s0, %s4015_s0, %s4016_s24  }
  0x35   :  { %s4017_s11 = smov [#allocation8]   ;;  %s3958_s15 = scalar_lea.hbm %s5663_s4, 2048 }
  0x36   :  { %s58_s12 = sshll.u32 %s4017_s11, 4  ;;  %p3959_p10 = scmp.ne.s32.totalorder %s5663_s4, %s3958_s15  ;;  %s59_s12 = int_to_ptr.vmem [resolvable:$true] %s58_s12 }
  0x37   :  { %p3962_p11 = scmp.lt.u32.totalorder %s3958_s15, %s5663_s4 }
  0x39   :  { %p3964_p12 = pnand %p3962_p11, %p3959_p10 }
  0x3b   :  { %3967 = shalt.err (!%p3964_p12)
}
  0x3c   :  { %s3968_s20 = scalar_lea.vmem %s59_s12, 2048  ;;  %p3973_p0 = scmp.lt.s32.totalorder %s59_s12, %s59_s12 }
  0x3d   :  { %p3969_p13 = scmp.ne.s32.totalorder %s59_s12, %s3968_s20  ;;  %p3974_p1 = scmp.lt.s32.totalorder %s3968_s20, %s3968_s20 }
  0x3f   :  { %p3975_p2 = por %p3974_p1, %p3973_p0 }
  0x41   :  { %p3976_p3 = pnand %p3975_p2, %p3969_p13 }
  0x43   :  { %3979 = shalt.err (!%p3976_p3)
}
  0x44   :  { %s4018_s3 = smov 64   ;;  %s4019_s1 = smov 4  }
  0x45   :  { %64 = dma.hbm_to_vmem [thread:$0]  %s5663_s4, 2048, %s59_s12, [#allocation9], %s4018_s3, %s4018_s3, %s4019_s1  }
  0x46   :  { %4002 = dma.done.wait [#allocation3], 256  }
  0x47   :  { %4003 = vsyncadd [#allocation3], 4294967040 }
  0x48   :  { %4004 = dma.done.wait [#allocation6], 4608  }
  0x49   :  { %4005 = vsyncadd [#allocation6], 4294962688 }
  0x4a   :  { %4006 = dma.done.wait [#allocation9], 2048  }
  0x4b   :  { %4007 = vsyncadd [#allocation9], 4294965248  ;;  %v82_v0 = vlaneseq  ;;  %v4121_v3 = vld [vmem:[#allocation2] sm:$0xff]  ;;  %v3822_v6 = vld [vmem:[#allocation5 + $0x4] ss:$8 sps:$4 sm:$0xff]   ;;  %s4021_s26 = smov [#allocation10]  }
  0x4c   :  { %v4126_v5 = vadd.s32 50, %v4121_v3  ;;  %v3824_v7 = vld [vmem:[#allocation5] ss:$8 sps:$4 sm:$0xff]   ;;  %v4131_v9 = vadd.s32 100, %v4121_v3  ;;  %v3825_v10 = vld [vmem:[#allocation5 + $0x14] ss:$8 sps:$4 sm:$0xff]   ;;  %2489 = vmatprep.subr.bf16.mxu0 %v3822_v6  ;;  %3778 = vmatprep.subr.bf16.mxu1 %v3822_v6 }
  0x4d   :  { %v4116_v1 = vshrl.u32 %v82_v0, 7  ;;  %2490 = vmatpush1.bf16.msra.mxu0 %v3824_v7  ;;  %v3827_v11 = vld [vmem:[#allocation5 + $0x10] ss:$8 sps:$4 sm:$0xff]   ;;  %v4136_v13 = vadd.s32 150, %v4121_v3  ;;  %v3828_v14 = vld [vmem:[#allocation5 + $0x24] ss:$8 sps:$4 sm:$0xff]   ;;  %3794 = vmatpush1.bf16.msra.mxu1 %v3824_v7 }
  0x4e   :  { %2491 = vmatprep.subr.bf16.mxu0 %v3825_v10  ;;  %v3830_v15 = vld [vmem:[#allocation5 + $0x20] ss:$8 sps:$4 sm:$0xff]   ;;  %v4141_v17 = vadd.s32 200, %v4121_v3  ;;  %v3831_v18 = vld [vmem:[#allocation5 + $0x34] ss:$8 sps:$4 sm:$0xff]   ;;  %3779 = vmatprep.subr.bf16.mxu1 %v3825_v10  ;;  %s3364_s27 = sshll.u32 %s4021_s26, 4  ;;  %s3365_s27 = int_to_ptr.vmem [resolvable:$true] %s3364_s27 }
  0x4f   :  { %v4119_v2 = vsub.s32 0, %v4116_v1  ;;  %v3833_v19 = vld [vmem:[#allocation5 + $0x30] ss:$8 sps:$4 sm:$0xff]   ;;  %v4146_v21 = vsub.s32 1, %v4116_v1  ;;  %v3834_v22 = vld [vmem:[#allocation5 + $0x44] ss:$8 sps:$4 sm:$0xff]   ;;  %p3985_p5 = scmp.lt.s32.totalorder %s3365_s27, %s3365_s27 }
  0x50   :  { %v3836_v23 = vld [vmem:[#allocation5 + $0x40] ss:$8 sps:$4 sm:$0xff]   ;;  %v3837_v25 = vld [vmem:[#allocation5 + $0x54] ss:$8 sps:$4 sm:$0xff]   ;;  %v3839_v26 = vld [vmem:[#allocation5 + $0x50] ss:$8 sps:$4 sm:$0xff]  }
  0x51   :  { %v88_v4 = vrot.slane %v4121_v3, %v4119_v2  ;;  %v490_v8 = vrot.slane %v4126_v5, %v4119_v2  ;;  %v940_v12 = vrot.slane %v4131_v9, %v4119_v2  ;;  %2492 = vmatpush1.bf16.msra.mxu0 %v3827_v11  ;;  %v1390_v16 = vrot.slane %v4136_v13, %v4119_v2  ;;  %v3840_v27 = vld [vmem:[#allocation5 + $0x64] ss:$8 sps:$4 sm:$0xff]   ;;  %v3842_v29 = vld [vmem:[#allocation5 + $0x60] ss:$8 sps:$4 sm:$0xff]   ;;  %v3843_v30 = vld [vmem:[#allocation5 + $0x74] ss:$8 sps:$4 sm:$0xff]  }
  0x52   :  { %2493 = vmatprep.subr.bf16.mxu0 %v3828_v14  ;;  %3795 = vmatpush1.bf16.msra.mxu1 %v3827_v11  ;;  %v1840_v20 = vrot.slane %v4141_v17, %v4119_v2  ;;  %v99_v24 = vrot.slane %v4121_v3, %v4146_v21  ;;  %v502_v28 = vrot.slane %v4126_v5, %v4146_v21  ;;  %v3845_v32 = vld [vmem:[#allocation5 + $0x70] ss:$8 sps:$4 sm:$0xff]   ;;  %v3846_v33 = vld [vmem:[#allocation5 + $0x84] ss:$8 sps:$4 sm:$0xff]   ;;  %v3848_v35 = vld [vmem:[#allocation5 + $0x80] ss:$8 sps:$4 sm:$0xff]  }
  0x53   :  { %90 = vbcast.lane.b32.xlu0 %v88_v4, 256  ;;  %493 = vbcast.lane.b32.xlu1 %v490_v8, 257  ;;  %v952_v31 = vrot.slane %v4131_v9, %v4146_v21  ;;  %v1402_v34 = vrot.slane %v4136_v13, %v4146_v21  ;;  %v1852_v36 = vrot.slane %v4141_v17, %v4146_v21  ;;  %v4159_v37 = vsub.s32 2, %v4116_v1  ;;  %v3849_v38 = vld [vmem:[#allocation5 + $0x94] ss:$8 sps:$4 sm:$0xff]   ;;  %s3980_s28 = scalar_lea.vmem %s3365_s27, 128 }
  0x54   :  { %3780 = vmatprep.subr.bf16.mxu1 %v3828_v14  ;;  %v3851_v39 = vld [vmem:[#allocation5 + $0x90] ss:$8 sps:$4 sm:$0xff]   ;;  %v3852_v41 = vld [vmem:[#allocation5 + $0xa4] ss:$8 sps:$4 sm:$0xff]   ;;  %v3854_v42 = vld [vmem:[#allocation5 + $0xa0] ss:$8 sps:$4 sm:$0xff]   ;;  %p3981_p4 = scmp.ne.s32.totalorder %s3365_s27, %s3980_s28  ;;  %p3986_p6 = scmp.lt.s32.totalorder %s3980_s28, %s3980_s28 }
  0x55   :  { %2494 = vmatpush1.bf16.msra.mxu0 %v3830_v15  ;;  %v110_v40 = vrot.slane %v4121_v3, %v4159_v37  ;;  %v514_v43 = vrot.slane %v4126_v5, %v4159_v37  ;;  %v3855_v44 = vld [vmem:[#allocation5 + $0xb4] ss:$8 sps:$4 sm:$0xff]   ;;  %v3857_v45 = vld [vmem:[#allocation5 + $0xb0] ss:$8 sps:$4 sm:$0xff]   ;;  %v964_v46 = vrot.slane %v4131_v9, %v4159_v37  ;;  %v3858_v47 = vld [vmem:[#allocation5 + $0xc4] ss:$8 sps:$4 sm:$0xff]   ;;  %v1414_v49 = vrot.slane %v4136_v13, %v4159_v37 }
  0x56   :  { %2495 = vmatprep.subr.bf16.mxu0 %v3831_v18  ;;  %3796 = vmatpush1.bf16.msra.mxu1 %v3830_v15  ;;  %v3860_v48 = vld [vmem:[#allocation5 + $0xc0] ss:$8 sps:$4 sm:$0xff]   ;;  %v3861_v50 = vld [vmem:[#allocation5 + $0xd4] ss:$8 sps:$4 sm:$0xff]   ;;  %v3863_v52 = vld [vmem:[#allocation5 + $0xd0] ss:$8 sps:$4 sm:$0xff]   ;;  %v1864_v60 = vrot.slane %v4141_v17, %v4159_v37  ;;  %p3987_p7 = por %p3986_p6, %p3985_p5 }
  0x57   :  { %94 = vbcast.lane.b32.xlu0 %v88_v4, 264  ;;  %497 = vbcast.lane.b32.xlu1 %v490_v8, 265  ;;  %v4169_v51 = vld [vmem:[#allocation2 + $0x8] sm:$0xff]  ;;  %v3864_v55 = vld [vmem:[#allocation5 + $0xe4] ss:$8 sps:$4 sm:$0xff]   ;;  %v4181_v61 = vsub.s32 3, %v4116_v1 }
  0x58   :  { %3781 = vmatprep.subr.bf16.mxu1 %v3831_v18  ;;  %v187_v53 = vrot.slane %v4169_v51, %v4146_v21  ;;  %v4174_v54 = vadd.s32 50, %v4169_v51  ;;  %v3866_v56 = vld [vmem:[#allocation5 + $0xe0] ss:$8 sps:$4 sm:$0xff]   ;;  %v3867_v58 = vld [vmem:[#allocation5 + $0xf4] ss:$8 sps:$4 sm:$0xff]   ;;  %v4188_v4 = vadd.s32 100, %v4169_v51  ;;  %v198_v15 = vrot.slane %v4169_v51, %v4159_v37  ;;  %p3988_p8 = pnand %p3987_p7, %p3981_p4 }
  0x59   :  { %2496 = vmatpush1.bf16.msra.mxu0 %v3833_v19  ;;  %v3869_v59 = vld [vmem:[#allocation5 + $0xf0] ss:$8 sps:$4 sm:$0xff]   ;;  %v121_v62 = vrot.slane %v4121_v3, %v4181_v61  ;;  %v526_v63 = vrot.slane %v4126_v5, %v4181_v61  ;;  %v976_v7 = vrot.slane %v4131_v9, %v4181_v61  ;;  %v4195_v8 = vadd.s32 150, %v4169_v51 }
  0x5a   :  { %2497 = vmatprep.subr.bf16.mxu0 %v3834_v22  ;;  %3797 = vmatpush1.bf16.msra.mxu1 %v3833_v19  ;;  %v598_v57 = vrot.slane %v4174_v54, %v4146_v21  ;;  %v1048_v6 = vrot.slane %v4188_v4, %v4146_v21  ;;  %v1426_v11 = vrot.slane %v4136_v13, %v4181_v61  ;;  %v4213_v19 = vsub.s32 4, %v4116_v1 }
  0x5b   :  { %943 = vbcast.lane.b32.xlu0 %v940_v12, 258  ;;  %947 = vbcast.lane.b32.xlu1 %v940_v12, 266  ;;  %v1498_v10 = vrot.slane %v4195_v8, %v4146_v21  ;;  %v4202_v12 = vadd.s32 200, %v4169_v51  ;;  %v1876_v18 = vrot.slane %v4141_v17, %v4181_v61 }
  0x5c   :  { %3782 = vmatprep.subr.bf16.mxu1 %v3834_v22  ;;  %v538_v22 = vrot.slane %v4126_v5, %v4213_v19 }
  0x5d   :  { %2498 = vmatpush1.bf16.msra.mxu0 %v3836_v23  ;;  %v1948_v14 = vrot.slane %v4202_v12, %v4146_v21 }
  0x5e   :  { %2499 = vmatprep.subr.bf16.mxu0 %v3837_v25  ;;  %3798 = vmatpush1.bf16.msra.mxu1 %v3836_v23  ;;  %v4220_v23 = vand.u32 127, %v82_v0 }
  0x5f   :  { %1393 = vbcast.lane.b32.xlu0 %v1390_v16, 259  ;;  %1397 = vbcast.lane.b32.xlu1 %v1390_v16, 267  ;;  %v610_v16 = vrot.slane %v4174_v54, %v4159_v37 }
  0x60   :  { %3783 = vmatprep.subr.bf16.mxu1 %v3837_v25 }
  0x61   :  { %2500 = vmatpush1.bf16.msra.mxu0 %v3839_v26 }
  0x62   :  { %2501 = vmatprep.subr.bf16.mxu0 %v3840_v27  ;;  %3799 = vmatpush1.bf16.msra.mxu1 %v3839_v26  ;;  %v4225_v26 = vadd.s32 128, %v4220_v23 }
  0x63   :  { %1843 = vbcast.lane.b32.xlu0 %v1840_v20, 260  ;;  %1847 = vbcast.lane.b32.xlu1 %v1840_v20, 268  ;;  %v132_v20 = vrot.slane %v4121_v3, %v4213_v19 }
  0x64   :  { %3784 = vmatprep.subr.bf16.mxu1 %v3840_v27 }
  0x65   :  { %2502 = vmatpush1.bf16.msra.mxu0 %v3842_v29 }
  0x66   :  { %2503 = vmatprep.subr.bf16.mxu0 %v3843_v30  ;;  %3800 = vmatpush1.bf16.msra.mxu1 %v3842_v29 }
  0x67   :  { %101 = vbcast.lane.b32.xlu0 %v99_v24, 256  ;;  %105 = vbcast.lane.b32.xlu1 %v99_v24, 264  ;;  %v1060_v24 = vrot.slane %v4188_v4, %v4159_v37 }
  0x68   :  { %3785 = vmatprep.subr.bf16.mxu1 %v3843_v30  ;;  %v1510_v30 = vrot.slane %v4195_v8, %v4159_v37 }
  0x69   :  { %2504 = vmatpush1.bf16.msra.mxu0 %v3845_v32 }
  0x6a   :  { %2505 = vmatprep.subr.bf16.mxu0 %v3846_v33  ;;  %3801 = vmatpush1.bf16.msra.mxu1 %v3845_v32 }
  0x6b   :  { %505 = vbcast.lane.b32.xlu0 %v502_v28, 257  ;;  %509 = vbcast.lane.b32.xlu1 %v502_v28, 265  ;;  %v988_v28 = vrot.slane %v4131_v9, %v4213_v19 }
  0x6c   :  { %3786 = vmatprep.subr.bf16.mxu1 %v3846_v33 }
  0x6d   :  { %2506 = vmatpush1.bf16.msra.mxu0 %v3848_v35 }
  0x6e   :  { %2507 = vmatprep.subr.bf16.mxu0 %v3849_v38  ;;  %3802 = vmatpush1.bf16.msra.mxu1 %v3848_v35  ;;  %v1438_v35 = vrot.slane %v4136_v13, %v4213_v19 }
  0x6f   :  { %955 = vbcast.lane.b32.xlu0 %v952_v31, 258  ;;  %959 = vbcast.lane.b32.xlu1 %v952_v31, 266  ;;  %v4020_v31 = vmov 0.0  }
  0x70   :  { %3787 = vmatprep.subr.bf16.mxu1 %v3849_v38 }
  0x71   :  { %2508 = vmatpush1.bf16.msra.mxu0 %v3851_v39 }
  0x72   :  { %2509 = vmatprep.subr.bf16.mxu0 %v3852_v41  ;;  %3803 = vmatpush1.bf16.msra.mxu1 %v3851_v39 }
  0x73   :  { %1405 = vbcast.lane.b32.xlu0 %v1402_v34, 259  ;;  %1409 = vbcast.lane.b32.xlu1 %v1402_v34, 267 }
  0x74   :  { %3788 = vmatprep.subr.bf16.mxu1 %v3852_v41 }
  0x75   :  { %2510 = vmatpush1.bf16.msra.mxu0 %v3854_v42 }
  0x76   :  { %2511 = vmatprep.subr.bf16.mxu0 %v3855_v44  ;;  %3804 = vmatpush1.bf16.msra.mxu1 %v3854_v42 }
  0x77   :  { %1855 = vbcast.lane.b32.xlu0 %v1852_v36, 260  ;;  %1859 = vbcast.lane.b32.xlu1 %v1852_v36, 268  ;;  %v1960_v36 = vrot.slane %v4202_v12, %v4159_v37 }
  0x78   :  { %3789 = vmatprep.subr.bf16.mxu1 %v3855_v44 }
  0x79   :  { %2512 = vmatpush1.bf16.msra.mxu0 %v3857_v45 }
  0x7a   :  { %2513 = vmatprep.subr.bf16.mxu0 %v3858_v47  ;;  %3805 = vmatpush1.bf16.msra.mxu1 %v3857_v45 }
  0x7b   :  { %112 = vbcast.lane.b32.xlu0 %v110_v40, 256  ;;  %116 = vbcast.lane.b32.xlu1 %v110_v40, 264 }
  0x7c   :  { %3790 = vmatprep.subr.bf16.mxu1 %v3858_v47 }
  0x7d   :  { %2514 = vmatpush1.bf16.msra.mxu0 %v3860_v48 }
  0x7e   :  { %2515 = vmatprep.subr.bf16.mxu0 %v3861_v50  ;;  %3806 = vmatpush1.bf16.msra.mxu1 %v3860_v48 }
  0x7f   :  { %517 = vbcast.lane.b32.xlu0 %v514_v43, 257  ;;  %521 = vbcast.lane.b32.xlu1 %v514_v43, 265 }
  0x80   :  { %3791 = vmatprep.subr.bf16.mxu1 %v3861_v50 }
  0x81   :  { %2516 = vmatpush1.bf16.msra.mxu0 %v3863_v52 }
  0x82   :  { %2517 = vmatprep.subr.bf16.mxu0 %v3864_v55  ;;  %3807 = vmatpush1.bf16.msra.mxu1 %v3863_v52 }
  0x83   :  { %967 = vbcast.lane.b32.xlu0 %v964_v46, 258  ;;  %971 = vbcast.lane.b32.xlu1 %v964_v46, 266 }
  0x84   :  { %3792 = vmatprep.subr.bf16.mxu1 %v3864_v55 }
  0x85   :  { %2518 = vmatpush1.bf16.msra.mxu0 %v3866_v56 }
  0x86   :  { %2519 = vmatprep.subr.bf16.mxu0 %v3867_v58  ;;  %3808 = vmatpush1.bf16.msra.mxu1 %v3866_v56 }
  0x87   :  { %1417 = vbcast.lane.b32.xlu0 %v1414_v49, 259  ;;  %1421 = vbcast.lane.b32.xlu1 %v1414_v49, 267 }
  0x88   :  { %3793 = vmatprep.subr.bf16.mxu1 %v3867_v58 }
  0x89   :  { %2520 = vmatpush1.bf16.msra.mxu0 %v3869_v59 }
  0x8a   :  { %3809 = vmatpush1.bf16.msra.mxu1 %v3869_v59 }
  0x8b   :  { %189 = vbcast.lane.b32.xlu0 %v187_v53, 256  ;;  %193 = vbcast.lane.b32.xlu1 %v187_v53, 264 }
  0x8f   :  { %601 = vbcast.lane.b32.xlu0 %v598_v57, 257  ;;  %605 = vbcast.lane.b32.xlu1 %v598_v57, 265 }
  0x93   :  { %1867 = vbcast.lane.b32.xlu0 %v1864_v60, 260  ;;  %1871 = vbcast.lane.b32.xlu1 %v1864_v60, 268 }
  0x97   :  { %123 = vbcast.lane.b32.xlu0 %v121_v62, 256  ;;  %127 = vbcast.lane.b32.xlu1 %v121_v62, 264 }
  0x9b   :  { %529 = vbcast.lane.b32.xlu0 %v526_v63, 257  ;;  %533 = vbcast.lane.b32.xlu1 %v526_v63, 265 }
  0x9f   :  { %1051 = vbcast.lane.b32.xlu0 %v1048_v6, 258  ;;  %1055 = vbcast.lane.b32.xlu1 %v1048_v6, 266 }
  0xa3   :  { %979 = vbcast.lane.b32.xlu0 %v976_v7, 258  ;;  %983 = vbcast.lane.b32.xlu1 %v976_v7, 266 }
  0xa7   :  { %1501 = vbcast.lane.b32.xlu0 %v1498_v10, 259  ;;  %1505 = vbcast.lane.b32.xlu1 %v1498_v10, 267 }
  0xab   :  { %1429 = vbcast.lane.b32.xlu0 %v1426_v11, 259  ;;  %1433 = vbcast.lane.b32.xlu1 %v1426_v11, 267 }
  0xaf   :  { %1951 = vbcast.lane.b32.xlu0 %v1948_v14, 260  ;;  %1955 = vbcast.lane.b32.xlu1 %v1948_v14, 268 }
  0xb3   :  { %200 = vbcast.lane.b32.xlu0 %v198_v15, 256  ;;  %204 = vbcast.lane.b32.xlu1 %v198_v15, 264 }
  0xb7   :  { %613 = vbcast.lane.b32.xlu0 %v610_v16, 257  ;;  %617 = vbcast.lane.b32.xlu1 %v610_v16, 265  ;;  %v209_v16 = vrot.slane %v4169_v51, %v4181_v61 }
  0xbb   :  { %1879 = vbcast.lane.b32.xlu0 %v1876_v18, 260  ;;  %1883 = vbcast.lane.b32.xlu1 %v1876_v18, 268 }
  0xbf   :  { %134 = vbcast.lane.b32.xlu0 %v132_v20, 256  ;;  %138 = vbcast.lane.b32.xlu1 %v132_v20, 264 }
  0xc3   :  { %541 = vbcast.lane.b32.xlu0 %v538_v22, 257  ;;  %545 = vbcast.lane.b32.xlu1 %v538_v22, 265 }
  0xc5   :  { %v91_v25 = vpop.permute.xlu0 %90  ;;  %v494_v27 = vpop.permute.xlu1 %493 }
  0xc6   :  { %vm679_vm0 = vcmp.eq.s32.totalorder %v4220_v23, %v494_v27  ;;  %vm680_vm1 = vcmp.eq.s32.totalorder %v4225_v26, %v494_v27  ;;  %vm261_vm6 = vcmp.eq.s32.totalorder %v4220_v23, %v91_v25  ;;  %vm262_vm7 = vcmp.eq.s32.totalorder %v4225_v26, %v91_v25 }
  0xc7   :  { %1063 = vbcast.lane.b32.xlu0 %v1060_v24, 258  ;;  %1067 = vbcast.lane.b32.xlu1 %v1060_v24, 266  ;;  %v3442_v38 = vsel %vm679_vm0, 1.0, %v4020_v31  ;;  %v3443_v39 = vsel %vm680_vm1, 1.0, %v4020_v31  ;;  %v3378_v49 = vsel %vm261_vm6, 1.0, %v4020_v31  ;;  %v3379_v50 = vsel %vm262_vm7, 1.0, %v4020_v31 }
  0xc9   :  { %v95_v29 = vpop.permute.xlu0 %94  ;;  %v498_v0 = vpop.permute.xlu1 %497 }
  0xca   :  { %vm263_vm2 = vcmp.eq.s32.totalorder %v4220_v23, %v95_v29  ;;  %vm264_vm3 = vcmp.eq.s32.totalorder %v4225_v26, %v95_v29  ;;  %vm681_vm4 = vcmp.eq.s32.totalorder %v4220_v23, %v498_v0  ;;  %vm682_vm5 = vcmp.eq.s32.totalorder %v4225_v26, %v498_v0 }
  0xcb   :  { %991 = vbcast.lane.b32.xlu0 %v988_v28, 258  ;;  %v3444_v32 = vsel %vm681_vm4, 1.0, %v4020_v31  ;;  %v3445_v33 = vsel %vm682_vm5, 1.0, %v4020_v31  ;;  %995 = vbcast.lane.b32.xlu1 %v988_v28, 266  ;;  %v3380_v37 = vsel %vm263_vm2, 1.0, %v4020_v31  ;;  %v3381_v40 = vsel %vm264_vm3, 1.0, %v4020_v31 }
  0xcc   :  { %v871_v42 = vpack.c.bf16 %v3444_v32, %v3442_v38  ;;  %v872_v43 = vpack.c.bf16 %v3445_v33, %v3443_v39  ;;  %v453_v52 = vpack.c.bf16 %v3380_v37, %v3378_v49  ;;  %v454_v53 = vpack.c.bf16 %v3381_v40, %v3379_v50 }
  0xcd   :  { %v944_v34 = vpop.permute.xlu0 %943  ;;  %v948_v41 = vpop.permute.xlu1 %947  ;;  %v622_v33 = vrot.slane %v4174_v54, %v4181_v61  ;;  %v1888_v37 = vrot.slane %v4141_v17, %v4213_v19 }
  0xce   :  { %vm1129_vm8 = vcmp.eq.s32.totalorder %v4220_v23, %v944_v34  ;;  %vm1130_vm9 = vcmp.eq.s32.totalorder %v4225_v26, %v944_v34  ;;  %vm1131_vm10 = vcmp.eq.s32.totalorder %v4220_v23, %v948_v41  ;;  %vm1132_vm11 = vcmp.eq.s32.totalorder %v4225_v26, %v948_v41 }
  0xcf   :  { %1513 = vbcast.lane.b32.xlu0 %v1510_v30, 259  ;;  %v3508_v44 = vsel %vm1131_vm10, 1.0, %v4020_v31  ;;  %v3509_v45 = vsel %vm1132_vm11, 1.0, %v4020_v31  ;;  %v3506_v46 = vsel %vm1129_vm8, 1.0, %v4020_v31  ;;  %v3507_v47 = vsel %vm1130_vm9, 1.0, %v4020_v31  ;;  %1517 = vbcast.lane.b32.xlu1 %v1510_v30, 267 }
  0xd0   :  { %v1321_v58 = vpack.c.bf16 %v3508_v44, %v3506_v46  ;;  %v1322_v59 = vpack.c.bf16 %v3509_v45, %v3507_v47  ;;  %v903_v60 = vadd.bf16 %v871_v42, %v453_v52  ;;  %v904_v7 = vadd.bf16 %v872_v43, %v454_v53 }
  0xd1   :  { %v1394_v48 = vpop.permute.xlu0 %1393  ;;  %v1398_v55 = vpop.permute.xlu1 %1397 }
  0xd2   :  { %vm1579_vm12 = vcmp.eq.s32.totalorder %v4220_v23, %v1394_v48  ;;  %vm1580_vm13 = vcmp.eq.s32.totalorder %v4225_v26, %v1394_v48  ;;  %vm1581_vm14 = vcmp.eq.s32.totalorder %v4220_v23, %v1398_v55  ;;  %vm1582_vm15 = vcmp.eq.s32.totalorder %v4225_v26, %v1398_v55 }
  0xd3   :  { %v3570_v56 = vsel %vm1579_vm12, 1.0, %v4020_v31  ;;  %v3571_v57 = vsel %vm1580_vm13, 1.0, %v4020_v31  ;;  %1441 = vbcast.lane.b32.xlu0 %v1438_v35, 259  ;;  %v3572_v62 = vsel %vm1581_vm14, 1.0, %v4020_v31  ;;  %v3573_v63 = vsel %vm1582_vm15, 1.0, %v4020_v31  ;;  %1445 = vbcast.lane.b32.xlu1 %v1438_v35, 267 }
  0xd4   :  { %v1771_v10 = vpack.c.bf16 %v3572_v62, %v3570_v56  ;;  %v1772_v11 = vpack.c.bf16 %v3573_v63, %v3571_v57  ;;  %v1353_v20 = vadd.bf16 %v1321_v58, %v903_v60  ;;  %v1354_v22 = vadd.bf16 %v1322_v59, %v904_v7 }
  0xd5   :  { %v1844_v6 = vpop.permute.xlu0 %1843  ;;  %v1848_v14 = vpop.permute.xlu1 %1847 }
  0xd6   :  { %vm2029_vm0 = vcmp.eq.s32.totalorder %v4220_v23, %v1844_v6  ;;  %vm2030_vm1 = vcmp.eq.s32.totalorder %v4225_v26, %v1844_v6  ;;  %vm2031_vm2 = vcmp.eq.s32.totalorder %v4220_v23, %v1848_v14  ;;  %vm2032_vm3 = vcmp.eq.s32.totalorder %v4225_v26, %v1848_v14 }
  0xd7   :  { %v3634_v15 = vsel %vm2029_vm0, 1.0, %v4020_v31  ;;  %1963 = vbcast.lane.b32.xlu0 %v1960_v36, 260  ;;  %v3635_v18 = vsel %vm2030_vm1, 1.0, %v4020_v31  ;;  %v3636_v24 = vsel %vm2031_vm2, 1.0, %v4020_v31  ;;  %1967 = vbcast.lane.b32.xlu1 %v1960_v36, 268  ;;  %v3637_v27 = vsel %vm2032_vm3, 1.0, %v4020_v31 }
  0xd8   :  { %v2221_v28 = vpack.c.bf16 %v3636_v24, %v3634_v15  ;;  %v1804_v29 = vadd.bf16 %v1772_v11, %v1354_v22  ;;  %v2222_v0 = vpack.c.bf16 %v3637_v27, %v3635_v18  ;;  %v1803_v30 = vadd.bf16 %v1771_v10, %v1353_v20 }
  0xd9   :  { %v102_v25 = vpop.permute.xlu0 %101  ;;  %v106_v32 = vpop.permute.xlu1 %105  ;;  %v4294_v36 = vsub.s32 5, %v4116_v1 }
  0xda   :  { %v2254_v34 = vadd.bf16 %v2222_v0, %v1804_v29  ;;  %v2253_v35 = vadd.bf16 %v2221_v28, %v1803_v30  ;;  %vm265_vm6 = vcmp.eq.s32.totalorder %v4220_v23, %v102_v25  ;;  %vm266_vm7 = vcmp.eq.s32.totalorder %v4225_v26, %v102_v25 }
  0xdb   :  { %211 = vbcast.lane.b32.xlu0 %v209_v16, 256  ;;  %215 = vbcast.lane.b32.xlu1 %v209_v16, 264  ;;  %vm267_vm8 = vcmp.eq.s32.totalorder %v4220_v23, %v106_v32  ;;  %vm268_vm9 = vcmp.eq.s32.totalorder %v4225_v26, %v106_v32  ;;  %v143_v45 = vrot.slane %v4121_v3, %v4294_v36  ;;  %v3382_v48 = vsel %vm265_vm6, 1.0, %v4020_v31 }
  0xdc   :  { %2521 = vmatprep.mubr.bf16.mxu0 %v2254_v34  ;;  %v3384_v46 = vsel %vm267_vm8, 1.0, %v4020_v31  ;;  %v3385_v47 = vsel %vm268_vm9, 1.0, %v4020_v31  ;;  %v3383_v49 = vsel %vm266_vm7, 1.0, %v4020_v31  ;;  %v550_v59 = vrot.slane %v4126_v5, %v4294_v36 }
  0xdd   :  { %v506_v38 = vpop.permute.xlu0 %505  ;;  %v510_v39 = vpop.permute.xlu1 %509  ;;  %2522 = vmatmul.mubr.bf16.vlgmr.msra.gmra.mrb[0].mxu0 %v2253_v35  ;;  %v455_v60 = vpack.c.bf16 %v3384_v46, %v3382_v48  ;;  %v456_v62 = vpack.c.bf16 %v3385_v47, %v3383_v49  ;;  %v1072_v29 = vrot.slane %v4188_v4, %v4181_v61  ;;  %v1522_v46 = vrot.slane %v4195_v8, %v4181_v61 }
  0xde   :  { %vm683_vm4 = vcmp.eq.s32.totalorder %v4220_v23, %v506_v38  ;;  %vm684_vm5 = vcmp.eq.s32.totalorder %v4225_v26, %v506_v38  ;;  %vm685_vm10 = vcmp.eq.s32.totalorder %v4220_v23, %v510_v39  ;;  %vm686_vm11 = vcmp.eq.s32.totalorder %v4225_v26, %v510_v39 }
  0xdf   :  { %625 = vbcast.lane.b32.xlu0 %v622_v33, 257  ;;  %v3448_v40 = vsel %vm685_vm10, 1.0, %v4020_v31  ;;  %v3449_v41 = vsel %vm686_vm11, 1.0, %v4020_v31  ;;  %v3446_v42 = vsel %vm683_vm4, 1.0, %v4020_v31  ;;  %v3447_v43 = vsel %vm684_vm5, 1.0, %v4020_v31  ;;  %629 = vbcast.lane.b32.xlu1 %v622_v33, 265 }
  0xe0   :  { %v873_v52 = vpack.c.bf16 %v3448_v40, %v3446_v42  ;;  %v874_v53 = vpack.c.bf16 %v3449_v41, %v3447_v43  ;;  %v1000_v41 = vrot.slane %v4131_v9, %v4294_v36  ;;  %v1450_v49 = vrot.slane %v4136_v13, %v4294_v36 }
  0xe1   :  { %v956_v44 = vpop.permute.xlu0 %955  ;;  %v960_v50 = vpop.permute.xlu1 %959 }
  0xe2   :  { %vm1133_vm12 = vcmp.eq.s32.totalorder %v4220_v23, %v956_v44  ;;  %vm1134_vm13 = vcmp.eq.s32.totalorder %v4225_v26, %v956_v44  ;;  %vm1135_vm14 = vcmp.eq.s32.totalorder %v4220_v23, %v960_v50  ;;  %vm1136_vm15 = vcmp.eq.s32.totalorder %v4225_v26, %v960_v50 }
  0xe3   :  { %1891 = vbcast.lane.b32.xlu0 %v1888_v37, 260  ;;  %v3512_v3 = vsel %vm1135_vm14, 1.0, %v4020_v31  ;;  %v3513_v55 = vsel %vm1136_vm15, 1.0, %v4020_v31  ;;  %v3510_v56 = vsel %vm1133_vm12, 1.0, %v4020_v31  ;;  %v3511_v57 = vsel %vm1134_vm13, 1.0, %v4020_v31  ;;  %1895 = vbcast.lane.b32.xlu1 %v1888_v37, 268 }
  0xe4   :  { %v1323_v10 = vpack.c.bf16 %v3512_v3, %v3510_v56  ;;  %v1324_v11 = vpack.c.bf16 %v3513_v55, %v3511_v57  ;;  %v905_v14 = vadd.bf16 %v873_v52, %v455_v60  ;;  %v906_v15 = vadd.bf16 %v874_v53, %v456_v62 }
  0xe5   :  { %v1406_v58 = vpop.permute.xlu0 %1405  ;;  %v1410_v63 = vpop.permute.xlu1 %1409  ;;  %v1972_v53 = vrot.slane %v4202_v12, %v4181_v61  ;;  %v220_v62 = vrot.slane %v4169_v51, %v4213_v19 }
  0xe6   :  { %vm1583_vm0 = vcmp.eq.s32.totalorder %v4220_v23, %v1406_v58  ;;  %vm1584_vm1 = vcmp.eq.s32.totalorder %v4225_v26, %v1406_v58  ;;  %vm1585_vm2 = vcmp.eq.s32.totalorder %v4220_v23, %v1410_v63  ;;  %vm1586_vm3 = vcmp.eq.s32.totalorder %v4225_v26, %v1410_v63 }
  0xe7   :  { %v3574_v6 = vsel %vm1583_vm0, 1.0, %v4020_v31  ;;  %v3575_v7 = vsel %vm1584_vm1, 1.0, %v4020_v31  ;;  %145 = vbcast.lane.b32.xlu0 %v143_v45, 256  ;;  %v3576_v16 = vsel %vm1585_vm2, 1.0, %v4020_v31  ;;  %v3577_v18 = vsel %vm1586_vm3, 1.0, %v4020_v31  ;;  %149 = vbcast.lane.b32.xlu1 %v143_v45, 264 }
  0xe8   :  { %v1773_v22 = vpack.c.bf16 %v3576_v16, %v3574_v6  ;;  %v1774_v24 = vpack.c.bf16 %v3577_v18, %v3575_v7  ;;  %v1355_v0 = vadd.bf16 %v1323_v10, %v905_v14  ;;  %v1356_v30 = vadd.bf16 %v1324_v11, %v906_v15 }
  0xe9   :  { %v1856_v20 = vpop.permute.xlu0 %1855  ;;  %v1860_v25 = vpop.permute.xlu1 %1859 }
  0xea   :  { %vm2033_vm4 = vcmp.eq.s32.totalorder %v4220_v23, %v1856_v20  ;;  %vm2034_vm5 = vcmp.eq.s32.totalorder %v4225_v26, %v1856_v20  ;;  %vm2035_vm6 = vcmp.eq.s32.totalorder %v4220_v23, %v1860_v25  ;;  %vm2036_vm7 = vcmp.eq.s32.totalorder %v4225_v26, %v1860_v25 }
  0xeb   :  { %v3638_v27 = vsel %vm2033_vm4, 1.0, %v4020_v31  ;;  %v3639_v28 = vsel %vm2034_vm5, 1.0, %v4020_v31  ;;  %553 = vbcast.lane.b32.xlu0 %v550_v59, 257  ;;  %v3640_v32 = vsel %vm2035_vm6, 1.0, %v4020_v31  ;;  %v3641_v33 = vsel %vm2036_vm7, 1.0, %v4020_v31  ;;  %557 = vbcast.lane.b32.xlu1 %v550_v59, 265 }
  0xec   :  { %v2223_v35 = vpack.c.bf16 %v3640_v32, %v3638_v27  ;;  %v2224_v38 = vpack.c.bf16 %v3641_v33, %v3639_v28  ;;  %v1806_v39 = vadd.bf16 %v1774_v24, %v1356_v30  ;;  %v1805_v37 = vadd.bf16 %v1773_v22, %v1355_v0 }
  0xed   :  { %v113_v34 = vpop.permute.xlu0 %112  ;;  %v117_v40 = vpop.permute.xlu1 %116  ;;  %v634_v24 = vrot.slane %v4174_v54, %v4213_v19 }
  0xee   :  { %v2256_v42 = vadd.bf16 %v2224_v38, %v1806_v39  ;;  %v2255_v43 = vadd.bf16 %v2223_v35, %v1805_v37  ;;  %vm269_vm12 = vcmp.eq.s32.totalorder %v4220_v23, %v113_v34  ;;  %vm270_vm13 = vcmp.eq.s32.totalorder %v4225_v26, %v113_v34 }
  0xef   :  { %1075 = vbcast.lane.b32.xlu0 %v1072_v29, 258  ;;  %1079 = vbcast.lane.b32.xlu1 %v1072_v29, 266  ;;  %vm271_vm14 = vcmp.eq.s32.totalorder %v4220_v23, %v117_v40  ;;  %vm272_vm15 = vcmp.eq.s32.totalorder %v4225_v26, %v117_v40  ;;  %v3386_v58 = vsel %vm269_vm12, 1.0, %v4020_v31  ;;  %v3387_v59 = vsel %vm270_vm13, 1.0, %v4020_v31 }
  0xf0   :  { %2531 = vmatprep.mubr.bf16.mxu0 %v2256_v42  ;;  %v3388_v61 = vsel %vm271_vm14, 1.0, %v4020_v31  ;;  %v3389_v63 = vsel %vm272_vm15, 1.0, %v4020_v31  ;;  %v1900_v42 = vrot.slane %v4141_v17, %v4294_v36 }
  0xf1   :  { %v518_v44 = vpop.permute.xlu0 %517  ;;  %v522_v45 = vpop.permute.xlu1 %521  ;;  %2532 = vmatmul.mubr.bf16.gmra.mrb[4].mxu0 %v2255_v43  ;;  %v457_v20 = vpack.c.bf16 %v3388_v61, %v3386_v58  ;;  %v458_v22 = vpack.c.bf16 %v3389_v63, %v3387_v59  ;;  %v4407_v43 = vsub.s32 6, %v4116_v1 }
  0xf2   :  { %vm689_vm8 = vcmp.eq.s32.totalorder %v4220_v23, %v522_v45  ;;  %vm690_vm9 = vcmp.eq.s32.totalorder %v4225_v26, %v522_v45  ;;  %vm687_vm10 = vcmp.eq.s32.totalorder %v4220_v23, %v518_v44  ;;  %vm688_vm11 = vcmp.eq.s32.totalorder %v4225_v26, %v518_v44 }
  0xf3   :  { %1003 = vbcast.lane.b32.xlu0 %v1000_v41, 258  ;;  %1007 = vbcast.lane.b32.xlu1 %v1000_v41, 266  ;;  %v3452_v3 = vsel %vm689_vm8, 1.0, %v4020_v31  ;;  %v3453_v55 = vsel %vm690_vm9, 1.0, %v4020_v31  ;;  %v3450_v56 = vsel %vm687_vm10, 1.0, %v4020_v31  ;;  %v3451_v57 = vsel %vm688_vm11, 1.0, %v4020_v31 }
  0xf4   :  { %v875_v6 = vpack.c.bf16 %v3452_v3, %v3450_v56  ;;  %v876_v7 = vpack.c.bf16 %v3453_v55, %v3451_v57  ;;  %v4417_v55 = vld [vmem:[#allocation2] sm:$0xff] }
  0xf5   :  { %v968_v47 = vpop.permute.xlu0 %967  ;;  %v972_v48 = vpop.permute.xlu1 %971  ;;  %v154_v56 = vrot.slane %v4417_v55, %v4407_v43 }
  0xf6   :  { %vm1139_vm0 = vcmp.eq.s32.totalorder %v4220_v23, %v972_v48  ;;  %vm1140_vm1 = vcmp.eq.s32.totalorder %v4225_v26, %v972_v48  ;;  %vm1137_vm2 = vcmp.eq.s32.totalorder %v4220_v23, %v968_v47  ;;  %vm1138_vm3 = vcmp.eq.s32.totalorder %v4225_v26, %v968_v47 }
  0xf7   :  { %1525 = vbcast.lane.b32.xlu0 %v1522_v46, 259  ;;  %1529 = vbcast.lane.b32.xlu1 %v1522_v46, 267  ;;  %v3516_v11 = vsel %vm1139_vm0, 1.0, %v4020_v31  ;;  %v3517_v14 = vsel %vm1140_vm1, 1.0, %v4020_v31  ;;  %v3514_v15 = vsel %vm1137_vm2, 1.0, %v4020_v31  ;;  %v3515_v16 = vsel %vm1138_vm3, 1.0, %v4020_v31 }
  0xf8   :  { %v1325_v30 = vpack.c.bf16 %v3516_v11, %v3514_v15  ;;  %v1326_v32 = vpack.c.bf16 %v3517_v14, %v3515_v16  ;;  %v907_v33 = vadd.bf16 %v875_v6, %v457_v20  ;;  %v908_v34 = vadd.bf16 %v876_v7, %v458_v22 }
  0xf9   :  { %v1418_v50 = vpop.permute.xlu0 %1417  ;;  %v1422_v52 = vpop.permute.xlu1 %1421  ;;  %v1084_v15 = vrot.slane %v4188_v4, %v4213_v19 }
  0xfa   :  { %vm1589_vm4 = vcmp.eq.s32.totalorder %v4220_v23, %v1422_v52  ;;  %vm1590_vm5 = vcmp.eq.s32.totalorder %v4225_v26, %v1422_v52  ;;  %vm1587_vm6 = vcmp.eq.s32.totalorder %v4220_v23, %v1418_v50  ;;  %vm1588_vm7 = vcmp.eq.s32.totalorder %v4225_v26, %v1418_v50 }
  0xfb   :  { %1453 = vbcast.lane.b32.xlu0 %v1450_v49, 259  ;;  %1457 = vbcast.lane.b32.xlu1 %v1450_v49, 267  ;;  %v3580_v25 = vsel %vm1589_vm4, 1.0, %v4020_v31  ;;  %v3581_v27 = vsel %vm1590_vm5, 1.0, %v4020_v31  ;;  %v3578_v28 = vsel %vm1587_vm6, 1.0, %v4020_v31  ;;  %v3579_v29 = vsel %vm1588_vm7, 1.0, %v4020_v31 }
  0xfc   :  { %v1775_v38 = vpack.c.bf16 %v3580_v25, %v3578_v28  ;;  %v1776_v39 = vpack.c.bf16 %v3581_v27, %v3579_v29  ;;  %v1357_v44 = vadd.bf16 %v1325_v30, %v907_v33  ;;  %v1358_v45 = vadd.bf16 %v1326_v32, %v908_v34 }
  0xfd   :  { %v4368_v60 = vpop.permute.xlu0 %189  ;;  %v4382_v10 = vpop.permute.xlu1 %193  ;;  %v1534_v30 = vrot.slane %v4195_v8, %v4213_v19  ;;  %v4468_v32 = vrot.slane %v4136_v13, %v4407_v43 }
  0xfe   :  { %v1808_v52 = vadd.bf16 %v1776_v39, %v1358_v45  ;;  %vm299_vm0 = vcmp.eq.s32.totalorder %v4220_v23, %v4382_v10  ;;  %vm300_vm1 = vcmp.eq.s32.totalorder %v4225_v26, %v4382_v10  ;;  %vm297_vm2 = vcmp.eq.s32.totalorder %v4220_v23, %v4368_v60 }
  0xff   :  { %1975 = vbcast.lane.b32.xlu0 %v1972_v53, 260  ;;  %1979 = vbcast.lane.b32.xlu1 %v1972_v53, 268  ;;  %v1807_v53 = vadd.bf16 %v1775_v38, %v1357_v44  ;;  %vm298_vm3 = vcmp.eq.s32.totalorder %v4225_v26, %v4368_v60  ;;  %v3416_v60 = vsel %vm299_vm0, 1.0, %v4020_v31  ;;  %v3417_v16 = vsel %vm300_vm1, 1.0, %v4020_v31 }
 0x100   :  { %v3414_v20 = vsel %vm297_vm2, 1.0, %v4020_v31  ;;  %v3415_v22 = vsel %vm298_vm3, 1.0, %v4020_v31  ;;  %v4476_v39 = vrot.slane %v4169_v51, %v4294_v36 }
 0x101   :  { %v4392_v18 = vpop.permute.xlu0 %601  ;;  %v606_v0 = vpop.permute.xlu1 %605  ;;  %v471_v27 = vpack.c.bf16 %v3416_v60, %v3414_v20  ;;  %v472_v28 = vpack.c.bf16 %v3417_v16, %v3415_v22 }
 0x102   :  { %vm715_vm12 = vcmp.eq.s32.totalorder %v4220_v23, %v4392_v18  ;;  %vm717_vm13 = vcmp.eq.s32.totalorder %v4220_v23, %v606_v0  ;;  %vm718_vm14 = vcmp.eq.s32.totalorder %v4225_v26, %v606_v0  ;;  %vm716_vm15 = vcmp.eq.s32.totalorder %v4225_v26, %v4392_v18 }
 0x103   :  { %222 = vbcast.lane.b32.xlu0 %v220_v62, 256  ;;  %226 = vbcast.lane.b32.xlu1 %v220_v62, 264  ;;  %v562_v62 = vrot.slane %v4126_v5, %v4407_v43  ;;  %v3480_v6 = vsel %vm717_vm13, 1.0, %v4020_v31  ;;  %v3481_v7 = vsel %vm718_vm14, 1.0, %v4020_v31  ;;  %v3478_v11 = vsel %vm715_vm12, 1.0, %v4020_v31 }
 0x104   :  { %v3479_v14 = vsel %vm716_vm15, 1.0, %v4020_v31  ;;  %v1012_v0 = vrot.slane %v4131_v9, %v4407_v43 }
 0x105   :  { %v1868_v35 = vpop.permute.xlu0 %1867  ;;  %v1872_v37 = vpop.permute.xlu1 %1871  ;;  %v890_v25 = vpack.c.bf16 %v3481_v7, %v3479_v14 }
 0x106   :  { %vm2037_vm8 = vcmp.eq.s32.totalorder %v4220_v23, %v1868_v35  ;;  %vm2038_vm9 = vcmp.eq.s32.totalorder %v4225_v26, %v1868_v35  ;;  %vm2039_vm10 = vcmp.eq.s32.totalorder %v4220_v23, %v1872_v37  ;;  %vm2040_vm11 = vcmp.eq.s32.totalorder %v4225_v26, %v1872_v37 }
 0x107   :  { %v3642_v40 = vsel %vm2037_vm8, 1.0, %v4020_v31  ;;  %v3643_v41 = vsel %vm2038_vm9, 1.0, %v4020_v31  ;;  %637 = vbcast.lane.b32.xlu0 %v634_v24, 257  ;;  %v3644_v46 = vsel %vm2039_vm10, 1.0, %v4020_v31  ;;  %v3645_v47 = vsel %vm2040_vm11, 1.0, %v4020_v31  ;;  %641 = vbcast.lane.b32.xlu1 %v634_v24, 265 }
 0x108   :  { %v2225_v49 = vpack.c.bf16 %v3644_v46, %v3642_v40  ;;  %v2226_v50 = vpack.c.bf16 %v3645_v47, %v3643_v41  ;;  %v889_v24 = vpack.c.bf16 %v3480_v6, %v3478_v11  ;;  %v4472_v35 = vrot.slane %v4202_v12, %v4213_v19 }
 0x109   :  { %v4413_v48 = vpop.permute.xlu0 %123  ;;  %v4415_v3 = vpop.permute.xlu1 %127  ;;  %v922_v38 = vadd.bf16 %v890_v25, %v472_v28 }
 0x10a   :  { %v2258_v57 = vadd.bf16 %v2226_v50, %v1808_v52  ;;  %v2257_v58 = vadd.bf16 %v2225_v49, %v1807_v53  ;;  %vm273_vm4 = vcmp.eq.s32.totalorder %v4220_v23, %v4413_v48  ;;  %vm274_vm5 = vcmp.eq.s32.totalorder %v4225_v26, %v4413_v48 }
 0x10b   :  { %1903 = vbcast.lane.b32.xlu0 %v1900_v42, 260  ;;  %1907 = vbcast.lane.b32.xlu1 %v1900_v42, 268  ;;  %v921_v33 = vadd.bf16 %v889_v24, %v471_v27  ;;  %vm275_vm10 = vcmp.eq.s32.totalorder %v4220_v23, %v4415_v3  ;;  %vm276_vm11 = vcmp.eq.s32.totalorder %v4225_v26, %v4415_v3  ;;  %v4490_v51 = vsel %vm273_vm4, 1.0, %v4020_v31 }
 0x10c   :  { %2541 = vmatprep.mubr.bf16.mxu0 %v2258_v57  ;;  %v4496_v19 = vsel %vm274_vm5, 1.0, %v4020_v31  ;;  %v4524_v52 = vsel %vm275_vm10, 1.0, %v4020_v31  ;;  %v4530_v53 = vsel %vm276_vm11, 1.0, %v4020_v31 }
 0x10d   :  { %v4421_v59 = vpop.permute.xlu0 %529  ;;  %v4431_v61 = vpop.permute.xlu1 %533  ;;  %2542 = vmatmul.mubr.bf16.gmra.mrb[8].mxu0 %v2257_v58 }
 0x10e   :  { %vm693_vm0 = vcmp.eq.s32.totalorder %v4220_v23, %v4431_v61  ;;  %vm694_vm1 = vcmp.eq.s32.totalorder %v4225_v26, %v4431_v61  ;;  %vm691_vm2 = vcmp.eq.s32.totalorder %v4220_v23, %v4421_v59  ;;  %vm692_vm3 = vcmp.eq.s32.totalorder %v4225_v26, %v4421_v59 }
 0x10f   :  { %156 = vbcast.lane.b32.xlu0 %v154_v56, 256  ;;  %160 = vbcast.lane.b32.xlu1 %v154_v56, 264  ;;  %v3456_v58 = vsel %vm693_vm0, 1.0, %v4020_v31  ;;  %v3457_v59 = vsel %vm694_vm1, 1.0, %v4020_v31  ;;  %v3455_v61 = vsel %vm692_vm3, 1.0, %v4020_v31 }
 0x111   :  { %v1052_v63 = vpop.permute.xlu0 %1051  ;;  %v1056_v10 = vpop.permute.xlu1 %1055 }
 0x112   :  { %vm1167_vm6 = vcmp.eq.s32.totalorder %v4220_v23, %v1056_v10  ;;  %vm1168_vm7 = vcmp.eq.s32.totalorder %v4225_v26, %v1056_v10  ;;  %vm1165_vm8 = vcmp.eq.s32.totalorder %v4220_v23, %v1052_v63  ;;  %vm1166_vm9 = vcmp.eq.s32.totalorder %v4225_v26, %v1052_v63 }
 0x113   :  { %565 = vbcast.lane.b32.xlu0 %v562_v62, 257  ;;  %569 = vbcast.lane.b32.xlu1 %v562_v62, 265  ;;  %v3544_v40 = vsel %vm1167_vm6, 1.0, %v4020_v31  ;;  %v3545_v41 = vsel %vm1168_vm7, 1.0, %v4020_v31  ;;  %v3542_v42 = vsel %vm1165_vm8, 1.0, %v4020_v31  ;;  %v3543_v44 = vsel %vm1166_vm9, 1.0, %v4020_v31 }
 0x114   :  { %v1339_v56 = vpack.c.bf16 %v3544_v40, %v3542_v42  ;;  %v1340_v57 = vpack.c.bf16 %v3545_v41, %v3543_v44  ;;  %v3454_v62 = vsel %vm691_vm2, 1.0, %v4020_v31  ;;  %v459_v42 = vpack.c.bf16 %v4524_v52, %v4490_v51 }
 0x115   :  { %v4454_v18 = vpop.permute.xlu0 %979  ;;  %v4456_v29 = vpop.permute.xlu1 %983  ;;  %v877_v28 = vpack.c.bf16 %v3456_v58, %v3454_v62  ;;  %v646_v44 = vrot.slane %v4174_v54, %v4294_v36  ;;  %v4609_v62 = vsub.s32 7, %v4116_v1 }
 0x116   :  { %vm1141_vm6 = vcmp.eq.s32.totalorder %v4220_v23, %v4454_v18  ;;  %vm1142_vm7 = vcmp.eq.s32.totalorder %v4225_v26, %v4454_v18  ;;  %v1371_v10 = vadd.bf16 %v1339_v56, %v921_v33  ;;  %vm1143_vm10 = vcmp.eq.s32.totalorder %v4220_v23, %v4456_v29 }
 0x117   :  { %1087 = vbcast.lane.b32.xlu0 %v1084_v15, 258  ;;  %1091 = vbcast.lane.b32.xlu1 %v1084_v15, 266  ;;  %v1372_v15 = vadd.bf16 %v1340_v57, %v922_v38  ;;  %vm1144_vm11 = vcmp.eq.s32.totalorder %v4225_v26, %v4456_v29  ;;  %v3519_v40 = vsel %vm1142_vm7, 1.0, %v4020_v31  ;;  %v460_v29 = vpack.c.bf16 %v4530_v53, %v4496_v19 }
 0x118   :  { %v3521_v38 = vsel %vm1144_vm11, 1.0, %v4020_v31  ;;  %v165_v1 = vrot.slane %v4417_v55, %v4609_v62 }
 0x119   :  { %v1502_v34 = vpop.permute.xlu0 %1501  ;;  %v1506_v37 = vpop.permute.xlu1 %1505 }
 0x11a   :  { %vm1617_vm12 = vcmp.eq.s32.totalorder %v4220_v23, %v1506_v37  ;;  %vm1618_vm13 = vcmp.eq.s32.totalorder %v4225_v26, %v1506_v37  ;;  %vm1615_vm14 = vcmp.eq.s32.totalorder %v4220_v23, %v1502_v34  ;;  %vm1616_vm15 = vcmp.eq.s32.totalorder %v4225_v26, %v1502_v34 }
 0x11b   :  { %1015 = vbcast.lane.b32.xlu0 %v1012_v0, 258  ;;  %1019 = vbcast.lane.b32.xlu1 %v1012_v0, 266  ;;  %v3608_v46 = vsel %vm1617_vm12, 1.0, %v4020_v31  ;;  %v3609_v47 = vsel %vm1618_vm13, 1.0, %v4020_v31  ;;  %v3606_v48 = vsel %vm1615_vm14, 1.0, %v4020_v31  ;;  %v3607_v49 = vsel %vm1616_vm15, 1.0, %v4020_v31 }
 0x11c   :  { %v1789_v6 = vpack.c.bf16 %v3608_v46, %v3606_v48  ;;  %v1790_v3 = vpack.c.bf16 %v3609_v47, %v3607_v49  ;;  %v878_v0 = vpack.c.bf16 %v3457_v59, %v3455_v61  ;;  %v3520_v34 = vsel %vm1143_vm10, 1.0, %v4020_v31 }
 0x11d   :  { %v4506_v45 = vpop.permute.xlu0 %1429  ;;  %v1434_v50 = vpop.permute.xlu1 %1433  ;;  %v3518_v37 = vsel %vm1141_vm6, 1.0, %v4020_v31  ;;  %v1328_v48 = vpack.c.bf16 %v3521_v38, %v3519_v40  ;;  %v909_v49 = vadd.bf16 %v877_v28, %v459_v42  ;;  %v1912_v59 = vrot.slane %v4141_v17, %v4407_v43 }
 0x11e   :  { %v1822_v24 = vadd.bf16 %v1790_v3, %v1372_v15  ;;  %v1821_v27 = vadd.bf16 %v1789_v6, %v1371_v10  ;;  %vm1591_vm12 = vcmp.eq.s32.totalorder %v4220_v23, %v4506_v45  ;;  %vm1592_vm13 = vcmp.eq.s32.totalorder %v4225_v26, %v4506_v45 }
 0x11f   :  { %1537 = vbcast.lane.b32.xlu0 %v1534_v30, 259  ;;  %1541 = vbcast.lane.b32.xlu1 %v1534_v30, 267  ;;  %vm1593_vm14 = vcmp.eq.s32.totalorder %v4220_v23, %v1434_v50  ;;  %vm1594_vm15 = vcmp.eq.s32.totalorder %v4225_v26, %v1434_v50  ;;  %v3582_v18 = vsel %vm1591_vm12, 1.0, %v4020_v31  ;;  %v1327_v19 = vpack.c.bf16 %v3520_v34, %v3518_v37 }
 0x120   :  { %v3584_v46 = vsel %vm1593_vm14, 1.0, %v4020_v31  ;;  %v3585_v47 = vsel %vm1594_vm15, 1.0, %v4020_v31  ;;  %v910_v50 = vadd.bf16 %v878_v0, %v460_v29 }
 0x121   :  { %v1952_v63 = vpop.permute.xlu0 %1951  ;;  %v1956_v7 = vpop.permute.xlu1 %1955  ;;  %v1777_v53 = vpack.c.bf16 %v3584_v46, %v3582_v18  ;;  %v1024_v46 = vrot.slane %v4131_v9, %v4609_v62  ;;  %v4668_v18 = vrot.slane %v4136_v13, %v4609_v62  ;;  %v4672_v9 = vrot.slane %v4202_v12, %v4294_v36 }
 0x122   :  { %vm2065_vm4 = vcmp.eq.s32.totalorder %v4220_v23, %v1952_v63  ;;  %vm2066_vm5 = vcmp.eq.s32.totalorder %v4225_v26, %v1952_v63  ;;  %vm2067_vm8 = vcmp.eq.s32.totalorder %v4220_v23, %v1956_v7  ;;  %vm2068_vm9 = vcmp.eq.s32.totalorder %v4225_v26, %v1956_v7 }
 0x123   :  { %v3670_v11 = vsel %vm2065_vm4, 1.0, %v4020_v31  ;;  %1465 = vbcast.lane.b32.xlu0 %v4468_v32, 259  ;;  %v3671_v14 = vsel %vm2066_vm5, 1.0, %v4020_v31  ;;  %v3672_v60 = vsel %vm2067_vm8, 1.0, %v4020_v31  ;;  %1469 = vbcast.lane.b32.xlu1 %v4468_v32, 267  ;;  %v3673_v20 = vsel %vm2068_vm9, 1.0, %v4020_v31 }
 0x124   :  { %v2239_v22 = vpack.c.bf16 %v3672_v60, %v3670_v11  ;;  %v2240_v25 = vpack.c.bf16 %v3673_v20, %v3671_v14  ;;  %v1360_v61 = vadd.bf16 %v1328_v48, %v910_v50  ;;  %v4674_v48 = vld [vmem:[#allocation2 + $0x8] sm:$0xff] }
 0x125   :  { %v4553_v16 = vpop.permute.xlu0 %200  ;;  %v4560_v30 = vpop.permute.xlu1 %204 }
 0x126   :  { %v2272_v32 = vadd.bf16 %v2240_v25, %v1822_v24  ;;  %v2271_v33 = vadd.bf16 %v2239_v22, %v1821_v27  ;;  %v574_v24 = vrot.slane %v4126_v5, %v4609_v62  ;;  %vm303_vm8 = vcmp.eq.s32.totalorder %v4220_v23, %v4560_v30 }
 0x127   :  { %1987 = vbcast.lane.b32.xlu0 %v4472_v35, 260  ;;  %1991 = vbcast.lane.b32.xlu1 %v4472_v35, 268  ;;  %v3583_v35 = vsel %vm1592_vm13, 1.0, %v4020_v31  ;;  %vm304_vm9 = vcmp.eq.s32.totalorder %v4225_v26, %v4560_v30  ;;  %vm301_vm10 = vcmp.eq.s32.totalorder %v4220_v23, %v4553_v16  ;;  %vm302_vm11 = vcmp.eq.s32.totalorder %v4225_v26, %v4553_v16 }
 0x128   :  { %2611 = vmatprep.mubr.bf16.mxu1 %v2272_v32  ;;  %v1778_v56 = vpack.c.bf16 %v3585_v47, %v3583_v35  ;;  %v1096_v32 = vrot.slane %v4188_v4, %v4294_v36  ;;  %v3420_v16 = vsel %vm303_vm8, 1.0, %v4020_v31  ;;  %v3418_v34 = vsel %vm301_vm10, 1.0, %v4020_v31 }
 0x129   :  { %v4582_v41 = vpop.permute.xlu0 %613  ;;  %v618_v51 = vpop.permute.xlu1 %617  ;;  %2612 = vmatmul.mubr.bf16.vlgmr.msra.gmra.mrb[0].mxu1 %v2271_v33  ;;  %v3421_v33 = vsel %vm304_vm9, 1.0, %v4020_v31  ;;  %v3419_v38 = vsel %vm302_vm11, 1.0, %v4020_v31  ;;  %v473_v42 = vpack.c.bf16 %v3420_v16, %v3418_v34  ;;  %v1546_v47 = vrot.slane %v4195_v8, %v4294_v36 }
 0x12a   :  { %v1810_v14 = vadd.bf16 %v1778_v56, %v1360_v61  ;;  %vm719_vm4 = vcmp.eq.s32.totalorder %v4220_v23, %v4582_v41  ;;  %vm721_vm5 = vcmp.eq.s32.totalorder %v4220_v23, %v618_v51  ;;  %vm722_vm6 = vcmp.eq.s32.totalorder %v4225_v26, %v618_v51 }
 0x12b   :  { %233 = vbcast.lane.b32.xlu0 %v4476_v39, 256  ;;  %237 = vbcast.lane.b32.xlu1 %v4476_v39, 264  ;;  %v1359_v39 = vadd.bf16 %v1327_v19, %v909_v49  ;;  %vm720_vm7 = vcmp.eq.s32.totalorder %v4225_v26, %v4582_v41  ;;  %v3484_v25 = vsel %vm721_vm5, 1.0, %v4020_v31  ;;  %v3485_v27 = vsel %vm722_vm6, 1.0, %v4020_v31 }
 0x12c   :  { %v3482_v28 = vsel %vm719_vm4, 1.0, %v4020_v31  ;;  %v3483_v0 = vsel %vm720_vm7, 1.0, %v4020_v31  ;;  %v474_v29 = vpack.c.bf16 %v3421_v33, %v3419_v38  ;;  %v4678_v49 = vrot.slane %v4674_v48, %v4407_v43 }
 0x12d   :  { %v1880_v52 = vpop.permute.xlu0 %1879  ;;  %v1884_v57 = vpop.permute.xlu1 %1883  ;;  %v1809_v10 = vadd.bf16 %v1777_v53, %v1359_v39  ;;  %v891_v37 = vpack.c.bf16 %v3484_v25, %v3482_v28  ;;  %v892_v40 = vpack.c.bf16 %v3485_v27, %v3483_v0 }
 0x12e   :  { %vm2041_vm0 = vcmp.eq.s32.totalorder %v4220_v23, %v1880_v52  ;;  %vm2042_vm1 = vcmp.eq.s32.totalorder %v4225_v26, %v1880_v52  ;;  %vm2043_vm2 = vcmp.eq.s32.totalorder %v4220_v23, %v1884_v57  ;;  %vm2044_vm3 = vcmp.eq.s32.totalorder %v4225_v26, %v1884_v57 }
 0x12f   :  { %v3646_v45 = vsel %vm2041_vm0, 1.0, %v4020_v31  ;;  %v3647_v58 = vsel %vm2042_vm1, 1.0, %v4020_v31  ;;  %649 = vbcast.lane.b32.xlu0 %v646_v44, 257  ;;  %v3648_v63 = vsel %vm2043_vm2, 1.0, %v4020_v31  ;;  %v3649_v6 = vsel %vm2044_vm3, 1.0, %v4020_v31  ;;  %653 = vbcast.lane.b32.xlu1 %v646_v44, 265 }
 0x130   :  { %v2227_v7 = vpack.c.bf16 %v3648_v63, %v3646_v45  ;;  %v2228_v11 = vpack.c.bf16 %v3649_v6, %v3647_v58  ;;  %v923_v35 = vadd.bf16 %v891_v37, %v473_v42  ;;  %v924_v51 = vadd.bf16 %v892_v40, %v474_v29 }
 0x131   :  { %v4615_v3 = vpop.permute.xlu0 %134  ;;  %v4617_v15 = vpop.permute.xlu1 %138 }
 0x132   :  { %v2260_v60 = vadd.bf16 %v2228_v11, %v1810_v14  ;;  %v2259_v20 = vadd.bf16 %v2227_v7, %v1809_v10  ;;  %vm277_vm12 = vcmp.eq.s32.totalorder %v4220_v23, %v4615_v3  ;;  %vm278_vm13 = vcmp.eq.s32.totalorder %v4225_v26, %v4615_v3 }
 0x133   :  { %1915 = vbcast.lane.b32.xlu0 %v1912_v59, 260  ;;  %1919 = vbcast.lane.b32.xlu1 %v1912_v59, 268  ;;  %vm279_vm2 = vcmp.eq.s32.totalorder %v4220_v23, %v4617_v15  ;;  %vm280_vm3 = vcmp.eq.s32.totalorder %v4225_v26, %v4617_v15  ;;  %v4692_v13 = vsel %vm277_vm12, 1.0, %v4020_v31  ;;  %v4698_v36 = vsel %vm278_vm13, 1.0, %v4020_v31 }
 0x134   :  { %2551 = vmatprep.mubr.bf16.mxu0 %v2260_v60  ;;  %v4726_v6 = vsel %vm279_vm2, 1.0, %v4020_v31  ;;  %v4732_v3 = vsel %vm280_vm3, 1.0, %v4020_v31 }
 0x135   :  { %v4621_v22 = vpop.permute.xlu0 %541  ;;  %v4631_v55 = vpop.permute.xlu1 %545  ;;  %2552 = vmatmul.mubr.bf16.gmra.mrb[12].mxu0 %v2259_v20 }
 0x136   :  { %vm697_vm8 = vcmp.eq.s32.totalorder %v4220_v23, %v4631_v55  ;;  %vm698_vm9 = vcmp.eq.s32.totalorder %v4225_v26, %v4631_v55  ;;  %vm695_vm10 = vcmp.eq.s32.totalorder %v4220_v23, %v4621_v22  ;;  %vm696_vm11 = vcmp.eq.s32.totalorder %v4225_v26, %v4621_v22 }
 0x137   :  { %167 = vbcast.lane.b32.xlu0 %v165_v1, 256  ;;  %171 = vbcast.lane.b32.xlu1 %v165_v1, 264  ;;  %v3460_v14 = vsel %vm697_vm8, 1.0, %v4020_v31  ;;  %v3461_v10 = vsel %vm698_vm9, 1.0, %v4020_v31  ;;  %v3458_v1 = vsel %vm695_vm10, 1.0, %v4020_v31  ;;  %v3459_v60 = vsel %vm696_vm11, 1.0, %v4020_v31 }
 0x138   :  { %v879_v38 = vpack.c.bf16 %v3460_v14, %v3458_v1  ;;  %v880_v37 = vpack.c.bf16 %v3461_v10, %v3459_v60 }
 0x139   :  { %v1064_v5 = vpop.permute.xlu0 %1063  ;;  %v1068_v30 = vpop.permute.xlu1 %1067 }
 0x13a   :  { %vm1171_vm14 = vcmp.eq.s32.totalorder %v4220_v23, %v1068_v30  ;;  %vm1172_vm15 = vcmp.eq.s32.totalorder %v4225_v26, %v1068_v30  ;;  %vm1169_vm0 = vcmp.eq.s32.totalorder %v4220_v23, %v1064_v5  ;;  %vm1170_vm1 = vcmp.eq.s32.totalorder %v4225_v26, %v1064_v5 }
 0x13b   :  { %577 = vbcast.lane.b32.xlu0 %v574_v24, 257  ;;  %581 = vbcast.lane.b32.xlu1 %v574_v24, 265  ;;  %v3548_v52 = vsel %vm1171_vm14, 1.0, %v4020_v31  ;;  %v3549_v53 = vsel %vm1172_vm15, 1.0, %v4020_v31  ;;  %v3546_v56 = vsel %vm1169_vm0, 1.0, %v4020_v31  ;;  %v3547_v57 = vsel %vm1170_vm1, 1.0, %v4020_v31 }
 0x13c   :  { %v1341_v7 = vpack.c.bf16 %v3548_v52, %v3546_v56  ;;  %v1342_v11 = vpack.c.bf16 %v3549_v53, %v3547_v57 }
 0x13d   :  { %v4654_v41 = vpop.permute.xlu0 %991  ;;  %v4656_v44 = vpop.permute.xlu1 %995 }
 0x13e   :  { %vm1145_vm14 = vcmp.eq.s32.totalorder %v4220_v23, %v4654_v41  ;;  %vm1146_vm15 = vcmp.eq.s32.totalorder %v4225_v26, %v4654_v41  ;;  %v1373_v25 = vadd.bf16 %v1341_v7, %v923_v35  ;;  %v1374_v27 = vadd.bf16 %v1342_v11, %v924_v51 }
 0x13f   :  { %1099 = vbcast.lane.b32.xlu0 %v1096_v32, 258  ;;  %1103 = vbcast.lane.b32.xlu1 %v1096_v32, 266  ;;  %vm1147_vm2 = vcmp.eq.s32.totalorder %v4220_v23, %v4656_v44  ;;  %vm1148_vm3 = vcmp.eq.s32.totalorder %v4225_v26, %v4656_v44  ;;  %v3523_v35 = vsel %vm1146_vm15, 1.0, %v4020_v31  ;;  %v462_v44 = vpack.c.bf16 %v4732_v3, %v4698_v36 }
 0x140   :  { %v1924_v3 = vrot.slane %v4141_v17, %v4609_v62  ;;  %v176_v17 = vrot.slane %v4674_v48, %v4119_v2 }
 0x141   :  { %v1514_v19 = vpop.permute.xlu0 %1513  ;;  %v1518_v50 = vpop.permute.xlu1 %1517 }
 0x142   :  { %vm1621_vm4 = vcmp.eq.s32.totalorder %v4220_v23, %v1518_v50  ;;  %vm1622_vm5 = vcmp.eq.s32.totalorder %v4225_v26, %v1518_v50  ;;  %vm1619_vm6 = vcmp.eq.s32.totalorder %v4220_v23, %v1514_v19  ;;  %vm1620_vm7 = vcmp.eq.s32.totalorder %v4225_v26, %v1514_v19 }
 0x143   :  { %1027 = vbcast.lane.b32.xlu0 %v1024_v46, 258  ;;  %1031 = vbcast.lane.b32.xlu1 %v1024_v46, 266  ;;  %v3612_v58 = vsel %vm1621_vm4, 1.0, %v4020_v31  ;;  %v3613_v59 = vsel %vm1622_vm5, 1.0, %v4020_v31  ;;  %v3610_v39 = vsel %vm1619_vm6, 1.0, %v4020_v31  ;;  %v3611_v61 = vsel %vm1620_vm7, 1.0, %v4020_v31 }
 0x144   :  { %v1791_v22 = vpack.c.bf16 %v3612_v58, %v3610_v39  ;;  %v1792_v24 = vpack.c.bf16 %v3613_v59, %v3611_v61  ;;  %v3524_v46 = vsel %vm1147_vm2, 1.0, %v4020_v31  ;;  %v461_v19 = vpack.c.bf16 %v4726_v6, %v4692_v13 }
 0x145   :  { %v4708_v45 = vpop.permute.xlu0 %1441  ;;  %v1446_v63 = vpop.permute.xlu1 %1445  ;;  %v658_v50 = vrot.slane %v4174_v54, %v4407_v43  ;;  %v912_v58 = vadd.bf16 %v880_v37, %v462_v44  ;;  %v1558_v44 = vrot.slane %v4195_v8, %v4407_v43 }
 0x146   :  { %v1823_v32 = vadd.bf16 %v1791_v22, %v1373_v25  ;;  %v1824_v16 = vadd.bf16 %v1792_v24, %v1374_v27  ;;  %vm1595_vm4 = vcmp.eq.s32.totalorder %v4220_v23, %v4708_v45  ;;  %vm1596_vm5 = vcmp.eq.s32.totalorder %v4225_v26, %v4708_v45 }
 0x147   :  { %1549 = vbcast.lane.b32.xlu0 %v1546_v47, 259  ;;  %1553 = vbcast.lane.b32.xlu1 %v1546_v47, 267  ;;  %vm1597_vm6 = vcmp.eq.s32.totalorder %v4220_v23, %v1446_v63  ;;  %vm1598_vm7 = vcmp.eq.s32.totalorder %v4225_v26, %v1446_v63  ;;  %v3525_v47 = vsel %vm1148_vm3, 1.0, %v4020_v31  ;;  %v3586_v41 = vsel %vm1595_vm4, 1.0, %v4020_v31 }
 0x148   :  { %v3588_v52 = vsel %vm1597_vm6, 1.0, %v4020_v31  ;;  %v3589_v53 = vsel %vm1598_vm7, 1.0, %v4020_v31  ;;  %v1330_v56 = vpack.c.bf16 %v3525_v47, %v3523_v35  ;;  %v911_v57 = vadd.bf16 %v879_v38, %v461_v19 }
 0x149   :  { %v1964_v20 = vpop.permute.xlu0 %1963  ;;  %v1968_v15 = vpop.permute.xlu1 %1967  ;;  %v1779_v39 = vpack.c.bf16 %v3588_v52, %v3586_v41  ;;  %v586_v25 = vrot.slane %v4174_v54, %v4119_v2  ;;  %v1108_v38 = vrot.slane %v4188_v4, %v4407_v43  ;;  %v1036_v19 = vrot.slane %v4188_v4, %v4119_v2 }
 0x14a   :  { %vm2069_vm12 = vcmp.eq.s32.totalorder %v4220_v23, %v1964_v20  ;;  %vm2070_vm13 = vcmp.eq.s32.totalorder %v4225_v26, %v1964_v20  ;;  %vm2071_vm0 = vcmp.eq.s32.totalorder %v4220_v23, %v1968_v15  ;;  %vm2072_vm1 = vcmp.eq.s32.totalorder %v4225_v26, %v1968_v15 }
 0x14b   :  { %v3674_v55 = vsel %vm2069_vm12, 1.0, %v4020_v31  ;;  %v3675_v5 = vsel %vm2070_vm13, 1.0, %v4020_v31  ;;  %1477 = vbcast.lane.b32.xlu0 %v4668_v18, 259  ;;  %v3676_v28 = vsel %vm2071_vm0, 1.0, %v4020_v31  ;;  %v3677_v0 = vsel %vm2072_vm1, 1.0, %v4020_v31  ;;  %1481 = vbcast.lane.b32.xlu1 %v4668_v18, 267 }
 0x14c   :  { %v2241_v33 = vpack.c.bf16 %v3676_v28, %v3674_v55  ;;  %v2242_v34 = vpack.c.bf16 %v3677_v0, %v3675_v5  ;;  %v3522_v18 = vsel %vm1145_vm14, 1.0, %v4020_v31  ;;  %v1362_v11 = vadd.bf16 %v1330_v56, %v912_v58 }
 0x14d   :  { %v4756_v30 = vpop.permute.xlu0 %211  ;;  %v4762_v40 = vpop.permute.xlu1 %215  ;;  %v1329_v36 = vpack.c.bf16 %v3524_v46, %v3522_v18 }
 0x14e   :  { %v2274_v42 = vadd.bf16 %v2242_v34, %v1824_v16  ;;  %v2273_v29 = vadd.bf16 %v2241_v33, %v1823_v32  ;;  %vm307_vm0 = vcmp.eq.s32.totalorder %v4220_v23, %v4762_v40  ;;  %vm308_vm1 = vcmp.eq.s32.totalorder %v4225_v26, %v4762_v40 }
 0x14f   :  { %1999 = vbcast.lane.b32.xlu0 %v4672_v9, 260  ;;  %2003 = vbcast.lane.b32.xlu1 %v4672_v9, 268  ;;  %v3587_v9 = vsel %vm1596_vm5, 1.0, %v4020_v31  ;;  %v1361_v7 = vadd.bf16 %v1329_v36, %v911_v57  ;;  %vm305_vm2 = vcmp.eq.s32.totalorder %v4220_v23, %v4756_v30  ;;  %vm306_vm3 = vcmp.eq.s32.totalorder %v4225_v26, %v4756_v30 }
 0x150   :  { %2621 = vmatprep.mubr.bf16.mxu1 %v2274_v42  ;;  %v1780_v61 = vpack.c.bf16 %v3589_v53, %v3587_v9  ;;  %v3424_v30 = vsel %vm307_vm0, 1.0, %v4020_v31  ;;  %v3425_v37 = vsel %vm308_vm1, 1.0, %v4020_v31  ;;  %v3422_v40 = vsel %vm305_vm2, 1.0, %v4020_v31 }
 0x151   :  { %v4784_v51 = vpop.permute.xlu0 %625  ;;  %v630_v13 = vpop.permute.xlu1 %629  ;;  %2622 = vmatmul.mubr.bf16.gmra.mrb[4].mxu1 %v2273_v29  ;;  %v1811_v1 = vadd.bf16 %v1779_v39, %v1361_v7  ;;  %v3423_v42 = vsel %vm306_vm3, 1.0, %v4020_v31  ;;  %v475_v18 = vpack.c.bf16 %v3424_v30, %v3422_v40  ;;  %v4871_v9 = vrot.slane %v4202_v12, %v4407_v43 }
 0x152   :  { %v1812_v60 = vadd.bf16 %v1780_v61, %v1362_v11  ;;  %vm723_vm12 = vcmp.eq.s32.totalorder %v4220_v23, %v4784_v51  ;;  %vm725_vm13 = vcmp.eq.s32.totalorder %v4220_v23, %v630_v13  ;;  %vm726_vm14 = vcmp.eq.s32.totalorder %v4225_v26, %v630_v13 }
 0x153   :  { %244 = vbcast.lane.b32.xlu0 %v4678_v49, 256  ;;  %248 = vbcast.lane.b32.xlu1 %v4678_v49, 264  ;;  %vm724_vm15 = vcmp.eq.s32.totalorder %v4225_v26, %v4784_v51  ;;  %v3488_v0 = vsel %vm725_vm13, 1.0, %v4020_v31  ;;  %v3489_v32 = vsel %vm726_vm14, 1.0, %v4020_v31  ;;  %v3486_v16 = vsel %vm723_vm12, 1.0, %v4020_v31 }
 0x154   :  { %v3487_v33 = vsel %vm724_vm15, 1.0, %v4020_v31  ;;  %v893_v29 = vpack.c.bf16 %v3488_v0, %v3486_v16  ;;  %v476_v35 = vpack.c.bf16 %v3425_v37, %v3423_v42  ;;  %v4875_v13 = vrot.slane %v4674_v48, %v4609_v62 }
 0x155   :  { %v1892_v59 = vpop.permute.xlu0 %1891  ;;  %v1896_v63 = vpop.permute.xlu1 %1895  ;;  %v894_v46 = vpack.c.bf16 %v3489_v32, %v3487_v33 }
 0x156   :  { %vm2045_vm8 = vcmp.eq.s32.totalorder %v4220_v23, %v1892_v59  ;;  %vm2046_vm9 = vcmp.eq.s32.totalorder %v4225_v26, %v1892_v59  ;;  %vm2047_vm10 = vcmp.eq.s32.totalorder %v4220_v23, %v1896_v63  ;;  %vm2048_vm11 = vcmp.eq.s32.totalorder %v4225_v26, %v1896_v63 }
 0x157   :  { %v3650_v45 = vsel %vm2045_vm8, 1.0, %v4020_v31  ;;  %v3651_v6 = vsel %vm2046_vm9, 1.0, %v4020_v31  ;;  %661 = vbcast.lane.b32.xlu0 %v658_v50, 257  ;;  %v3652_v49 = vsel %vm2047_vm10, 1.0, %v4020_v31  ;;  %v3653_v14 = vsel %vm2048_vm11, 1.0, %v4020_v31  ;;  %665 = vbcast.lane.b32.xlu1 %v658_v50, 265 }
 0x158   :  { %v2229_v20 = vpack.c.bf16 %v3652_v49, %v3650_v45  ;;  %v2230_v22 = vpack.c.bf16 %v3653_v14, %v3651_v6  ;;  %v4867_v50 = vrot.slane %v4195_v8, %v4119_v2  ;;  %v925_v52 = vadd.bf16 %v893_v29, %v475_v18 }
 0x159   :  { %v4814_v10 = vpop.permute.xlu0 %145  ;;  %v4816_v24 = vpop.permute.xlu1 %149  ;;  %v926_v53 = vadd.bf16 %v894_v46, %v476_v35 }
 0x15a   :  { %v2262_v15 = vadd.bf16 %v2230_v22, %v1812_v60  ;;  %v2261_v55 = vadd.bf16 %v2229_v20, %v1811_v1  ;;  %vm281_vm4 = vcmp.eq.s32.totalorder %v4220_v23, %v4814_v10  ;;  %vm282_vm5 = vcmp.eq.s32.totalorder %v4225_v26, %v4814_v10 }
 0x15b   :  { %1927 = vbcast.lane.b32.xlu0 %v1924_v3, 260  ;;  %1931 = vbcast.lane.b32.xlu1 %v1924_v3, 268  ;;  %vm283_vm10 = vcmp.eq.s32.totalorder %v4220_v23, %v4816_v24  ;;  %vm284_vm11 = vcmp.eq.s32.totalorder %v4225_v26, %v4816_v24  ;;  %v4889_v43 = vsel %vm281_vm4, 1.0, %v4020_v31  ;;  %v4895_v48 = vsel %vm282_vm5, 1.0, %v4020_v31 }
 0x15c   :  { %2561 = vmatprep.mubr.bf16.mxu0 %v2262_v15  ;;  %v4923_v7 = vsel %vm283_vm10, 1.0, %v4020_v31  ;;  %v4929_v11 = vsel %vm284_vm11, 1.0, %v4020_v31 }
 0x15d   :  { %v4820_v5 = vpop.permute.xlu0 %553  ;;  %v4830_v27 = vpop.permute.xlu1 %557  ;;  %2562 = vmatmul.mubr.bf16.gmra.mrb[16].mxu0 %v2261_v55 }
 0x15e   :  { %vm701_vm0 = vcmp.eq.s32.totalorder %v4220_v23, %v4830_v27  ;;  %vm702_vm1 = vcmp.eq.s32.totalorder %v4225_v26, %v4830_v27  ;;  %vm699_vm2 = vcmp.eq.s32.totalorder %v4220_v23, %v4820_v5  ;;  %vm700_vm3 = vcmp.eq.s32.totalorder %v4225_v26, %v4820_v5 }
 0x15f   :  { %178 = vbcast.lane.b32.xlu0 %v176_v17, 256  ;;  %182 = vbcast.lane.b32.xlu1 %v176_v17, 264  ;;  %v3464_v10 = vsel %vm701_vm0, 1.0, %v4020_v31  ;;  %v3465_v1 = vsel %vm702_vm1, 1.0, %v4020_v31  ;;  %v3462_v60 = vsel %vm699_vm2, 1.0, %v4020_v31  ;;  %v3463_v20 = vsel %vm700_vm3, 1.0, %v4020_v31 }
 0x160   :  { %v881_v30 = vpack.c.bf16 %v3464_v10, %v3462_v60  ;;  %v882_v37 = vpack.c.bf16 %v3465_v1, %v3463_v20  ;;  %v1120_v20 = vrot.slane %v4188_v4, %v4609_v62 }
 0x161   :  { %v1076_v28 = vpop.permute.xlu0 %1075  ;;  %v1080_v34 = vpop.permute.xlu1 %1079 }
 0x162   :  { %vm1175_vm6 = vcmp.eq.s32.totalorder %v4220_v23, %v1080_v34  ;;  %vm1176_vm7 = vcmp.eq.s32.totalorder %v4225_v26, %v1080_v34  ;;  %vm1173_vm8 = vcmp.eq.s32.totalorder %v4220_v23, %v1076_v28  ;;  %vm1174_vm9 = vcmp.eq.s32.totalorder %v4225_v26, %v1076_v28 }
 0x163   :  { %589 = vbcast.lane.b32.xlu0 %v586_v25, 257  ;;  %593 = vbcast.lane.b32.xlu1 %v586_v25, 265  ;;  %v3552_v56 = vsel %vm1175_vm6, 1.0, %v4020_v31  ;;  %v3553_v57 = vsel %vm1176_vm7, 1.0, %v4020_v31  ;;  %v3550_v58 = vsel %vm1173_vm8, 1.0, %v4020_v31  ;;  %v3551_v59 = vsel %vm1174_vm9, 1.0, %v4020_v31 }
 0x164   :  { %v1343_v49 = vpack.c.bf16 %v3552_v56, %v3550_v58  ;;  %v1344_v14 = vpack.c.bf16 %v3553_v57, %v3551_v59 }
 0x165   :  { %v4853_v47 = vpop.permute.xlu0 %1003  ;;  %v4855_v51 = vpop.permute.xlu1 %1007 }
 0x166   :  { %vm1149_vm6 = vcmp.eq.s32.totalorder %v4220_v23, %v4853_v47  ;;  %vm1150_vm7 = vcmp.eq.s32.totalorder %v4225_v26, %v4853_v47  ;;  %v1375_v25 = vadd.bf16 %v1343_v49, %v925_v52  ;;  %v1376_v27 = vadd.bf16 %v1344_v14, %v926_v53 }
 0x167   :  { %1111 = vbcast.lane.b32.xlu0 %v1108_v38, 258  ;;  %1115 = vbcast.lane.b32.xlu1 %v1108_v38, 266  ;;  %vm1151_vm10 = vcmp.eq.s32.totalorder %v4220_v23, %v4855_v51  ;;  %vm1152_vm11 = vcmp.eq.s32.totalorder %v4225_v26, %v4855_v51  ;;  %v3526_v35 = vsel %vm1149_vm6, 1.0, %v4020_v31  ;;  %v464_v51 = vpack.c.bf16 %v4929_v11, %v4895_v48 }
 0x168   :  { %v3528_v46 = vsel %vm1151_vm10, 1.0, %v4020_v31  ;;  %v3529_v18 = vsel %vm1152_vm11, 1.0, %v4020_v31  ;;  %v670_v52 = vrot.slane %v4174_v54, %v4609_v62 }
 0x169   :  { %v1526_v41 = vpop.permute.xlu0 %1525  ;;  %v1530_v36 = vpop.permute.xlu1 %1529  ;;  %v1331_v48 = vpack.c.bf16 %v3528_v46, %v3526_v35  ;;  %v914_v56 = vadd.bf16 %v882_v37, %v464_v51 }
 0x16a   :  { %vm1625_vm12 = vcmp.eq.s32.totalorder %v4220_v23, %v1530_v36  ;;  %vm1626_vm13 = vcmp.eq.s32.totalorder %v4225_v26, %v1530_v36  ;;  %vm1623_vm14 = vcmp.eq.s32.totalorder %v4220_v23, %v1526_v41  ;;  %vm1624_vm15 = vcmp.eq.s32.totalorder %v4225_v26, %v1526_v41 }
 0x16b   :  { %1039 = vbcast.lane.b32.xlu0 %v1036_v19, 258  ;;  %1043 = vbcast.lane.b32.xlu1 %v1036_v19, 266  ;;  %v3616_v61 = vsel %vm1625_vm12, 1.0, %v4020_v31  ;;  %v3617_v63 = vsel %vm1626_vm13, 1.0, %v4020_v31  ;;  %v3614_v45 = vsel %vm1623_vm14, 1.0, %v4020_v31  ;;  %v3615_v6 = vsel %vm1624_vm15, 1.0, %v4020_v31 }
 0x16c   :  { %v1793_v17 = vpack.c.bf16 %v3616_v61, %v3614_v45  ;;  %v1794_v15 = vpack.c.bf16 %v3617_v63, %v3615_v6  ;;  %v3527_v19 = vsel %vm1150_vm7, 1.0, %v4020_v31  ;;  %v1936_v45 = vrot.slane %v4202_v12, %v4119_v2 }
 0x16d   :  { %v4905_v39 = vpop.permute.xlu0 %1453  ;;  %v1458_v3 = vpop.permute.xlu1 %1457  ;;  %v1332_v54 = vpack.c.bf16 %v3529_v18, %v3527_v19 }
 0x16e   :  { %v1825_v16 = vadd.bf16 %v1793_v17, %v1375_v25  ;;  %v1826_v33 = vadd.bf16 %v1794_v15, %v1376_v27  ;;  %vm1599_vm12 = vcmp.eq.s32.totalorder %v4220_v23, %v4905_v39  ;;  %vm1600_vm13 = vcmp.eq.s32.totalorder %v4225_v26, %v4905_v39 }
 0x16f   :  { %1561 = vbcast.lane.b32.xlu0 %v1558_v44, 259  ;;  %1565 = vbcast.lane.b32.xlu1 %v1558_v44, 267  ;;  %vm1601_vm14 = vcmp.eq.s32.totalorder %v4220_v23, %v1458_v3  ;;  %vm1602_vm15 = vcmp.eq.s32.totalorder %v4225_v26, %v1458_v3  ;;  %v3590_v47 = vsel %vm1599_vm12, 1.0, %v4020_v31  ;;  %v1364_v3 = vadd.bf16 %v1332_v54, %v914_v56 }
 0x170   :  { %v3592_v53 = vsel %vm1601_vm14, 1.0, %v4020_v31  ;;  %v3593_v41 = vsel %vm1602_vm15, 1.0, %v4020_v31 }
 0x171   :  { %v1976_v22 = vpop.permute.xlu0 %1975  ;;  %v1980_v24 = vpop.permute.xlu1 %1979  ;;  %v1781_v58 = vpack.c.bf16 %v3592_v53, %v3590_v47 }
 0x172   :  { %vm2073_vm4 = vcmp.eq.s32.totalorder %v4220_v23, %v1976_v22  ;;  %vm2074_vm5 = vcmp.eq.s32.totalorder %v4225_v26, %v1976_v22  ;;  %vm2075_vm8 = vcmp.eq.s32.totalorder %v4220_v23, %v1980_v24  ;;  %vm2076_vm9 = vcmp.eq.s32.totalorder %v4225_v26, %v1980_v24 }
 0x173   :  { %v3678_v55 = vsel %vm2073_vm4, 1.0, %v4020_v31  ;;  %v3679_v5 = vsel %vm2074_vm5, 1.0, %v4020_v31  ;;  %1489 = vbcast.lane.b32.xlu0 %v4867_v50, 259  ;;  %v3680_v28 = vsel %vm2075_vm8, 1.0, %v4020_v31  ;;  %v3681_v0 = vsel %vm2076_vm9, 1.0, %v4020_v31  ;;  %1493 = vbcast.lane.b32.xlu1 %v4867_v50, 267 }
 0x174   :  { %v2243_v34 = vpack.c.bf16 %v3680_v28, %v3678_v55  ;;  %v2244_v38 = vpack.c.bf16 %v3681_v0, %v3679_v5  ;;  %v463_v50 = vpack.c.bf16 %v4923_v7, %v4889_v43  ;;  %v1570_v5 = vrot.slane %v4195_v8, %v4609_v62 }
 0x175   :  { %v4953_v32 = vpop.permute.xlu0 %222  ;;  %v4959_v40 = vpop.permute.xlu1 %226  ;;  %v2020_v8 = vrot.slane %v4202_v12, %v4609_v62 }
 0x176   :  { %v2276_v42 = vadd.bf16 %v2244_v38, %v1826_v33  ;;  %v2275_v29 = vadd.bf16 %v2243_v34, %v1825_v16  ;;  %v913_v36 = vadd.bf16 %v881_v30, %v463_v50  ;;  %vm309_vm6 = vcmp.eq.s32.totalorder %v4220_v23, %v4953_v32 }
 0x177   :  { %2011 = vbcast.lane.b32.xlu0 %v4871_v9, 260  ;;  %2015 = vbcast.lane.b32.xlu1 %v4871_v9, 268  ;;  %v3591_v9 = vsel %vm1600_vm13, 1.0, %v4020_v31  ;;  %vm310_vm7 = vcmp.eq.s32.totalorder %v4225_v26, %v4953_v32  ;;  %vm311_vm8 = vcmp.eq.s32.totalorder %v4220_v23, %v4959_v40  ;;  %vm312_vm9 = vcmp.eq.s32.totalorder %v4225_v26, %v4959_v40 }
 0x178   :  { %2631 = vmatprep.mubr.bf16.mxu1 %v2276_v42  ;;  %v1782_v59 = vpack.c.bf16 %v3593_v41, %v3591_v9  ;;  %v1363_v6 = vadd.bf16 %v1331_v48, %v913_v36  ;;  %v3426_v25 = vsel %vm309_vm6, 1.0, %v4020_v31  ;;  %v3427_v27 = vsel %vm310_vm7, 1.0, %v4020_v31 }
 0x179   :  { %v4981_v44 = vpop.permute.xlu0 %637  ;;  %v642_v43 = vpop.permute.xlu1 %641  ;;  %2632 = vmatmul.mubr.bf16.gmra.mrb[8].mxu1 %v2275_v29  ;;  %v3428_v28 = vsel %vm311_vm8, 1.0, %v4020_v31  ;;  %v3429_v0 = vsel %vm312_vm9, 1.0, %v4020_v31 }
 0x17a   :  { %v1813_v49 = vadd.bf16 %v1781_v58, %v1363_v6  ;;  %v1814_v14 = vadd.bf16 %v1782_v59, %v1364_v3  ;;  %vm729_vm4 = vcmp.eq.s32.totalorder %v4220_v23, %v642_v43  ;;  %vm727_vm5 = vcmp.eq.s32.totalorder %v4220_v23, %v4981_v44 }
 0x17b   :  { %255 = vbcast.lane.b32.xlu0 %v4875_v13, 256  ;;  %259 = vbcast.lane.b32.xlu1 %v4875_v13, 264  ;;  %vm730_vm10 = vcmp.eq.s32.totalorder %v4225_v26, %v642_v43  ;;  %vm728_vm11 = vcmp.eq.s32.totalorder %v4225_v26, %v4981_v44  ;;  %v3492_v4 = vsel %vm729_vm4, 1.0, %v4020_v31  ;;  %v3490_v24 = vsel %vm727_vm5, 1.0, %v4020_v31 }
 0x17c   :  { %v3493_v32 = vsel %vm730_vm10, 1.0, %v4020_v31  ;;  %v3491_v16 = vsel %vm728_vm11, 1.0, %v4020_v31  ;;  %v895_v34 = vpack.c.bf16 %v3492_v4, %v3490_v24  ;;  %v477_v30 = vpack.c.bf16 %v3428_v28, %v3426_v25 }
 0x17d   :  { %v1904_v57 = vpop.permute.xlu0 %1903  ;;  %v1908_v61 = vpop.permute.xlu1 %1907  ;;  %v478_v37 = vpack.c.bf16 %v3429_v0, %v3427_v27  ;;  %v896_v40 = vpack.c.bf16 %v3493_v32, %v3491_v16 }
 0x17e   :  { %vm2049_vm0 = vcmp.eq.s32.totalorder %v4220_v23, %v1904_v57  ;;  %vm2050_vm1 = vcmp.eq.s32.totalorder %v4225_v26, %v1904_v57  ;;  %vm2051_vm2 = vcmp.eq.s32.totalorder %v4220_v23, %v1908_v61  ;;  %vm2052_vm3 = vcmp.eq.s32.totalorder %v4225_v26, %v1908_v61 }
 0x17f   :  { %v3654_v39 = vsel %vm2049_vm0, 1.0, %v4020_v31  ;;  %v3655_v63 = vsel %vm2050_vm1, 1.0, %v4020_v31  ;;  %673 = vbcast.lane.b32.xlu0 %v670_v52, 257  ;;  %v3656_v13 = vsel %vm2051_vm2, 1.0, %v4020_v31  ;;  %v3657_v7 = vsel %vm2052_vm3, 1.0, %v4020_v31  ;;  %677 = vbcast.lane.b32.xlu1 %v670_v52, 265 }
 0x180   :  { %v2231_v10 = vpack.c.bf16 %v3656_v13, %v3654_v39  ;;  %v2232_v1 = vpack.c.bf16 %v3657_v7, %v3655_v63  ;;  %v927_v29 = vadd.bf16 %v895_v34, %v477_v30  ;;  %v928_v19 = vadd.bf16 %v896_v40, %v478_v37 }
 0x181   :  { %v5011_v11 = vpop.permute.xlu0 %156  ;;  %v5013_v60 = vpop.permute.xlu1 %160 }
 0x182   :  { %v2264_v22 = vadd.bf16 %v2232_v1, %v1814_v14  ;;  %v2263_v17 = vadd.bf16 %v2231_v10, %v1813_v49  ;;  %vm287_vm0 = vcmp.eq.s32.totalorder %v4220_v23, %v5013_v60  ;;  %vm285_vm1 = vcmp.eq.s32.totalorder %v4220_v23, %v5011_v11 }
 0x183   :  { %1939 = vbcast.lane.b32.xlu0 %v1936_v45, 260  ;;  %1943 = vbcast.lane.b32.xlu1 %v1936_v45, 268  ;;  %vm286_vm2 = vcmp.eq.s32.totalorder %v4225_v26, %v5011_v11  ;;  %vm288_vm7 = vcmp.eq.s32.totalorder %v4225_v26, %v5013_v60  ;;  %v5072_v44 = vsel %vm285_vm1, 1.0, %v4020_v31  ;;  %v3404_v52 = vsel %vm287_vm0, 1.0, %v4020_v31 }
 0x184   :  { %2571 = vmatprep.mubr.bf16.mxu0 %v2264_v22  ;;  %v5075_v50 = vsel %vm286_vm2, 1.0, %v4020_v31  ;;  %v3405_v36 = vsel %vm288_vm7, 1.0, %v4020_v31  ;;  %v465_v56 = vpack.c.bf16 %v3404_v52, %v5072_v44 }
 0x185   :  { %v566_v15 = vpop.permute.xlu0 %565  ;;  %v570_v55 = vpop.permute.xlu1 %569  ;;  %2572 = vmatmul.mubr.bf16.gmra.mrb[20].mxu0 %v2263_v17  ;;  %v466_v34 = vpack.c.bf16 %v3405_v36, %v5075_v50 }
 0x186   :  { %vm705_vm3 = vcmp.eq.s32.totalorder %v4220_v23, %v570_v55  ;;  %vm706_vm4 = vcmp.eq.s32.totalorder %v4225_v26, %v570_v55  ;;  %vm703_vm5 = vcmp.eq.s32.totalorder %v4220_v23, %v566_v15  ;;  %vm704_vm6 = vcmp.eq.s32.totalorder %v4225_v26, %v566_v15 }
 0x187   :  { %1123 = vbcast.lane.b32.xlu0 %v1120_v20, 258  ;;  %1127 = vbcast.lane.b32.xlu1 %v1120_v20, 266  ;;  %v3468_v53 = vsel %vm705_vm3, 1.0, %v4020_v31  ;;  %v3466_v41 = vsel %vm703_vm5, 1.0, %v4020_v31  ;;  %v5090_v47 = vsel %vm704_vm6, 1.0, %v4020_v31  ;;  %v3469_v9 = vsel %vm706_vm4, 1.0, %v4020_v31 }
 0x188   :  { %v883_v58 = vpack.c.bf16 %v3468_v53, %v3466_v41  ;;  %v884_v39 = vpack.c.bf16 %v3469_v9, %v5090_v47  ;;  %v2317_v47 = vld [vmem:[%s5661_s2] sm:$0x3] }
 0x189   :  { %v1088_v33 = vpop.permute.xlu0 %1087  ;;  %v1092_v38 = vpop.permute.xlu1 %1091 }
 0x18a   :  { %vm1179_vm12 = vcmp.eq.s32.totalorder %v4220_v23, %v1092_v38  ;;  %vm1180_vm13 = vcmp.eq.s32.totalorder %v4225_v26, %v1092_v38  ;;  %vm1177_vm14 = vcmp.eq.s32.totalorder %v4220_v23, %v1088_v33  ;;  %vm1178_vm15 = vcmp.eq.s32.totalorder %v4225_v26, %v1088_v33 }
 0x18b   :  { %1573 = vbcast.lane.b32.xlu0 %v1570_v5, 259  ;;  %1577 = vbcast.lane.b32.xlu1 %v1570_v5, 267  ;;  %v3556_v62 = vsel %vm1179_vm12, 1.0, %v4020_v31  ;;  %v3557_v46 = vsel %vm1180_vm13, 1.0, %v4020_v31  ;;  %v3554_v18 = vsel %vm1177_vm14, 1.0, %v4020_v31  ;;  %v3555_v35 = vsel %vm1178_vm15, 1.0, %v4020_v31 }
 0x18c   :  { %v1345_v43 = vpack.c.bf16 %v3556_v62, %v3554_v18  ;;  %v1346_v48 = vpack.c.bf16 %v3557_v46, %v3555_v35  ;;  %v915_v30 = vadd.bf16 %v883_v58, %v465_v56 }
 0x18d   :  { %v1016_v42 = vpop.permute.xlu0 %1015  ;;  %v1020_v12 = vpop.permute.xlu1 %1019 }
 0x18e   :  { %vm1153_vm9 = vcmp.eq.s32.totalorder %v4220_v23, %v1016_v42  ;;  %vm1155_vm13 = vcmp.eq.s32.totalorder %v4220_v23, %v1020_v12  ;;  %vm1154_vm14 = vcmp.eq.s32.totalorder %v4225_v26, %v1016_v42  ;;  %vm1156_vm15 = vcmp.eq.s32.totalorder %v4225_v26, %v1020_v12 }
 0x18f   :  { %2023 = vbcast.lane.b32.xlu0 %v2020_v8, 260  ;;  %2027 = vbcast.lane.b32.xlu1 %v2020_v8, 268  ;;  %v3530_v63 = vsel %vm1153_vm9, 1.0, %v4020_v31  ;;  %v1377_v13 = vadd.bf16 %v1345_v43, %v927_v29  ;;  %v1378_v7 = vadd.bf16 %v1346_v48, %v928_v19  ;;  %v3532_v11 = vsel %vm1155_vm13, 1.0, %v4020_v31 }
 0x190   :  { %v3531_v49 = vsel %vm1154_vm14, 1.0, %v4020_v31  ;;  %v3533_v14 = vsel %vm1156_vm15, 1.0, %v4020_v31  ;;  %v1333_v20 = vpack.c.bf16 %v3532_v11, %v3530_v63  ;;  %v916_v29 = vadd.bf16 %v884_v39, %v466_v34 }
 0x191   :  { %v1538_v51 = vpop.permute.xlu0 %1537  ;;  %v1542_v54 = vpop.permute.xlu1 %1541  ;;  %v1334_v38 = vpack.c.bf16 %v3533_v14, %v3531_v49  ;;  %v5160_v39 = vrot.slane %v2317_v47, %v4119_v2  ;;  %v5168_v11 = vrot.slane %v2317_v47, %v4146_v21  ;;  %v5201_v47 = vld [vmem:[#allocation7 + $0x10] sm:$0xff] }
 0x192   :  { %vm1627_vm8 = vcmp.eq.s32.totalorder %v4220_v23, %v1538_v51  ;;  %vm1629_vm10 = vcmp.eq.s32.totalorder %v4220_v23, %v1542_v54  ;;  %vm1630_vm11 = vcmp.eq.s32.totalorder %v4225_v26, %v1542_v54  ;;  %vm1628_vm12 = vcmp.eq.s32.totalorder %v4225_v26, %v1538_v51 }
 0x193   :  { %v3620_v59 = vsel %vm1629_vm10, 1.0, %v4020_v31  ;;  %v3618_v61 = vsel %vm1627_vm8, 1.0, %v4020_v31  ;;  %v3621_v45 = vsel %vm1630_vm11, 1.0, %v4020_v31  ;;  %v3619_v6 = vsel %vm1628_vm12, 1.0, %v4020_v31 }
 0x194   :  { %v1795_v10 = vpack.c.bf16 %v3620_v59, %v3618_v61  ;;  %v1796_v60 = vpack.c.bf16 %v3621_v45, %v3619_v6  ;;  %v1365_v46 = vadd.bf16 %v1333_v20, %v915_v30  ;;  %v1366_v18 = vadd.bf16 %v1334_v38, %v916_v29 }
 0x195   :  { %v1466_v57 = vpop.permute.xlu0 %1465  ;;  %v1470_v3 = vpop.permute.xlu1 %1469 }
 0x196   :  { %vm1603_vm0 = vcmp.eq.s32.totalorder %v4220_v23, %v1466_v57  ;;  %vm1604_vm1 = vcmp.eq.s32.totalorder %v4225_v26, %v1466_v57  ;;  %vm1605_vm2 = vcmp.eq.s32.totalorder %v4220_v23, %v1470_v3  ;;  %vm1606_vm5 = vcmp.eq.s32.totalorder %v4225_v26, %v1470_v3 }
 0x197   :  { %v3594_v4 = vsel %vm1603_vm0, 1.0, %v4020_v31  ;;  %v3595_v24 = vsel %vm1604_vm1, 1.0, %v4020_v31  ;;  %v1827_v55 = vadd.bf16 %v1795_v10, %v1377_v13  ;;  %v3596_v5 = vsel %vm1605_vm2, 1.0, %v4020_v31 }
 0x198   :  { %v1828_v0 = vadd.bf16 %v1796_v60, %v1378_v7  ;;  %v3597_v32 = vsel %vm1606_vm5, 1.0, %v4020_v31  ;;  %v1783_v37 = vpack.c.bf16 %v3596_v5, %v3594_v4 }
 0x199   :  { %v1988_v1 = vpop.permute.xlu0 %1987  ;;  %v1992_v22 = vpop.permute.xlu1 %1991  ;;  %v1784_v12 = vpack.c.bf16 %v3597_v32, %v3595_v24 }
 0x19a   :  { %vm2077_vm3 = vcmp.eq.s32.totalorder %v4220_v23, %v1988_v1  ;;  %vm2078_vm4 = vcmp.eq.s32.totalorder %v4225_v26, %v1988_v1  ;;  %vm2079_vm6 = vcmp.eq.s32.totalorder %v4220_v23, %v1992_v22  ;;  %vm2080_vm7 = vcmp.eq.s32.totalorder %v4225_v26, %v1992_v22 }
 0x19b   :  { %v3682_v17 = vsel %vm2077_vm3, 1.0, %v4020_v31  ;;  %v3683_v15 = vsel %vm2078_vm4, 1.0, %v4020_v31  ;;  %v3684_v25 = vsel %vm2079_vm6, 1.0, %v4020_v31  ;;  %v3685_v27 = vsel %vm2080_vm7, 1.0, %v4020_v31 }
 0x19c   :  { %v2245_v16 = vpack.c.bf16 %v3684_v25, %v3682_v17  ;;  %v2246_v33 = vpack.c.bf16 %v3685_v27, %v3683_v15  ;;  %v1815_v19 = vadd.bf16 %v1783_v37, %v1365_v46  ;;  %v1816_v44 = vadd.bf16 %v1784_v12, %v1366_v18 }
 0x19d   :  { %v234_v28 = vpop.permute.xlu0 %233  ;;  %v238_v8 = vpop.permute.xlu1 %237 }
 0x19e   :  { %v2278_v40 = vadd.bf16 %v2246_v33, %v1828_v0  ;;  %v2277_v42 = vadd.bf16 %v2245_v16, %v1827_v55  ;;  %vm313_vm8 = vcmp.eq.s32.totalorder %v4220_v23, %v234_v28  ;;  %vm314_vm9 = vcmp.eq.s32.totalorder %v4225_v26, %v234_v28 }
 0x19f   :  { %vm315_vm12 = vcmp.eq.s32.totalorder %v4220_v23, %v238_v8  ;;  %v3430_v51 = vsel %vm313_vm8, 1.0, %v4020_v31  ;;  %vm316_vm3 = vcmp.eq.s32.totalorder %v4225_v26, %v238_v8  ;;  %v3431_v63 = vsel %vm314_vm9, 1.0, %v4020_v31 }
 0x1a0   :  { %2641 = vmatprep.mubr.bf16.mxu1 %v2278_v40  ;;  %v3432_v48 = vsel %vm315_vm12, 1.0, %v4020_v31  ;;  %v3433_v3 = vsel %vm316_vm3, 1.0, %v4020_v31 }
 0x1a1   :  { %v650_v62 = vpop.permute.xlu0 %649  ;;  %v654_v35 = vpop.permute.xlu1 %653  ;;  %2642 = vmatmul.mubr.bf16.gmra.mrb[12].mxu1 %v2277_v42  ;;  %v479_v49 = vpack.c.bf16 %v3432_v48, %v3430_v51  ;;  %v480_v10 = vpack.c.bf16 %v3433_v3, %v3431_v63  ;;  %v5192_v42 = vld [vmem:[#allocation7] sm:$0xff] }
 0x1a2   :  { %vm733_vm10 = vcmp.eq.s32.totalorder %v4220_v23, %v654_v35  ;;  %vm731_vm11 = vcmp.eq.s32.totalorder %v4220_v23, %v650_v62  ;;  %vm734_vm15 = vcmp.eq.s32.totalorder %v4225_v26, %v654_v35  ;;  %vm732_vm0 = vcmp.eq.s32.totalorder %v4225_v26, %v650_v62 }
 0x1a3   :  { %v3496_v9 = vsel %vm733_vm10, 1.0, %v4020_v31  ;;  %v3494_v43 = vsel %vm731_vm11, 1.0, %v4020_v31  ;;  %v3497_v57 = vsel %vm734_vm15, 1.0, %v4020_v31  ;;  %v3495_v58 = vsel %vm732_vm0, 1.0, %v4020_v31 }
 0x1a4   :  { %v897_v45 = vpack.c.bf16 %v3496_v9, %v3494_v43  ;;  %v898_v14 = vpack.c.bf16 %v3497_v57, %v3495_v58  ;;  %v5203_v9 = vld [vmem:[#allocation7 + $0x18] sm:$0xff] }
 0x1a5   :  { %v1916_v50 = vpop.permute.xlu0 %1915  ;;  %v1920_v52 = vpop.permute.xlu1 %1919 }
 0x1a6   :  { %vm2053_vm13 = vcmp.eq.s32.totalorder %v4220_v23, %v1916_v50  ;;  %vm2054_vm14 = vcmp.eq.s32.totalorder %v4225_v26, %v1916_v50  ;;  %vm2055_vm1 = vcmp.eq.s32.totalorder %v4220_v23, %v1920_v52  ;;  %vm2056_vm2 = vcmp.eq.s32.totalorder %v4225_v26, %v1920_v52 }
 0x1a7   :  { %v3658_v53 = vsel %vm2053_vm13, 1.0, %v4020_v31  ;;  %v3659_v41 = vsel %vm2054_vm14, 1.0, %v4020_v31  ;;  %v3660_v54 = vsel %vm2055_vm1, 1.0, %v4020_v31  ;;  %v3661_v36 = vsel %vm2056_vm2, 1.0, %v4020_v31 }
 0x1a8   :  { %v2233_v59 = vpack.c.bf16 %v3660_v54, %v3658_v53  ;;  %v2234_v61 = vpack.c.bf16 %v3661_v36, %v3659_v41  ;;  %v929_v1 = vadd.bf16 %v897_v45, %v479_v49  ;;  %v930_v25 = vadd.bf16 %v898_v14, %v480_v10  ;;  %v5199_v53 = vld [vmem:[#allocation7 + $0x8] sm:$0xff] }
 0x1a9   :  { %v168_v56 = vpop.permute.xlu0 %167  ;;  %v172_v6 = vpop.permute.xlu1 %171 }
 0x1aa   :  { %vm289_vm4 = vcmp.eq.s32.totalorder %v4220_v23, %v168_v56  ;;  %v2266_v13 = vadd.bf16 %v2234_v61, %v1816_v44  ;;  %v2265_v7 = vadd.bf16 %v2233_v59, %v1815_v19  ;;  %vm291_vm5 = vcmp.eq.s32.totalorder %v4220_v23, %v172_v6 }
 0x1ab   :  { %vm292_vm6 = vcmp.eq.s32.totalorder %v4225_v26, %v172_v6  ;;  %vm290_vm7 = vcmp.eq.s32.totalorder %v4225_v26, %v168_v56  ;;  %v3406_v60 = vsel %vm289_vm4, 1.0, %v4020_v31  ;;  %v3408_v22 = vsel %vm291_vm5, 1.0, %v4020_v31 }
 0x1ac   :  { %2581 = vmatprep.mubr.bf16.mxu0 %v2266_v13  ;;  %v3409_v15 = vsel %vm292_vm6, 1.0, %v4020_v31  ;;  %v3407_v4 = vsel %vm290_vm7, 1.0, %v4020_v31  ;;  %v467_v0 = vpack.c.bf16 %v3408_v22, %v3406_v60 }
 0x1ad   :  { %v578_v2 = vpop.permute.xlu0 %577  ;;  %v582_v21 = vpop.permute.xlu1 %581  ;;  %2582 = vmatmul.mubr.bf16.gmra.mrb[24].mxu0 %v2265_v7  ;;  %v468_v8 = vpack.c.bf16 %v3409_v15, %v3407_v4 }
 0x1ae   :  { %vm707_vm8 = vcmp.eq.s32.totalorder %v4220_v23, %v578_v2  ;;  %vm708_vm9 = vcmp.eq.s32.totalorder %v4225_v26, %v578_v2  ;;  %vm709_vm10 = vcmp.eq.s32.totalorder %v4220_v23, %v582_v21  ;;  %vm710_vm11 = vcmp.eq.s32.totalorder %v4225_v26, %v582_v21 }
 0x1af   :  { %v3470_v20 = vsel %vm707_vm8, 1.0, %v4020_v31  ;;  %v3471_v17 = vsel %vm708_vm9, 1.0, %v4020_v31  ;;  %v3472_v24 = vsel %vm709_vm10, 1.0, %v4020_v31  ;;  %v3473_v55 = vsel %vm710_vm11, 1.0, %v4020_v31 }
 0x1b0   :  { %v885_v27 = vpack.c.bf16 %v3472_v24, %v3470_v20  ;;  %v2523_v28 = vpop.f32.mrb[0].mxu0  ;;  %v886_v32 = vpack.c.bf16 %v3473_v55, %v3471_v17 }
 0x1b1   :  { %v1100_v5 = vpop.permute.xlu0 %1099  ;;  %v2524_v16 = vadd.f32 %v2523_v28, %v5160_v39  ;;  %v1104_v33 = vpop.permute.xlu1 %1103 }
 0x1b2   :  { %vm1181_vm12 = vcmp.eq.s32.totalorder %v4220_v23, %v1100_v5  ;;  %vm1182_vm13 = vcmp.eq.s32.totalorder %v4225_v26, %v1100_v5  ;;  %v2525_v34 = vpop.f32.mrb[1].mxu0  ;;  %vm1183_vm14 = vcmp.eq.s32.totalorder %v4220_v23, %v1104_v33  ;;  %vm1184_vm15 = vcmp.eq.s32.totalorder %v4225_v26, %v1104_v33 }
 0x1b3   :  { %v3558_v38 = vsel %vm1181_vm12, 1.0, %v4020_v31  ;;  %v3559_v30 = vsel %vm1182_vm13, 1.0, %v4020_v31  ;;  %v2527_v37 = vpop.f32.mrb[2].mxu0  ;;  %v2682_v40 = vmax.f32 %v2524_v16, 0.0  ;;  %v3560_v29 = vsel %vm1183_vm14, 1.0, %v4020_v31 }
 0x1b4   :  { %v3561_v12 = vsel %vm1184_vm15, 1.0, %v4020_v31  ;;  %v2526_v62 = vadd.f32 %v2525_v34, %v5168_v11  ;;  %v2529_v46 = vpop.f32.mrb[3].mxu0  ;;  %v917_v35 = vadd.bf16 %v885_v27, %v467_v0  ;;  %v1347_v19 = vpack.c.bf16 %v3560_v29, %v3558_v38 }
 0x1b5   :  { %v1028_v18 = vpop.permute.xlu0 %1027  ;;  %v2528_v44 = vadd.f32 %v2527_v37, %v5160_v39  ;;  %v2530_v50 = vadd.f32 %v2529_v46, %v5168_v11  ;;  %v918_v51 = vadd.bf16 %v886_v32, %v468_v8  ;;  %v1348_v41 = vpack.c.bf16 %v3561_v12, %v3559_v30  ;;  %v1032_v43 = vpop.permute.xlu1 %1031 }
 0x1b6   :  { %v2683_v52 = vmax.f32 %v2526_v62, 0.0  ;;  %vm1157_vm0 = vcmp.eq.s32.totalorder %v4220_v23, %v1028_v18  ;;  %v2750_v48 = vmul.f32 %v5192_v42, %v2682_v40  ;;  %vm1158_vm1 = vcmp.eq.s32.totalorder %v4225_v26, %v1028_v18 }
 0x1b7   :  { %v2684_v54 = vmax.f32 %v2528_v44, 0.0  ;;  %v2685_v36 = vmax.f32 %v2530_v50, 0.0  ;;  %v1379_v56 = vadd.bf16 %v1347_v19, %v929_v1  ;;  %vm1159_vm2 = vcmp.eq.s32.totalorder %v4220_v23, %v1032_v43 }
 0x1b8   :  { %vm1160_vm3 = vcmp.eq.s32.totalorder %v4225_v26, %v1032_v43  ;;  %v3534_v57 = vsel %vm1157_vm0, 1.0, %v4020_v31  ;;  %v2751_v59 = vmul.f32 %v5199_v53, %v2683_v52  ;;  %v3536_v45 = vsel %vm1159_vm2, 1.0, %v4020_v31 }
 0x1b9   :  { %v1550_v58 = vpop.permute.xlu0 %1549  ;;  %v2752_v61 = vmul.f32 %v5201_v47, %v2684_v54  ;;  %v2753_v63 = vmul.f32 %v5203_v9, %v2685_v36  ;;  %v3537_v6 = vsel %vm1160_vm3, 1.0, %v4020_v31  ;;  %v3535_v3 = vsel %vm1158_vm1, 1.0, %v4020_v31  ;;  %v1554_v7 = vpop.permute.xlu1 %1553 }
 0x1ba   :  { %v1335_v13 = vpack.c.bf16 %v3536_v45, %v3534_v57  ;;  %vm1631_vm4 = vcmp.eq.s32.totalorder %v4220_v23, %v1550_v58  ;;  %vm1633_vm5 = vcmp.eq.s32.totalorder %v4220_v23, %v1554_v7  ;;  %vm1632_vm6 = vcmp.eq.s32.totalorder %v4225_v26, %v1550_v58 }
 0x1bb   :  { %v2814_v49 = vmax.f32 %v2750_v48, %v2752_v61  ;;  %v2821_v14 = vmax.f32 %v2751_v59, %v2753_v63  ;;  %v1380_v2 = vadd.bf16 %v1348_v41, %v930_v25  ;;  %vm1634_vm7 = vcmp.eq.s32.totalorder %v4225_v26, %v1554_v7 }
 0x1bc   :  { %v3624_v10 = vsel %vm1633_vm5, 1.0, %v4020_v31  ;;  %v3622_v1 = vsel %vm1631_vm4, 1.0, %v4020_v31  ;;  %v1336_v22 = vpack.c.bf16 %v3537_v6, %v3535_v3  ;;  %v3625_v17 = vsel %vm1634_vm7, 1.0, %v4020_v31 }
 0x1bd   :  { %v1478_v60 = vpop.permute.xlu0 %1477  ;;  %v2815_v21 = vrot.slane %v2814_v49, 4  ;;  %v2822_v20 = vrot.slane %v2821_v14, 4  ;;  %v1367_v15 = vadd.bf16 %v1335_v13, %v917_v35  ;;  %v3623_v4 = vsel %vm1632_vm6, 1.0, %v4020_v31  ;;  %v1482_v55 = vpop.permute.xlu1 %1481 }
 0x1be   :  { %v1797_v24 = vpack.c.bf16 %v3624_v10, %v3622_v1  ;;  %vm1607_vm8 = vcmp.eq.s32.totalorder %v4220_v23, %v1478_v60  ;;  %vm1609_vm9 = vcmp.eq.s32.totalorder %v4220_v23, %v1482_v55  ;;  %vm1608_vm10 = vcmp.eq.s32.totalorder %v4225_v26, %v1478_v60 }
 0x1bf   :  { %v2816_v5 = vmax.f32 %v2814_v49, %v2815_v21  ;;  %v2823_v25 = vmax.f32 %v2821_v14, %v2822_v20  ;;  %v1798_v27 = vpack.c.bf16 %v3625_v17, %v3623_v4  ;;  %vm1610_vm11 = vcmp.eq.s32.totalorder %v4225_v26, %v1482_v55 }
 0x1c0   :  { %v3600_v28 = vsel %vm1609_vm9, 1.0, %v4020_v31  ;;  %v3598_v0 = vsel %vm1607_vm8, 1.0, %v4020_v31  ;;  %v1368_v34 = vadd.bf16 %v1336_v22, %v918_v51  ;;  %v3601_v38 = vsel %vm1610_vm11, 1.0, %v4020_v31 }
 0x1c1   :  { %v2000_v32 = vpop.permute.xlu0 %1999  ;;  %v2817_v16 = vrot.slane %v2816_v5, 2  ;;  %v2824_v33 = vrot.slane %v2823_v25, 2  ;;  %v3599_v8 = vsel %vm1608_vm10, 1.0, %v4020_v31  ;;  %v1785_v30 = vpack.c.bf16 %v3600_v28, %v3598_v0  ;;  %v2004_v37 = vpop.permute.xlu1 %2003 }
 0x1c2   :  { %vm2081_vm12 = vcmp.eq.s32.totalorder %v4220_v23, %v2000_v32  ;;  %vm2082_vm13 = vcmp.eq.s32.totalorder %v4225_v26, %v2000_v32  ;;  %v1786_v12 = vpack.c.bf16 %v3601_v38, %v3599_v8  ;;  %vm2083_vm14 = vcmp.eq.s32.totalorder %v4220_v23, %v2004_v37 }
 0x1c3   :  { %v2818_v40 = vmax.f32 %v2816_v5, %v2817_v16  ;;  %v2825_v29 = vmax.f32 %v2823_v25, %v2824_v33  ;;  %v1829_v62 = vadd.bf16 %v1797_v24, %v1379_v56  ;;  %v1830_v46 = vadd.bf16 %v1798_v27, %v1380_v2 }
 0x1c4   :  { %v5236_v18 = vadd.bf16 %v1785_v30, %v1367_v15  ;;  %vm2084_vm15 = vcmp.eq.s32.totalorder %v4225_v26, %v2004_v37  ;;  %v3688_v50 = vsel %vm2083_vm14, 1.0, %v4020_v31  ;;  %v2533_v52 = vpop.f32.mrb[4].mxu0  ;;  %v5241_v41 = vadd.bf16 %v1786_v12, %v1368_v34 }
 0x1c5   :  { %v245_v35 = vpop.permute.xlu0 %244  ;;  %v2819_v19 = vrot.slane %v2818_v40, 1  ;;  %v2826_v44 = vrot.slane %v2825_v29, 1  ;;  %v3689_v51 = vsel %vm2084_vm15, 1.0, %v4020_v31  ;;  %v3686_v43 = vsel %vm2081_vm12, 1.0, %v4020_v31  ;;  %v249_v36 = vpop.permute.xlu1 %248 }
 0x1c6   :  { %v3687_v48 = vsel %vm2082_vm13, 1.0, %v4020_v31  ;;  %v2534_v54 = vadd.f32 %v2533_v52, %v5160_v39  ;;  %v2535_v56 = vpop.f32.mrb[5].mxu0  ;;  %vm319_vm0 = vcmp.eq.s32.totalorder %v4220_v23, %v249_v36  ;;  %vm317_vm1 = vcmp.eq.s32.totalorder %v4220_v23, %v245_v35 }
 0x1c7   :  { %v2820_v57 = vmax.f32 %v2818_v40, %v2819_v19  ;;  %v2827_v58 = vmax.f32 %v2825_v29, %v2826_v44  ;;  %v2537_v59 = vpop.f32.mrb[6].mxu0  ;;  %v2248_v61 = vpack.c.bf16 %v3689_v51, %v3687_v48  ;;  %vm320_vm2 = vcmp.eq.s32.totalorder %v4225_v26, %v249_v36 }
 0x1c8   :  { %v2686_v63 = vmax.f32 %v2534_v54, 0.0  ;;  %v2536_v45 = vadd.f32 %v2535_v56, %v5168_v11  ;;  %v2539_v6 = vpop.f32.mrb[7].mxu0  ;;  %v2247_v49 = vpack.c.bf16 %v3688_v50, %v3686_v43  ;;  %vm318_vm3 = vcmp.eq.s32.totalorder %v4225_v26, %v245_v35 }
 0x1c9   :  { %v662_v3 = vpop.permute.xlu0 %661  ;;  %v3038_v13 = vpack.c.bf16 %v2820_v57, %v2820_v57  ;;  %v3039_v7 = vpack.c.bf16 %v2827_v58, %v2827_v58  ;;  %v3436_v2 = vsel %vm319_vm0, 1.0, %v4020_v31  ;;  %v3437_v10 = vsel %vm320_vm2, 1.0, %v4020_v31  ;;  %v666_v60 = vpop.permute.xlu1 %665 }
 0x1ca   :  { %v2754_v14 = vmul.f32 %v5192_v42, %v2686_v63  ;;  %v2687_v1 = vmax.f32 %v2536_v45, 0.0  ;;  %v3434_v22 = vsel %vm317_vm1, 1.0, %v4020_v31  ;;  %v3435_v17 = vsel %vm318_vm3, 1.0, %v4020_v31 }
 0x1cb   :  { %v5258_v21 = vunpack.c.l.b16 %v3038_v13  ;;  %v5260_v20 = vunpack.c.l.b16 %v3039_v7  ;;  %v2538_v4 = vadd.f32 %v2537_v59, %v5160_v39  ;;  %v2540_v24 = vadd.f32 %v2539_v6, %v5168_v11 }
 0x1cc   :  { %v2755_v15 = vmul.f32 %v5199_v53, %v2687_v1  ;;  %v2280_v55 = vadd.bf16 %v2248_v61, %v1830_v46  ;;  %vm737_vm4 = vcmp.eq.s32.totalorder %v4220_v23, %v666_v60  ;;  %vm738_vm5 = vcmp.eq.s32.totalorder %v4225_v26, %v666_v60 }
 0x1cd   :  { %v1928_v5 = vpop.permute.xlu0 %1927  ;;  %v2279_v25 = vadd.bf16 %v2247_v49, %v1829_v62  ;;  %vm735_vm6 = vcmp.eq.s32.totalorder %v4220_v23, %v662_v3  ;;  %v2688_v27 = vmax.f32 %v2538_v4, 0.0  ;;  %v2689_v28 = vmax.f32 %v2540_v24, 0.0  ;;  %v1932_v16 = vpop.permute.xlu1 %1931 }
 0x1ce   :  { %2651 = vmatprep.mubr.bf16.mxu1 %v2280_v55  ;;  %v3500_v0 = vsel %vm737_vm4, 1.0, %v4020_v31  ;;  %v3501_v32 = vsel %vm738_vm5, 1.0, %v4020_v31  ;;  %vm736_vm7 = vcmp.eq.s32.totalorder %v4225_v26, %v662_v3  ;;  %v3498_v33 = vsel %vm735_vm6, 1.0, %v4020_v31 }
 0x1cf   :  { %2652 = vmatmul.mubr.bf16.gmra.mrb[16].mxu1 %v2279_v25  ;;  %vm2059_vm8 = vcmp.eq.s32.totalorder %v4220_v23, %v1932_v16  ;;  %vm2060_vm9 = vcmp.eq.s32.totalorder %v4225_v26, %v1932_v16  ;;  %v2756_v34 = vmul.f32 %v5201_v47, %v2688_v27  ;;  %v2757_v38 = vmul.f32 %v5203_v9, %v2689_v28 }
 0x1d0   :  { %v3499_v8 = vsel %vm736_vm7, 1.0, %v4020_v31  ;;  %v899_v30 = vpack.c.bf16 %v3500_v0, %v3498_v33  ;;  %v481_v40 = vpack.c.bf16 %v3436_v2, %v3434_v22  ;;  %v3665_v12 = vsel %vm2060_vm9, 1.0, %v4020_v31 }
 0x1d1   :  { %v179_v37 = vpop.permute.xlu0 %178  ;;  %v900_v29 = vpack.c.bf16 %v3501_v32, %v3499_v8  ;;  %vm2057_vm10 = vcmp.eq.s32.totalorder %v4220_v23, %v1928_v5  ;;  %v2828_v62 = vmax.f32 %v2754_v14, %v2756_v34  ;;  %v2835_v46 = vmax.f32 %v2755_v15, %v2757_v38  ;;  %v183_v19 = vpop.permute.xlu1 %182 }
 0x1d2   :  { %v3664_v35 = vsel %vm2059_vm8, 1.0, %v4020_v31  ;;  %vm2058_vm11 = vcmp.eq.s32.totalorder %v4225_v26, %v1928_v5  ;;  %v482_v44 = vpack.c.bf16 %v3437_v10, %v3435_v17  ;;  %v3662_v50 = vsel %vm2057_vm10, 1.0, %v4020_v31 }
 0x1d3   :  { %v3663_v51 = vsel %vm2058_vm11, 1.0, %v4020_v31  ;;  %vm295_vm12 = vcmp.eq.s32.totalorder %v4220_v23, %v183_v19  ;;  %v2829_v52 = vrot.slane %v2828_v62, 4  ;;  %v2836_v43 = vrot.slane %v2835_v46, 4 }
 0x1d4   :  { %v5288_v48 = vadd.bf16 %v899_v30, %v481_v40  ;;  %v2236_v54 = vpack.c.bf16 %v3665_v12, %v3663_v51  ;;  %v2235_v56 = vpack.c.bf16 %v3664_v35, %v3662_v50  ;;  %vm296_vm13 = vcmp.eq.s32.totalorder %v4225_v26, %v183_v19 }
 0x1d5   :  { %v590_v36 = vpop.permute.xlu0 %589  ;;  %vm293_vm14 = vcmp.eq.s32.totalorder %v4220_v23, %v179_v37  ;;  %vm294_vm15 = vcmp.eq.s32.totalorder %v4225_v26, %v179_v37  ;;  %v2830_v57 = vmax.f32 %v2828_v62, %v2829_v52  ;;  %v2837_v58 = vmax.f32 %v2835_v46, %v2836_v43  ;;  %v594_v63 = vpop.permute.xlu1 %593 }
 0x1d6   :  { %v5293_v59 = vadd.bf16 %v900_v29, %v482_v44  ;;  %v3412_v61 = vsel %vm295_vm12, 1.0, %v4020_v31  ;;  %v3413_v45 = vsel %vm296_vm13, 1.0, %v4020_v31  ;;  %v3410_v6 = vsel %vm293_vm14, 1.0, %v4020_v31 }
 0x1d7   :  { %v2268_v3 = vadd.bf16 %v2236_v54, %v5241_v41  ;;  %vm713_vm0 = vcmp.eq.s32.totalorder %v4220_v23, %v594_v63  ;;  %v2831_v13 = vrot.slane %v2830_v57, 2  ;;  %v2838_v7 = vrot.slane %v2837_v58, 2 }
 0x1d8   :  { %v3411_v49 = vsel %vm294_vm15, 1.0, %v4020_v31  ;;  %vm714_vm1 = vcmp.eq.s32.totalorder %v4225_v26, %v594_v63  ;;  %vm3173_vm2 = vcmask 1041409   ;;  %v3476_v2 = vsel %vm713_vm0, 1.0, %v4020_v31 }
 0x1d9   :  { %v1112_v14 = vpop.permute.xlu0 %1111  ;;  %2591 = vmatprep.mubr.bf16.mxu0 %v2268_v3  ;;  %v3477_v10 = vsel %vm714_vm1, 1.0, %v4020_v31  ;;  %v2267_v1 = vadd.bf16 %v2235_v56, %v5236_v18  ;;  %vm711_vm3 = vcmp.eq.s32.totalorder %v4220_v23, %v590_v36  ;;  %v2832_v41 = vmax.f32 %v2830_v57, %v2831_v13  ;;  %v1116_v17 = vpop.permute.xlu1 %1115 }
 0x1da   :  { %v2839_v60 = vmax.f32 %v2837_v58, %v2838_v7  ;;  %vm712_vm4 = vcmp.eq.s32.totalorder %v4225_v26, %v590_v36  ;;  %v3474_v22 = vsel %vm711_vm3, 1.0, %v4020_v31  ;;  %vm1187_vm5 = vcmp.eq.s32.totalorder %v4220_v23, %v1116_v17 }
 0x1db   :  { %2592 = vmatmul.mubr.bf16.gmra.mrb[28].mxu0 %v2267_v1  ;;  %v3475_v15 = vsel %vm712_vm4, 1.0, %v4020_v31  ;;  %v887_v4 = vpack.c.bf16 %v3476_v2, %v3474_v22  ;;  %vm1188_vm6 = vcmp.eq.s32.totalorder %v4225_v26, %v1116_v17  ;;  %v2833_v24 = vrot.slane %v2832_v41, 1 }
 0x1dc   :  { %v2840_v55 = vrot.slane %v2839_v60, 1  ;;  %v469_v18 = vpack.c.bf16 %v3412_v61, %v3410_v6  ;;  %v470_v5 = vpack.c.bf16 %v3413_v45, %v3411_v49  ;;  %v888_v27 = vpack.c.bf16 %v3477_v10, %v3475_v15 }
 0x1dd   :  { %v1040_v25 = vpop.permute.xlu0 %1039  ;;  %v3564_v28 = vsel %vm1187_vm5, 1.0, %v4020_v31  ;;  %vm1185_vm7 = vcmp.eq.s32.totalorder %v4220_v23, %v1112_v14  ;;  %vm1186_vm8 = vcmp.eq.s32.totalorder %v4225_v26, %v1112_v14  ;;  %v2834_v0 = vmax.f32 %v2832_v41, %v2833_v24  ;;  %v1044_v34 = vpop.permute.xlu1 %1043 }
 0x1de   :  { %v2841_v32 = vmax.f32 %v2839_v60, %v2840_v55  ;;  %v3565_v16 = vsel %vm1188_vm6, 1.0, %v4020_v31  ;;  %v3562_v33 = vsel %vm1185_vm7, 1.0, %v4020_v31  ;;  %v919_v38 = vadd.bf16 %v887_v4, %v469_v18 }
 0x1df   :  { %v3563_v8 = vsel %vm1186_vm8, 1.0, %v4020_v31  ;;  %vm1163_vm9 = vcmp.eq.s32.totalorder %v4220_v23, %v1044_v34  ;;  %vm1164_vm10 = vcmp.eq.s32.totalorder %v4225_v26, %v1044_v34  ;;  %v3040_v30 = vpack.c.bf16 %v2834_v0, %v2834_v0 }
 0x1e0   :  { %v3041_v37 = vpack.c.bf16 %v2841_v32, %v2841_v32  ;;  %v1349_v40 = vpack.c.bf16 %v3564_v28, %v3562_v33  ;;  %v3540_v29 = vsel %vm1163_vm9, 1.0, %v4020_v31  ;;  %v1350_v62 = vpack.c.bf16 %v3565_v16, %v3563_v8  ;;  %v2543_v35 = vpop.f32.mrb[8].mxu0 }
 0x1e1   :  { %v1562_v12 = vpop.permute.xlu0 %1561  ;;  %v3541_v46 = vsel %vm1164_vm10, 1.0, %v4020_v31  ;;  %vm1161_vm11 = vcmp.eq.s32.totalorder %v4220_v23, %v1040_v25  ;;  %vm1162_vm12 = vcmp.eq.s32.totalorder %v4225_v26, %v1040_v25  ;;  %v3143_v19 = vunpack.c.l.b16 %v3040_v30  ;;  %v1566_v52 = vpop.permute.xlu1 %1565 }
 0x1e2   :  { %v3144_v44 = vunpack.c.l.b16 %v3041_v37  ;;  %v920_v50 = vadd.bf16 %v888_v27, %v470_v5  ;;  %v3538_v51 = vsel %vm1161_vm11, 1.0, %v4020_v31  ;;  %v2545_v43 = vpop.f32.mrb[9].mxu0  ;;  %v3539_v54 = vsel %vm1162_vm12, 1.0, %v4020_v31 }
 0x1e3   :  { %v1337_v36 = vpack.c.bf16 %v3540_v29, %v3538_v51  ;;  %v2544_v56 = vadd.f32 %v2543_v35, %v5160_v39  ;;  %vm1637_vm13 = vcmp.eq.s32.totalorder %v4220_v23, %v1566_v52  ;;  %v2547_v57 = vpop.f32.mrb[10].mxu0  ;;  %v5329_v58 = vsel %vm3173_vm2, %v3143_v19, %v5258_v21 }
 0x1e4   :  { %v5333_v61 = vsel %vm3173_vm2, %v3144_v44, %v5260_v20  ;;  %v1338_v63 = vpack.c.bf16 %v3541_v46, %v3539_v54  ;;  %vm1638_vm14 = vcmp.eq.s32.totalorder %v4225_v26, %v1566_v52  ;;  %v2549_v45 = vpop.f32.mrb[11].mxu0  ;;  %v1381_v3 = vadd.bf16 %v1349_v40, %v5288_v48 }
 0x1e5   :  { %v1490_v6 = vpop.permute.xlu0 %1489  ;;  %v1382_v13 = vadd.bf16 %v1350_v62, %v5293_v59  ;;  %v1369_v7 = vadd.bf16 %v1337_v36, %v919_v38  ;;  %v3628_v49 = vsel %vm1637_vm13, 1.0, %v4020_v31  ;;  %v2690_v14 = vmax.f32 %v2544_v56, 0.0  ;;  %v1494_v20 = vpop.permute.xlu1 %1493 }
 0x1e6   :  { %v2546_v21 = vadd.f32 %v2545_v43, %v5168_v11  ;;  %vm1635_vm15 = vcmp.eq.s32.totalorder %v4220_v23, %v1562_v12  ;;  %vm1636_vm0 = vcmp.eq.s32.totalorder %v4225_v26, %v1562_v12  ;;  %v3629_v2 = vsel %vm1638_vm14, 1.0, %v4020_v31 }
 0x1e7   :  { %v3626_v10 = vsel %vm1635_vm15, 1.0, %v4020_v31  ;;  %v3627_v1 = vsel %vm1636_vm0, 1.0, %v4020_v31  ;;  %v2548_v48 = vadd.f32 %v2547_v57, %v5160_v39  ;;  %v1370_v59 = vadd.bf16 %v1338_v63, %v920_v50 }
 0x1e8   :  { %v2691_v41 = vmax.f32 %v2546_v21, 0.0  ;;  %v1799_v60 = vpack.c.bf16 %v3628_v49, %v3626_v10  ;;  %v2550_v22 = vadd.f32 %v2549_v45, %v5168_v11  ;;  %vm1613_vm1 = vcmp.eq.s32.totalorder %v4220_v23, %v1494_v20 }
 0x1e9   :  { %v2012_v17 = vpop.permute.xlu0 %2011  ;;  %v2692_v15 = vmax.f32 %v2548_v48, 0.0  ;;  %vm1614_vm3 = vcmp.eq.s32.totalorder %v4225_v26, %v1494_v20  ;;  %vm1611_vm4 = vcmp.eq.s32.totalorder %v4220_v23, %v1490_v6  ;;  %v2758_v4 = vmul.f32 %v5192_v42, %v2690_v14  ;;  %v2016_v5 = vpop.permute.xlu1 %2015 }
 0x1ea   :  { %v2759_v24 = vmul.f32 %v5199_v53, %v2691_v41  ;;  %v1800_v55 = vpack.c.bf16 %v3629_v2, %v3627_v1  ;;  %v2693_v18 = vmax.f32 %v2550_v22, 0.0  ;;  %v3604_v27 = vsel %vm1613_vm1, 1.0, %v4020_v31 }
 0x1eb   :  { %v2760_v25 = vmul.f32 %v5201_v47, %v2692_v15  ;;  %v3605_v28 = vsel %vm1614_vm3, 1.0, %v4020_v31  ;;  %vm1612_vm5 = vcmp.eq.s32.totalorder %v4225_v26, %v1490_v6  ;;  %v3602_v32 = vsel %vm1611_vm4, 1.0, %v4020_v31 }
 0x1ec   :  { %v2761_v0 = vmul.f32 %v5203_v9, %v2693_v18  ;;  %v3603_v16 = vsel %vm1612_vm5, 1.0, %v4020_v31  ;;  %vm2087_vm6 = vcmp.eq.s32.totalorder %v4220_v23, %v2016_v5  ;;  %v1831_v34 = vadd.bf16 %v1799_v60, %v1381_v3 }
 0x1ed   :  { %v256_v33 = vpop.permute.xlu0 %255  ;;  %v2842_v38 = vmax.f32 %v2758_v4, %v2760_v25  ;;  %v1787_v8 = vpack.c.bf16 %v3604_v27, %v3602_v32  ;;  %vm2088_vm7 = vcmp.eq.s32.totalorder %v4225_v26, %v2016_v5  ;;  %v1832_v30 = vadd.bf16 %v1800_v55, %v1382_v13  ;;  %v260_v29 = vpop.permute.xlu1 %259 }
 0x1ee   :  { %v2849_v37 = vmax.f32 %v2759_v24, %v2761_v0  ;;  %v3693_v40 = vsel %vm2088_vm7, 1.0, %v4020_v31  ;;  %vm2085_vm8 = vcmp.eq.s32.totalorder %v4220_v23, %v2012_v17  ;;  %v1788_v62 = vpack.c.bf16 %v3605_v28, %v3603_v16 }
 0x1ef   :  { %v2843_v12 = vrot.slane %v2842_v38, 4  ;;  %v3692_v46 = vsel %vm2087_vm6, 1.0, %v4020_v31  ;;  %vm2086_vm9 = vcmp.eq.s32.totalorder %v4225_v26, %v2012_v17  ;;  %v3690_v19 = vsel %vm2085_vm8, 1.0, %v4020_v31 }
 0x1f0   :  { %v2850_v35 = vrot.slane %v2849_v37, 4  ;;  %v3691_v44 = vsel %vm2086_vm9, 1.0, %v4020_v31  ;;  %vm323_vm10 = vcmp.eq.s32.totalorder %v4220_v23, %v260_v29  ;;  %v5368_v52 = vadd.bf16 %v1787_v8, %v1369_v7 }
 0x1f1   :  { %v674_v50 = vpop.permute.xlu0 %673  ;;  %v2844_v51 = vmax.f32 %v2842_v38, %v2843_v12  ;;  %v2250_v43 = vpack.c.bf16 %v3693_v40, %v3691_v44  ;;  %vm324_vm11 = vcmp.eq.s32.totalorder %v4225_v26, %v260_v29  ;;  %v2249_v36 = vpack.c.bf16 %v3692_v46, %v3690_v19  ;;  %v678_v57 = vpop.permute.xlu1 %677 }
 0x1f2   :  { %v2851_v54 = vmax.f32 %v2849_v37, %v2850_v35  ;;  %v3440_v56 = vsel %vm323_vm10, 1.0, %v4020_v31  ;;  %vm321_vm12 = vcmp.eq.s32.totalorder %v4220_v23, %v256_v33  ;;  %vm322_vm13 = vcmp.eq.s32.totalorder %v4225_v26, %v256_v33 }
 0x1f3   :  { %v2845_v63 = vrot.slane %v2844_v51, 2  ;;  %v3438_v45 = vsel %vm321_vm12, 1.0, %v4020_v31  ;;  %v2282_v6 = vadd.bf16 %v2250_v43, %v1832_v30  ;;  %vm3175_vm14 = vcmask 1042434  }
 0x1f4   :  { %v2852_v3 = vrot.slane %v2851_v54, 2  ;;  %v1820_v13 = vadd.bf16 %v1788_v62, %v1370_v59  ;;  %v3441_v7 = vsel %vm324_vm11, 1.0, %v4020_v31  ;;  %vm741_vm15 = vcmp.eq.s32.totalorder %v4220_v23, %v678_v57 }
 0x1f5   :  { %v1940_v49 = vpop.permute.xlu0 %1939  ;;  %v2846_v14 = vmax.f32 %v2844_v51, %v2845_v63  ;;  %v3439_v21 = vsel %vm322_vm13, 1.0, %v4020_v31  ;;  %v483_v20 = vpack.c.bf16 %v3440_v56, %v3438_v45  ;;  %2661 = vmatprep.mubr.bf16.mxu1 %v2282_v6  ;;  %vm742_vm0 = vcmp.eq.s32.totalorder %v4225_v26, %v678_v57  ;;  %v1944_v48 = vpop.permute.xlu1 %1943 }
 0x1f6   :  { %v2853_v2 = vmax.f32 %v2851_v54, %v2852_v3  ;;  %v3504_v10 = vsel %vm741_vm15, 1.0, %v4020_v31  ;;  %v2281_v1 = vadd.bf16 %v2249_v36, %v1831_v34  ;;  %vm739_vm1 = vcmp.eq.s32.totalorder %v4220_v23, %v674_v50 }
 0x1f7   :  { %v2847_v59 = vrot.slane %v2846_v14, 1  ;;  %vm740_vm3 = vcmp.eq.s32.totalorder %v4225_v26, %v674_v50  ;;  %v3502_v41 = vsel %vm739_vm1, 1.0, %v4020_v31  ;;  %vm2063_vm4 = vcmp.eq.s32.totalorder %v4220_v23, %v1944_v48 }
 0x1f8   :  { %v2854_v60 = vrot.slane %v2853_v2, 1  ;;  %v3505_v22 = vsel %vm742_vm0, 1.0, %v4020_v31  ;;  %2662 = vmatmul.mubr.bf16.gmra.mrb[20].mxu1 %v2281_v1  ;;  %v3503_v17 = vsel %vm740_vm3, 1.0, %v4020_v31  ;;  %vm2064_vm5 = vcmp.eq.s32.totalorder %v4225_v26, %v1944_v48 }
 0x1f9   :  { %v2848_v15 = vmax.f32 %v2846_v14, %v2847_v59  ;;  %v484_v4 = vpack.c.bf16 %v3441_v7, %v3439_v21  ;;  %v3668_v24 = vsel %vm2063_vm4, 1.0, %v4020_v31  ;;  %v3669_v55 = vsel %vm2064_vm5, 1.0, %v4020_v31  ;;  %v1124_v18 = vpop.permute.xlu0 %1123  ;;  %v1128_v27 = vpop.permute.xlu1 %1127 }
 0x1fa   :  { %v2855_v5 = vmax.f32 %v2853_v2, %v2854_v60  ;;  %v901_v25 = vpack.c.bf16 %v3504_v10, %v3502_v41  ;;  %vm2061_vm6 = vcmp.eq.s32.totalorder %v4220_v23, %v1940_v49  ;;  %vm2062_vm7 = vcmp.eq.s32.totalorder %v4225_v26, %v1940_v49 }
 0x1fb   :  { %v3042_v28 = vpack.c.bf16 %v2848_v15, %v2848_v15  ;;  %v902_v0 = vpack.c.bf16 %v3505_v22, %v3503_v17  ;;  %v3666_v32 = vsel %vm2061_vm6, 1.0, %v4020_v31  ;;  %v3667_v16 = vsel %vm2062_vm7, 1.0, %v4020_v31 }
 0x1fc   :  { %v3043_v33 = vpack.c.bf16 %v2855_v5, %v2855_v5  ;;  %v2237_v34 = vpack.c.bf16 %v3668_v24, %v3666_v32  ;;  %v2238_v38 = vpack.c.bf16 %v3669_v55, %v3667_v16  ;;  %vm1191_vm8 = vcmp.eq.s32.totalorder %v4220_v23, %v1128_v27  ;;  %v2613_v37 = vpop.f32.mrb[0].mxu1 }
 0x1fd   :  { %v3145_v8 = vunpack.c.l.b16 %v3042_v28  ;;  %vm1192_vm9 = vcmp.eq.s32.totalorder %v4225_v26, %v1128_v27  ;;  %v3568_v30 = vsel %vm1191_vm8, 1.0, %v4020_v31  ;;  %vm1189_vm10 = vcmp.eq.s32.totalorder %v4220_v23, %v1124_v18  ;;  %v1578_v62 = vpop.permute.xlu1 %1577  ;;  %v2615_v46 = vpop.f32.mrb[1].mxu1 }
 0x1fe   :  { %v933_v40 = vadd.bf16 %v901_v25, %v483_v20  ;;  %v3569_v29 = vsel %vm1192_vm9, 1.0, %v4020_v31  ;;  %vm1190_vm11 = vcmp.eq.s32.totalorder %v4225_v26, %v1124_v18  ;;  %v3566_v12 = vsel %vm1189_vm10, 1.0, %v4020_v31  ;;  %v1574_v51 = vpop.permute.xlu0 %1573  ;;  %v2617_v43 = vpop.f32.mrb[2].mxu1 }
 0x1ff   :  { %v5402_v35 = vsel %vm3175_vm14, %v3145_v8, %v5329_v58  ;;  %v934_v19 = vadd.bf16 %v902_v0, %v484_v4  ;;  %v3567_v44 = vsel %vm1190_vm11, 1.0, %v4020_v31  ;;  %v2270_v50 = vadd.bf16 %v2238_v38, %v1820_v13  ;;  %v2619_v56 = vpop.f32.mrb[3].mxu1 }
 0x200   :  { %v1351_v54 = vpack.c.bf16 %v3568_v30, %v3566_v12  ;;  %v2614_v36 = vadd.f32 %v2613_v37, %v5160_v39  ;;  %vm1641_vm12 = vcmp.eq.s32.totalorder %v4220_v23, %v1578_v62  ;;  %vm1642_vm13 = vcmp.eq.s32.totalorder %v4225_v26, %v1578_v62 }
 0x201   :  { %v3146_v57 = vunpack.c.l.b16 %v3043_v33  ;;  %v1352_v63 = vpack.c.bf16 %v3569_v29, %v3567_v44  ;;  %2601 = vmatprep.mubr.bf16.mxu0 %v2270_v50  ;;  %v3632_v58 = vsel %vm1641_vm12, 1.0, %v4020_v31  ;;  %v2269_v45 = vadd.bf16 %v2237_v34, %v5368_v52  ;;  %v2028_v7 = vpop.permute.xlu1 %2027 }
 0x202   :  { %v2718_v6 = vmax.f32 %v2614_v36, 0.0  ;;  %v3633_v3 = vsel %vm1642_vm13, 1.0, %v4020_v31  ;;  %v2616_v13 = vadd.f32 %v2615_v46, %v5168_v11  ;;  %vm1639_vm15 = vcmp.eq.s32.totalorder %v4220_v23, %v1574_v51  ;;  %v2024_v41 = vpop.permute.xlu0 %2023 }
 0x203   :  { %2602 = vmatmul.mubr.bf16.gmra.mrb[32].mxu0 %v2269_v45  ;;  %vm1640_vm0 = vcmp.eq.s32.totalorder %v4225_v26, %v1574_v51  ;;  %v3630_v49 = vsel %vm1639_vm15, 1.0, %v4020_v31  ;;  %v2618_v14 = vadd.f32 %v2617_v43, %v5160_v39  ;;  %v2620_v21 = vadd.f32 %v2619_v56, %v5168_v11 }
 0x204   :  { %v1383_v20 = vadd.bf16 %v1351_v54, %v933_v40  ;;  %v2719_v2 = vmax.f32 %v2616_v13, 0.0  ;;  %v3631_v52 = vsel %vm1640_vm0, 1.0, %v4020_v31  ;;  %v1801_v10 = vpack.c.bf16 %v3632_v58, %v3630_v49 }
 0x205   :  { %v1802_v1 = vpack.c.bf16 %v3633_v3, %v3631_v52  ;;  %v2720_v48 = vmax.f32 %v2618_v14, 0.0  ;;  %v2721_v59 = vmax.f32 %v2620_v21, 0.0  ;;  %vm2091_vm1 = vcmp.eq.s32.totalorder %v4220_v23, %v2028_v7 }
 0x206   :  { %v1384_v60 = vadd.bf16 %v1352_v63, %v934_v19  ;;  %v2786_v22 = vmul.f32 %v5192_v42, %v2718_v6  ;;  %v2787_v17 = vmul.f32 %v5199_v53, %v2719_v2  ;;  %vm2092_vm3 = vcmp.eq.s32.totalorder %v4225_v26, %v2028_v7 }
 0x207   :  { %v2788_v15 = vmul.f32 %v5201_v47, %v2720_v48  ;;  %v2789_v4 = vmul.f32 %v5203_v9, %v2721_v59  ;;  %v3696_v24 = vsel %vm2091_vm1, 1.0, %v4020_v31  ;;  %v3697_v55 = vsel %vm2092_vm3, 1.0, %v4020_v31 }
 0x208   :  { %v1833_v18 = vadd.bf16 %v1801_v10, %v1383_v20  ;;  %v1834_v5 = vadd.bf16 %v1802_v1, %v1384_v60  ;;  %vm2089_vm4 = vcmp.eq.s32.totalorder %v4220_v23, %v2024_v41  ;;  %vm2090_vm5 = vcmp.eq.s32.totalorder %v4225_v26, %v2024_v41  ;;  %v2553_v32 = vpop.f32.mrb[12].mxu0 }
 0x209   :  { %v5428_v25 = vmax.f32 %v2786_v22, %v2788_v15  ;;  %v5430_v27 = vmax.f32 %v2787_v17, %v2789_v4  ;;  %v3694_v28 = vsel %vm2089_vm4, 1.0, %v4020_v31  ;;  %v3695_v0 = vsel %vm2090_vm5, 1.0, %v4020_v31  ;;  %v2555_v38 = vpop.f32.mrb[13].mxu0 }
 0x20a   :  { %v2251_v16 = vpack.c.bf16 %v3696_v24, %v3694_v28  ;;  %v2252_v33 = vpack.c.bf16 %v3697_v55, %v3695_v0  ;;  %v2554_v34 = vadd.f32 %v2553_v32, %v5160_v39  ;;  %v3188_v8 = vsel %vm3175_vm14, %v3146_v57, %v5333_v61  ;;  %v2557_v26 = vpop.f32.mrb[14].mxu0 }
 0x20b   :  { %v2556_v23 = vadd.f32 %v2555_v38, %v5168_v11  ;;  %v2558_v29 = vadd.f32 %v2557_v26, %v5160_v39  ;;  %v2559_v12 = vpop.f32.mrb[15].mxu0  ;;  %vm3177_vm6 = vcmask 1043459   ;;  %vm3179_vm7 = vcmask 1044484  }
 0x20c   :  { %v2694_v30 = vmax.f32 %v2554_v34, 0.0  ;;  %v2284_v37 = vadd.bf16 %v2252_v33, %v1834_v5  ;;  %v2283_v40 = vadd.bf16 %v2251_v16, %v1833_v18  ;;  %v2560_v31 = vadd.f32 %v2559_v12, %v5168_v11 }
 0x20d   :  { %v2695_v62 = vmax.f32 %v2556_v23, 0.0  ;;  %v2696_v46 = vmax.f32 %v2558_v29, 0.0  ;;  %vm3181_vm8 = vcmask 1045509   ;;  %vm3183_vm9 = vcmask 1046534  }
 0x20e   :  { %2671 = vmatprep.mubr.bf16.mxu1 %v2284_v37  ;;  %v2697_v19 = vmax.f32 %v2560_v31, 0.0  ;;  %v2762_v44 = vmul.f32 %v5192_v42, %v2694_v30  ;;  %vm3185_vm10 = vcmask 1047559  }
 0x20f   :  { %2672 = vmatmul.mubr.bf16.gmra.mrb[24].mxu1 %v2283_v40  ;;  %v2764_v61 = vmul.f32 %v5201_v47, %v2696_v46  ;;  %v2763_v50 = vmul.f32 %v5199_v53, %v2695_v62 }
 0x210   :  { %v2765_v51 = vmul.f32 %v5203_v9, %v2697_v19 }
 0x211   :  { %v2856_v43 = vmax.f32 %v2762_v44, %v2764_v61 }
 0x212   :  { %v2863_v54 = vmax.f32 %v2763_v50, %v2765_v51 }
 0x213   :  { %v2857_v36 = vrot.slane %v2856_v43, 4 }
 0x214   :  { %v2864_v56 = vrot.slane %v2863_v54, 4 }
 0x215   :  { %v2858_v57 = vmax.f32 %v2856_v43, %v2857_v36 }
 0x216   :  { %v2865_v63 = vmax.f32 %v2863_v54, %v2864_v56 }
 0x217   :  { %v2859_v58 = vrot.slane %v2858_v57, 2 }
 0x218   :  { %v2866_v45 = vrot.slane %v2865_v63, 2 }
 0x219   :  { %v2860_v6 = vmax.f32 %v2858_v57, %v2859_v58 }
 0x21a   :  { %v2867_v3 = vmax.f32 %v2865_v63, %v2866_v45 }
 0x21b   :  { %v2861_v13 = vrot.slane %v2860_v6, 1 }
 0x21c   :  { %v2868_v7 = vrot.slane %v2867_v3, 1 }
 0x21d   :  { %v2862_v49 = vmax.f32 %v2860_v6, %v2861_v13 }
 0x21e   :  { %v2869_v14 = vmax.f32 %v2867_v3, %v2868_v7  ;;  %v3870_v7 = vld [vmem:[#allocation8 + $0x40] sm:$0xff]  }
 0x21f   :  { %v3044_v21 = vpack.c.bf16 %v2862_v49, %v2862_v49  ;;  %3756 = vmatprep.subr.bf16.mxu1 %v3870_v7 }
 0x220   :  { %v3045_v20 = vpack.c.bf16 %v2869_v14, %v2869_v14 }
 0x221   :  { %v3147_v2 = vunpack.c.l.b16 %v3044_v21 }
 0x222   :  { %v3148_v52 = vunpack.c.l.b16 %v3045_v20 }
 0x223   :  { %v3178_v10 = vsel %vm3177_vm6, %v3147_v2, %v5402_v35 }
 0x224   :  { %v2623_v1 = vpop.f32.mrb[4].mxu1  ;;  %v3189_v48 = vsel %vm3177_vm6, %v3148_v52, %v3188_v8 }
 0x225   :  { %v2624_v59 = vadd.f32 %v2623_v1, %v5160_v39  ;;  %v2625_v41 = vpop.f32.mrb[5].mxu1 }
 0x226   :  { %v2626_v60 = vadd.f32 %v2625_v41, %v5168_v11  ;;  %v2627_v22 = vpop.f32.mrb[6].mxu1 }
 0x227   :  { %v2722_v17 = vmax.f32 %v2624_v59, 0.0  ;;  %v2628_v15 = vadd.f32 %v2627_v22, %v5160_v39  ;;  %v2629_v4 = vpop.f32.mrb[7].mxu1 }
 0x228   :  { %v2723_v24 = vmax.f32 %v2626_v60, 0.0  ;;  %v2630_v55 = vadd.f32 %v2629_v4, %v5168_v11 }
 0x229   :  { %v2724_v18 = vmax.f32 %v2628_v15, 0.0  ;;  %v2790_v35 = vmul.f32 %v5192_v42, %v2722_v17  ;;  %v3871_v17 = vld [vmem:[#allocation8] sm:$0xff]  }
 0x22a   :  { %v2725_v5 = vmax.f32 %v2630_v55, 0.0  ;;  %v2791_v0 = vmul.f32 %v5199_v53, %v2723_v24  ;;  %3757 = vmatpush3.bf16.msra.mxu1 %v3871_v17  ;;  %v5477_v55 = vld [vmem:[#allocation7] sm:$0xff] }
 0x22b   :  { %v2792_v28 = vmul.f32 %v5201_v47, %v2724_v18  ;;  %v5480_v18 = vld [vmem:[#allocation7 + $0x10] sm:$0xff]  ;;  %v3879_v17 = vld [vmem:[#allocation8 + $0x20] sm:$0xff]  }
 0x22c   :  { %v2793_v32 = vmul.f32 %v5203_v9, %v2725_v5 }
 0x22d   :  { %v5455_v16 = vmax.f32 %v2790_v35, %v2792_v28  ;;  %v5483_v35 = vld [vmem:[#allocation7 + $0x8] sm:$0xff] }
 0x22e   :  { %v5457_v33 = vmax.f32 %v2791_v0, %v2793_v32  ;;  %v5486_v0 = vld [vmem:[#allocation7 + $0x18] sm:$0xff] }
 0x230   :  { %v2563_v34 = vpop.f32.mrb[16].mxu0 }
 0x231   :  { %v2564_v38 = vadd.f32 %v2563_v34, %v5160_v39  ;;  %v2565_v8 = vpop.f32.mrb[17].mxu0 }
 0x232   :  { %v2566_v23 = vadd.f32 %v2565_v8, %v5168_v11  ;;  %v2567_v26 = vpop.f32.mrb[18].mxu0 }
 0x233   :  { %v2698_v30 = vmax.f32 %v2564_v38, 0.0  ;;  %v2568_v37 = vadd.f32 %v2567_v26, %v5160_v39  ;;  %v2569_v40 = vpop.f32.mrb[19].mxu0 }
 0x234   :  { %v2699_v29 = vmax.f32 %v2566_v23, 0.0  ;;  %v2570_v12 = vadd.f32 %v2569_v40, %v5168_v11 }
 0x235   :  { %v2700_v62 = vmax.f32 %v2568_v37, 0.0  ;;  %v2766_v46 = vmul.f32 %v5192_v42, %v2698_v30 }
 0x236   :  { %v2701_v31 = vmax.f32 %v2570_v12, 0.0  ;;  %v2767_v44 = vmul.f32 %v5199_v53, %v2699_v29 }
 0x237   :  { %v2768_v19 = vmul.f32 %v5201_v47, %v2700_v62 }
 0x238   :  { %v2769_v61 = vmul.f32 %v5203_v9, %v2701_v31 }
 0x239   :  { %v2870_v50 = vmax.f32 %v2766_v46, %v2768_v19 }
 0x23a   :  { %v2877_v51 = vmax.f32 %v2767_v44, %v2769_v61 }
 0x23b   :  { %v2871_v43 = vrot.slane %v2870_v50, 4 }
 0x23c   :  { %v2878_v54 = vrot.slane %v2877_v51, 4 }
 0x23d   :  { %v2872_v36 = vmax.f32 %v2870_v50, %v2871_v43 }
 0x23e   :  { %v2879_v56 = vmax.f32 %v2877_v51, %v2878_v54 }
 0x23f   :  { %v2873_v57 = vrot.slane %v2872_v36, 2 }
 0x240   :  { %v2880_v63 = vrot.slane %v2879_v56, 2 }
 0x241   :  { %v2874_v58 = vmax.f32 %v2872_v36, %v2873_v57  ;;  %v3873_v57 = vld [vmem:[#allocation8 + $0x8] sm:$0xff]  }
 0x242   :  { %v2881_v45 = vmax.f32 %v2879_v56, %v2880_v63  ;;  %v3872_v56 = vld [vmem:[#allocation8 + $0x48] sm:$0xff]   ;;  %v3874_v63 = vld [vmem:[#allocation8 + $0x50] sm:$0xff]  }
 0x243   :  { %v2875_v6 = vrot.slane %v2874_v58, 1  ;;  %3758 = vmatprep.subr.bf16.mxu1 %v3872_v56 }
 0x244   :  { %v2882_v3 = vrot.slane %v2881_v45, 1  ;;  %3759 = vmatpush3.bf16.msra.mxu1 %v3873_v57 }
 0x245   :  { %v2876_v13 = vmax.f32 %v2874_v58, %v2875_v6  ;;  %3760 = vmatprep.subr.bf16.mxu1 %v3874_v63 }
 0x246   :  { %v2883_v42 = vmax.f32 %v2881_v45, %v2882_v3 }
 0x247   :  { %v3046_v47 = vpack.c.bf16 %v2876_v13, %v2876_v13 }
 0x248   :  { %v3047_v49 = vpack.c.bf16 %v2883_v42, %v2883_v42 }
 0x249   :  { %v3149_v53 = vunpack.c.l.b16 %v3046_v47  ;;  %v3875_v47 = vld [vmem:[#allocation8 + $0x10] sm:$0xff]  }
 0x24a   :  { %v3150_v9 = vunpack.c.l.b16 %v3047_v49  ;;  %3761 = vmatpush3.bf16.msra.mxu1 %v3875_v47 }
 0x24b   :  { %v5468_v14 = vsel %vm3179_vm7, %v3149_v53, %v3178_v10 }
 0x24c   :  { %v2633_v21 = vpop.f32.mrb[8].mxu1  ;;  %v5471_v20 = vsel %vm3179_vm7, %v3150_v9, %v3189_v48 }
 0x24d   :  { %v2634_v2 = vadd.f32 %v2633_v21, %v5160_v39  ;;  %v2635_v52 = vpop.f32.mrb[9].mxu1  ;;  %v3876_v21 = vld [vmem:[#allocation8 + $0x58] sm:$0xff]  }
 0x24e   :  { %v2636_v1 = vadd.f32 %v2635_v52, %v5168_v11  ;;  %v2637_v59 = vpop.f32.mrb[10].mxu1  ;;  %v3877_v52 = vld [vmem:[#allocation8 + $0x18] sm:$0xff]   ;;  %3762 = vmatprep.subr.bf16.mxu1 %v3876_v21 }
 0x24f   :  { %v2726_v41 = vmax.f32 %v2634_v2, 0.0  ;;  %v2638_v60 = vadd.f32 %v2637_v59, %v5160_v39  ;;  %v2639_v22 = vpop.f32.mrb[11].mxu1  ;;  %3763 = vmatpush3.bf16.msra.mxu1 %v3877_v52 }
 0x250   :  { %v2727_v15 = vmax.f32 %v2636_v1, 0.0  ;;  %v2640_v4 = vadd.f32 %v2639_v22, %v5168_v11 }
 0x251   :  { %v2728_v10 = vmax.f32 %v2638_v60, 0.0  ;;  %v2794_v48 = vmul.f32 %v5477_v55, %v2726_v41  ;;  %v3878_v60 = vld [vmem:[#allocation8 + $0x60] sm:$0xff]  }
 0x252   :  { %v2729_v24 = vmax.f32 %v2640_v4, 0.0  ;;  %v2795_v28 = vmul.f32 %v5483_v35, %v2727_v15  ;;  %3764 = vmatprep.subr.bf16.mxu1 %v3878_v60 }
 0x253   :  { %v2796_v5 = vmul.f32 %v5480_v18, %v2728_v10  ;;  %3765 = vmatpush3.bf16.msra.mxu1 %v3879_v17 }
 0x254   :  { %v2797_v32 = vmul.f32 %v5486_v0, %v2729_v24 }
 0x255   :  { %v5489_v34 = vmax.f32 %v2794_v48, %v2796_v5  ;;  %v3880_v5 = vld [vmem:[#allocation8 + $0x68] sm:$0xff]  }
 0x256   :  { %v5491_v38 = vmax.f32 %v2795_v28, %v2797_v32  ;;  %3766 = vmatprep.subr.bf16.mxu1 %v3880_v5 }
 0x258   :  { %v2573_v8 = vpop.f32.mrb[20].mxu0 }
 0x259   :  { %v2574_v23 = vadd.f32 %v2573_v8, %v5160_v39  ;;  %v2575_v26 = vpop.f32.mrb[21].mxu0  ;;  %v3881_v8 = vld [vmem:[#allocation8 + $0x28] sm:$0xff]  }
 0x25a   :  { %v2576_v30 = vadd.f32 %v2575_v26, %v5168_v11  ;;  %v2577_v37 = vpop.f32.mrb[22].mxu0  ;;  %3767 = vmatpush3.bf16.msra.mxu1 %v3881_v8 }
 0x25b   :  { %v2702_v40 = vmax.f32 %v2574_v23, 0.0  ;;  %v2578_v29 = vadd.f32 %v2577_v37, %v5160_v39  ;;  %v2579_v12 = vpop.f32.mrb[23].mxu0 }
 0x25c   :  { %v2703_v62 = vmax.f32 %v2576_v30, 0.0  ;;  %v2580_v31 = vadd.f32 %v2579_v12, %v5168_v11  ;;  %v3883_v12 = vld [vmem:[#allocation8 + $0x30] sm:$0xff]  }
 0x25d   :  { %v2704_v46 = vmax.f32 %v2578_v29, 0.0  ;;  %v2770_v44 = vmul.f32 %v5477_v55, %v2702_v40 }
 0x25e   :  { %v2705_v19 = vmax.f32 %v2580_v31, 0.0  ;;  %v2771_v50 = vmul.f32 %v5483_v35, %v2703_v62  ;;  %v3884_v62 = vld [vmem:[#allocation8 + $0x78] sm:$0xff]  }
 0x25f   :  { %v2772_v61 = vmul.f32 %v5480_v18, %v2704_v46 }
 0x260   :  { %v2773_v51 = vmul.f32 %v5486_v0, %v2705_v19 }
 0x261   :  { %v2884_v43 = vmax.f32 %v2770_v44, %v2772_v61  ;;  %v3885_v61 = vld [vmem:[#allocation8 + $0x38] sm:$0xff]  }
 0x262   :  { %v2891_v54 = vmax.f32 %v2771_v50, %v2773_v51 }
 0x263   :  { %v2885_v36 = vrot.slane %v2884_v43, 4 }
 0x264   :  { %v2892_v58 = vrot.slane %v2891_v54, 4 }
 0x265   :  { %v2886_v45 = vmax.f32 %v2884_v43, %v2885_v36 }
 0x266   :  { %v2893_v6 = vmax.f32 %v2891_v54, %v2892_v58 }
 0x267   :  { %v2887_v3 = vrot.slane %v2886_v45, 2 }
 0x268   :  { %v2894_v13 = vrot.slane %v2893_v6, 2 }
 0x269   :  { %v2888_v42 = vmax.f32 %v2886_v45, %v2887_v3 }
 0x26a   :  { %v2895_v7 = vmax.f32 %v2893_v6, %v2894_v13 }
 0x26b   :  { %v2889_v49 = vrot.slane %v2888_v42, 1 }
 0x26c   :  { %v2896_v53 = vrot.slane %v2895_v7, 1 }
 0x26d   :  { %v2890_v9 = vmax.f32 %v2888_v42, %v2889_v49 }
 0x26e   :  { %v2897_v2 = vmax.f32 %v2895_v7, %v2896_v53 }
 0x26f   :  { %v3048_v1 = vpack.c.bf16 %v2890_v9, %v2890_v9 }
 0x270   :  { %v3049_v59 = vpack.c.bf16 %v2897_v2, %v2897_v2 }
 0x271   :  { %v3151_v41 = vunpack.c.l.b16 %v3048_v1 }
 0x272   :  { %v3152_v22 = vunpack.c.l.b16 %v3049_v59 }
 0x273   :  { %v5503_v15 = vsel %vm3181_vm8, %v3151_v41, %v5468_v14 }
 0x274   :  { %v2643_v4 = vpop.f32.mrb[12].mxu1  ;;  %v5507_v10 = vsel %vm3181_vm8, %v3152_v22, %v5471_v20  ;;  %v3882_v20 = vld [vmem:[#allocation8 + $0x70] sm:$0xff]  }
 0x275   :  { %v2644_v24 = vadd.f32 %v2643_v4, %v5160_v39  ;;  %v2645_v48 = vpop.f32.mrb[13].mxu1  ;;  %3768 = vmatprep.subr.bf16.mxu1 %v3882_v20 }
 0x276   :  { %v2646_v28 = vadd.f32 %v2645_v48, %v5168_v11  ;;  %v2647_v32 = vpop.f32.mrb[14].mxu1  ;;  %3769 = vmatpush3.bf16.msra.mxu1 %v3883_v12 }
 0x277   :  { %v2730_v23 = vmax.f32 %v2644_v24, 0.0  ;;  %v2648_v26 = vadd.f32 %v2647_v32, %v5160_v39  ;;  %v2649_v30 = vpop.f32.mrb[15].mxu1  ;;  %3770 = vmatprep.subr.bf16.mxu1 %v3884_v62 }
 0x278   :  { %v2731_v14 = vmax.f32 %v2646_v28, 0.0  ;;  %v2650_v37 = vadd.f32 %v2649_v30, %v5168_v11 }
 0x279   :  { %v2732_v40 = vmax.f32 %v2648_v26, 0.0  ;;  %v2798_v31 = vmul.f32 %v5477_v55, %v2730_v23 }
 0x27a   :  { %v2733_v29 = vmax.f32 %v2650_v37, 0.0  ;;  %v2799_v19 = vmul.f32 %v5483_v35, %v2731_v14  ;;  %3771 = vmatpush3.bf16.msra.mxu1 %v3885_v61 }
 0x27b   :  { %v2800_v46 = vmul.f32 %v5480_v18, %v2732_v40 }
 0x27c   :  { %v2801_v44 = vmul.f32 %v5486_v0, %v2733_v29 }
 0x27d   :  { %v5517_v50 = vmax.f32 %v2798_v31, %v2800_v46 }
 0x27e   :  { %v5519_v51 = vmax.f32 %v2799_v19, %v2801_v44 }
 0x280   :  { %v2583_v43 = vpop.f32.mrb[24].mxu0 }
 0x281   :  { %v2584_v54 = vadd.f32 %v2583_v43, %v5160_v39  ;;  %v2585_v36 = vpop.f32.mrb[25].mxu0 }
 0x282   :  { %v2586_v56 = vadd.f32 %v2585_v36, %v5168_v11  ;;  %v2587_v57 = vpop.f32.mrb[26].mxu0 }
 0x283   :  { %v2706_v63 = vmax.f32 %v2584_v54, 0.0  ;;  %v2588_v58 = vadd.f32 %v2587_v57, %v5160_v39  ;;  %v2589_v45 = vpop.f32.mrb[27].mxu0 }
 0x284   :  { %v2707_v6 = vmax.f32 %v2586_v56, 0.0  ;;  %v2590_v3 = vadd.f32 %v2589_v45, %v5168_v11 }
 0x285   :  { %v2708_v13 = vmax.f32 %v2588_v58, 0.0  ;;  %v2774_v7 = vmul.f32 %v5477_v55, %v2706_v63 }
 0x286   :  { %v2709_v42 = vmax.f32 %v2590_v3, 0.0  ;;  %v2775_v49 = vmul.f32 %v5483_v35, %v2707_v6 }
 0x287   :  { %v2776_v47 = vmul.f32 %v5480_v18, %v2708_v13 }
 0x288   :  { %v2777_v53 = vmul.f32 %v5486_v0, %v2709_v42 }
 0x289   :  { %v2898_v9 = vmax.f32 %v2774_v7, %v2776_v47 }
 0x28a   :  { %v2905_v21 = vmax.f32 %v2775_v49, %v2777_v53 }
 0x28b   :  { %v2899_v2 = vrot.slane %v2898_v9, 4 }
 0x28c   :  { %v2906_v52 = vrot.slane %v2905_v21, 4 }
 0x28d   :  { %v2900_v1 = vmax.f32 %v2898_v9, %v2899_v2 }
 0x28e   :  { %v2907_v59 = vmax.f32 %v2905_v21, %v2906_v52 }
 0x28f   :  { %v2901_v41 = vrot.slane %v2900_v1, 2 }
 0x290   :  { %v2908_v60 = vrot.slane %v2907_v59, 2 }
 0x291   :  { %v2902_v22 = vmax.f32 %v2900_v1, %v2901_v41 }
 0x292   :  { %v2909_v17 = vmax.f32 %v2907_v59, %v2908_v60 }
 0x293   :  { %v2903_v4 = vrot.slane %v2902_v22, 1 }
 0x294   :  { %v2910_v24 = vrot.slane %v2909_v17, 1 }
 0x295   :  { %v2904_v48 = vmax.f32 %v2902_v22, %v2903_v4  ;;  %v2941_v4 = vrot.slane %v5428_v25, 4 }
 0x296   :  { %v2911_v5 = vmax.f32 %v2909_v17, %v2910_v24 }
 0x297   :  { %v3050_v28 = vpack.c.bf16 %v2904_v48, %v2904_v48  ;;  %v2948_v48 = vrot.slane %v5430_v27, 4 }
 0x298   :  { %v3051_v32 = vpack.c.bf16 %v2911_v5, %v2911_v5 }
 0x299   :  { %v3153_v8 = vunpack.c.l.b16 %v3050_v28 }
 0x29a   :  { %v3154_v23 = vunpack.c.l.b16 %v3051_v32 }
 0x29b   :  { %v5531_v26 = vsel %vm3183_vm9, %v3153_v8, %v5503_v15  ;;  %v2942_v8 = vmax.f32 %v5428_v25, %v2941_v4 }
 0x29c   :  { %v5535_v30 = vsel %vm3183_vm9, %v3154_v23, %v5507_v10 }
 0x2a2   :  { %v2653_v14 = vpop.f32.mrb[16].mxu1 }
 0x2a3   :  { %v2654_v37 = vadd.f32 %v2653_v14, %v5160_v39  ;;  %v2655_v40 = vpop.f32.mrb[17].mxu1  ;;  %v2949_v14 = vmax.f32 %v5430_v27, %v2948_v48 }
 0x2a4   :  { %v2656_v20 = vadd.f32 %v2655_v40, %v5168_v11  ;;  %v2657_v29 = vpop.f32.mrb[18].mxu1  ;;  %v2955_v40 = vrot.slane %v5455_v16, 4 }
 0x2a5   :  { %v2734_v12 = vmax.f32 %v2654_v37, 0.0  ;;  %v2658_v62 = vadd.f32 %v2657_v29, %v5160_v39  ;;  %v2659_v31 = vpop.f32.mrb[19].mxu1  ;;  %v2962_v29 = vrot.slane %v5457_v33, 4 }
 0x2a6   :  { %v2735_v46 = vmax.f32 %v2656_v20, 0.0  ;;  %v2660_v19 = vadd.f32 %v2659_v31, %v5168_v11 }
 0x2a7   :  { %v2736_v15 = vmax.f32 %v2658_v62, 0.0  ;;  %v2802_v61 = vmul.f32 %v5477_v55, %v2734_v12  ;;  %v2943_v62 = vrot.slane %v2942_v8, 2  ;;  %v2963_v25 = vmax.f32 %v5457_v33, %v2962_v29 }
 0x2a8   :  { %v2737_v44 = vmax.f32 %v2660_v19, 0.0  ;;  %v2803_v43 = vmul.f32 %v5483_v35, %v2735_v46  ;;  %v2950_v46 = vrot.slane %v2949_v14, 2 }
 0x2a9   :  { %v2804_v10 = vmul.f32 %v5480_v18, %v2736_v15  ;;  %v2956_v15 = vmax.f32 %v5455_v16, %v2955_v40 }
 0x2aa   :  { %v2805_v54 = vmul.f32 %v5486_v0, %v2737_v44 }
 0x2ab   :  { %v5545_v36 = vmax.f32 %v2802_v61, %v2804_v10  ;;  %v2944_v10 = vmax.f32 %v2942_v8, %v2943_v62 }
 0x2ac   :  { %v5547_v56 = vmax.f32 %v2803_v43, %v2805_v54  ;;  %v2951_v43 = vmax.f32 %v2949_v14, %v2950_v46  ;;  %v2969_v54 = vrot.slane %v5489_v34, 4 }
 0x2ad   :  { %v2945_v33 = vrot.slane %v2944_v10, 1 }
 0x2ae   :  { %v2593_v57 = vpop.f32.mrb[28].mxu0 }
 0x2af   :  { %v2594_v63 = vadd.f32 %v2593_v57, %v5160_v39  ;;  %v2595_v58 = vpop.f32.mrb[29].mxu0 }
 0x2b0   :  { %v2596_v45 = vadd.f32 %v2595_v58, %v5168_v11  ;;  %v2597_v6 = vpop.f32.mrb[30].mxu0 }
 0x2b1   :  { %v2710_v3 = vmax.f32 %v2594_v63, 0.0  ;;  %v2598_v13 = vadd.f32 %v2597_v6, %v5160_v39  ;;  %v2599_v42 = vpop.f32.mrb[31].mxu0  ;;  %v2957_v63 = vrot.slane %v2956_v15, 2 }
 0x2b2   :  { %v2711_v7 = vmax.f32 %v2596_v45, 0.0  ;;  %v2600_v47 = vadd.f32 %v2599_v42, %v5168_v11  ;;  %v2964_v45 = vrot.slane %v2963_v25, 2  ;;  %v2952_v42 = vrot.slane %v2951_v43, 1 }
 0x2b3   :  { %v2712_v49 = vmax.f32 %v2598_v13, 0.0  ;;  %v2778_v9 = vmul.f32 %v5477_v55, %v2710_v3  ;;  %v2976_v3 = vrot.slane %v5491_v38, 4 }
 0x2b4   :  { %v2713_v53 = vmax.f32 %v2600_v47, 0.0  ;;  %v2779_v2 = vmul.f32 %v5483_v35, %v2711_v7  ;;  %v2970_v7 = vmax.f32 %v5489_v34, %v2969_v54 }
 0x2b5   :  { %v2780_v21 = vmul.f32 %v5480_v18, %v2712_v49 }
 0x2b6   :  { %v2781_v52 = vmul.f32 %v5486_v0, %v2713_v53  ;;  %v2958_v53 = vmax.f32 %v2956_v15, %v2957_v63 }
 0x2b7   :  { %v2912_v1 = vmax.f32 %v2778_v9, %v2780_v21 }
 0x2b8   :  { %v2919_v59 = vmax.f32 %v2779_v2, %v2781_v52  ;;  %v2965_v2 = vmax.f32 %v2963_v25, %v2964_v45  ;;  %v2959_v4 = vrot.slane %v2958_v53, 1 }
 0x2b9   :  { %v2913_v41 = vrot.slane %v2912_v1, 4 }
 0x2ba   :  { %v2920_v60 = vrot.slane %v2919_v59, 4 }
 0x2bb   :  { %v2914_v22 = vmax.f32 %v2912_v1, %v2913_v41  ;;  %v2946_v1 = vmax.f32 %v2944_v10, %v2945_v33 }
 0x2bc   :  { %v2921_v17 = vmax.f32 %v2919_v59, %v2920_v60  ;;  %v2977_v59 = vmax.f32 %v5491_v38, %v2976_v3  ;;  %v2953_v60 = vmax.f32 %v2951_v43, %v2952_v42 }
 0x2bd   :  { %v2915_v24 = vrot.slane %v2914_v22, 2  ;;  %v3056_v14 = vpack.c.bf16 %v2946_v1, %v2946_v1 }
 0x2be   :  { %v2922_v5 = vrot.slane %v2921_v17, 2 }
 0x2bf   :  { %v2916_v28 = vmax.f32 %v2914_v22, %v2915_v24  ;;  %v2971_v22 = vrot.slane %v2970_v7, 2  ;;  %v2983_v24 = vrot.slane %v5517_v50, 4 }
 0x2c0   :  { %v2923_v32 = vmax.f32 %v2921_v17, %v2922_v5 }
 0x2c1   :  { %v2917_v23 = vrot.slane %v2916_v28, 1  ;;  %v2972_v40 = vmax.f32 %v2970_v7, %v2971_v22  ;;  %v2984_v62 = vmax.f32 %v5517_v50, %v2983_v24 }
 0x2c2   :  { %v2924_v37 = vrot.slane %v2923_v32, 1 }
 0x2c3   :  { %v2918_v20 = vmax.f32 %v2916_v28, %v2917_v23  ;;  %v2966_v28 = vrot.slane %v2965_v2, 1  ;;  %v2978_v23 = vrot.slane %v2977_v59, 2 }
 0x2c4   :  { %v2925_v12 = vmax.f32 %v2923_v32, %v2924_v37  ;;  %v2990_v32 = vrot.slane %v5519_v51, 4  ;;  %v3057_v37 = vpack.c.bf16 %v2953_v60, %v2953_v60 }
 0x2c5   :  { %v3052_v31 = vpack.c.bf16 %v2918_v20, %v2918_v20  ;;  %v2997_v20 = vrot.slane %v5545_v36, 4  ;;  %v2967_v15 = vmax.f32 %v2965_v2, %v2966_v28  ;;  %v2979_v43 = vmax.f32 %v2977_v59, %v2978_v23 }
 0x2c6   :  { %v3053_v19 = vpack.c.bf16 %v2925_v12, %v2925_v12  ;;  %v2960_v12 = vmax.f32 %v2958_v53, %v2959_v4  ;;  %v5603_v59 = vunpack.c.l.b16 %v3056_v14  ;;  %v5605_v22 = vunpack.c.l.b16 %v3057_v37 }
 0x2c7   :  { %v3155_v44 = vunpack.c.l.b16 %v3052_v31  ;;  %v3004_v31 = vrot.slane %v5547_v56, 4  ;;  %v2998_v50 = vmax.f32 %v5545_v36, %v2997_v20  ;;  %v3059_v42 = vpack.c.bf16 %v2967_v15, %v2967_v15 }
 0x2c8   :  { %v3156_v61 = vunpack.c.l.b16 %v3053_v19  ;;  %v3058_v3 = vpack.c.bf16 %v2960_v12, %v2960_v12 }
 0x2c9   :  { %v5567_v27 = vsel %vm3185_vm10, %v3155_v44, %v5531_v26  ;;  %v2991_v44 = vmax.f32 %v5519_v51, %v2990_v32  ;;  %v3005_v51 = vmax.f32 %v5547_v56, %v3004_v31  ;;  %v2999_v36 = vrot.slane %v2998_v50, 2 }
 0x2ca   :  { %v5572_v57 = vsel %vm3185_vm10, %v3156_v61, %v5535_v30  ;;  %v5607_v24 = vunpack.c.l.b16 %v3058_v3 }
 0x2cb   :  { %v2663_v58 = vpop.f32.mrb[20].mxu1  ;;  %v2992_v7 = vrot.slane %v2991_v44, 2  ;;  %v3000_v23 = vmax.f32 %v2998_v50, %v2999_v36 }
 0x2cc   :  { %v2664_v16 = vadd.f32 %v2663_v58, %v5160_v39  ;;  %v2665_v6 = vpop.f32.mrb[21].mxu1 }
 0x2cd   :  { %v2666_v13 = vadd.f32 %v2665_v6, %v5168_v11  ;;  %v2667_v26 = vpop.f32.mrb[22].mxu1 }
 0x2ce   :  { %v2738_v47 = vmax.f32 %v2664_v16, 0.0  ;;  %v2668_v49 = vadd.f32 %v2667_v26, %v5160_v39  ;;  %v2669_v30 = vpop.f32.mrb[23].mxu1  ;;  %v2973_v16 = vrot.slane %v2972_v40, 1 }
 0x2cf   :  { %v2739_v9 = vmax.f32 %v2666_v13, 0.0  ;;  %v2670_v21 = vadd.f32 %v2669_v30, %v5168_v11  ;;  %v2985_v13 = vrot.slane %v2984_v62, 2  ;;  %v2980_v30 = vrot.slane %v2979_v43, 1 }
 0x2d0   :  { %v2740_v52 = vmax.f32 %v2668_v49, 0.0  ;;  %v2806_v17 = vmul.f32 %v5477_v55, %v2738_v47  ;;  %v5599_v2 = vmax.f32 %v2972_v40, %v2973_v16 }
 0x2d1   :  { %v2741_v41 = vmax.f32 %v2670_v21, 0.0  ;;  %v2807_v48 = vmul.f32 %v5483_v35, %v2739_v9  ;;  %v2986_v56 = vmax.f32 %v2984_v62, %v2985_v13 }
 0x2d2   :  { %v2808_v34 = vmul.f32 %v5480_v18, %v2740_v52  ;;  %v3060_v32 = vpack.c.bf16 %v5599_v2, %v5599_v2 }
 0x2d3   :  { %v2809_v5 = vmul.f32 %v5486_v0, %v2741_v41  ;;  %v3006_v41 = vrot.slane %v3005_v51, 2  ;;  %v2987_v40 = vrot.slane %v2986_v56, 1 }
 0x2d4   :  { %v3010_v8 = vmax.f32 %v2806_v17, %v2808_v34  ;;  %v2993_v17 = vmax.f32 %v2991_v44, %v2992_v7 }
 0x2d5   :  { %v3017_v38 = vmax.f32 %v2807_v48, %v2809_v5  ;;  %v5609_v48 = vunpack.c.l.b16 %v3059_v42  ;;  %v3007_v20 = vmax.f32 %v3005_v51, %v3006_v41  ;;  %v2988_v16 = vmax.f32 %v2986_v56, %v2987_v40 }
 0x2d6   :  { %v2603_v29 = vpop.f32.mrb[32].mxu0  ;;  %v3011_v25 = vrot.slane %v3010_v8, 4  ;;  %v2994_v62 = vrot.slane %v2993_v17, 1 }
 0x2d7   :  { %v2604_v46 = vadd.f32 %v2603_v29, %v5160_v39  ;;  %v2605_v19 = vpop.f32.mrb[33].mxu0  ;;  %v3018_v54 = vrot.slane %v3017_v38, 4  ;;  %v3008_v50 = vrot.slane %v3007_v20, 1 }
 0x2d8   :  { %v2606_v61 = vadd.f32 %v2605_v19, %v5168_v11  ;;  %v2607_v10 = vpop.f32.mrb[34].mxu0  ;;  %v3012_v47 = vmax.f32 %v3010_v8, %v3011_v25  ;;  %v2981_v8 = vmax.f32 %v2979_v43, %v2980_v30  ;;  %v2995_v3 = vmax.f32 %v2993_v17, %v2994_v62 }
 0x2d9   :  { %v2714_v63 = vmax.f32 %v2604_v46, 0.0  ;;  %v2608_v58 = vadd.f32 %v2607_v10, %v5160_v39  ;;  %v2609_v45 = vpop.f32.mrb[35].mxu0  ;;  %v3019_v53 = vmax.f32 %v3017_v38, %v3018_v54  ;;  %v3001_v54 = vrot.slane %v3000_v23, 1 }
 0x2da   :  { %v2715_v6 = vmax.f32 %v2606_v61, 0.0  ;;  %v2610_v33 = vadd.f32 %v2609_v45, %v5168_v11  ;;  %v3013_v34 = vrot.slane %v3012_v47, 2 }
 0x2db   :  { %v2716_v26 = vmax.f32 %v2608_v58, 0.0  ;;  %v2782_v9 = vmul.f32 %v5477_v55, %v2714_v63  ;;  %v3020_v5 = vrot.slane %v3019_v53, 2 }
 0x2dc   :  { %v2717_v49 = vmax.f32 %v2610_v33, 0.0  ;;  %v2783_v52 = vmul.f32 %v5483_v35, %v2715_v6  ;;  %v3014_v31 = vmax.f32 %v3012_v47, %v3013_v34 }
 0x2dd   :  { %v2784_v21 = vmul.f32 %v5480_v18, %v2716_v26  ;;  %v3021_v44 = vmax.f32 %v3019_v53, %v3020_v5 }
 0x2de   :  { %v2785_v1 = vmul.f32 %v5486_v0, %v2717_v49  ;;  %v3015_v13 = vrot.slane %v3014_v31, 1  ;;  %v3002_v49 = vmax.f32 %v3000_v23, %v3001_v54 }
 0x2df   :  { %v2926_v60 = vmax.f32 %v2782_v9, %v2784_v21  ;;  %v3022_v42 = vrot.slane %v3021_v44, 1  ;;  %v3061_v9 = vpack.c.bf16 %v2981_v8, %v2981_v8  ;;  %v3009_v21 = vmax.f32 %v3007_v20, %v3008_v50 }
 0x2e0   :  { %v2933_v4 = vmax.f32 %v2783_v52, %v2785_v1  ;;  %v3062_v52 = vpack.c.bf16 %v2988_v16, %v2988_v16  ;;  %v3016_v1 = vmax.f32 %v3014_v31, %v3015_v13 }
 0x2e1   :  { %v2927_v28 = vrot.slane %v2926_v60, 4  ;;  %v3023_v17 = vmax.f32 %v3021_v44, %v3022_v42  ;;  %v3164_v23 = vunpack.c.l.b16 %v3061_v9  ;;  %v3730_v9 = vld [vmem:[%s5664_s5] ss:$0 sm:$0xff] }
 0x2e2   :  { %v2934_v38 = vrot.slane %v2933_v4, 4  ;;  %v2673_v14 = vpop.f32.mrb[24].mxu1  ;;  %v3165_v8 = vunpack.c.l.b16 %v3062_v52 }
 0x2e3   :  { %v2928_v37 = vmax.f32 %v2926_v60, %v2927_v28  ;;  %v2674_v29 = vadd.f32 %v2673_v14, %v5160_v39  ;;  %v2675_v12 = vpop.f32.mrb[25].mxu1  ;;  %v3063_v60 = vpack.c.bf16 %v2995_v3, %v2995_v3  ;;  %v3066_v14 = vpack.c.bf16 %v3016_v1, %v3016_v1 }
 0x2e4   :  { %v2935_v46 = vmax.f32 %v2933_v4, %v2934_v38  ;;  %v2676_v19 = vadd.f32 %v2675_v12, %v5168_v11  ;;  %v2677_v15 = vpop.f32.mrb[26].mxu1  ;;  %v3163_v4 = vunpack.c.l.b16 %v3060_v32 }
 0x2e5   :  { %v2929_v25 = vrot.slane %v2928_v37, 2  ;;  %v2742_v61 = vmax.f32 %v2674_v29, 0.0  ;;  %v2678_v10 = vadd.f32 %v2677_v15, %v5160_v39  ;;  %v2679_v43 = vpop.f32.mrb[27].mxu1  ;;  %v3067_v29 = vpack.c.bf16 %v3023_v17, %v3023_v17 }
 0x2e6   :  { %v2936_v63 = vrot.slane %v2935_v46, 2  ;;  %v2743_v58 = vmax.f32 %v2676_v19, 0.0  ;;  %v2680_v45 = vadd.f32 %v2679_v43, %v5168_v11 }
 0x2e7   :  { %v2930_v6 = vmax.f32 %v2928_v37, %v2929_v25  ;;  %v2744_v33 = vmax.f32 %v2678_v10, 0.0  ;;  %v2810_v47 = vmul.f32 %v5477_v55, %v2742_v61  ;;  %v3166_v37 = vunpack.c.l.b16 %v3063_v60 }
 0x2e8   :  { %v2937_v51 = vmax.f32 %v2935_v46, %v2936_v63  ;;  %v2745_v26 = vmax.f32 %v2680_v45, 0.0  ;;  %v2811_v53 = vmul.f32 %v5483_v35, %v2743_v58  ;;  %v3065_v35 = vpack.c.bf16 %v3009_v21, %v3009_v21 }
 0x2e9   :  { %v2931_v7 = vrot.slane %v2930_v6, 1  ;;  %v2812_v39 = vmul.f32 %v5480_v18, %v2744_v33  ;;  %v3064_v18 = vpack.c.bf16 %v3002_v49, %v3002_v49  ;;  %v3169_v10 = vunpack.c.l.b16 %v3066_v14 }
 0x2ea   :  { %v2938_v30 = vrot.slane %v2937_v51, 1  ;;  %v2813_v11 = vmul.f32 %v5486_v0, %v2745_v26  ;;  %v3168_v15 = vunpack.c.l.b16 %v3065_v35  ;;  %v3170_v58 = vunpack.c.l.b16 %v3067_v29 }
 0x2eb   :  { %v2932_v2 = vmax.f32 %v2930_v6, %v2931_v7  ;;  %v3024_v36 = vmax.f32 %v2810_v47, %v2812_v39  ;;  %v3167_v31 = vunpack.c.l.b16 %v3064_v18 }
 0x2ec   :  { %v2939_v56 = vmax.f32 %v2937_v51, %v2938_v30  ;;  %v3031_v41 = vmax.f32 %v2811_v53, %v2813_v11 }
 0x2ed   :  { %v3054_v34 = vpack.c.bf16 %v2932_v2, %v2932_v2  ;;  %v3025_v55 = vrot.slane %v3024_v36, 4 }
 0x2ee   :  { %v3055_v5 = vpack.c.bf16 %v2939_v56, %v2939_v56  ;;  %v3032_v28 = vrot.slane %v3031_v41, 4 }
 0x2ef   :  { %v3157_v38 = vunpack.c.l.b16 %v3054_v34  ;;  %v3026_v0 = vmax.f32 %v3024_v36, %v3025_v55 }
 0x2f0   :  { %v3158_v40 = vunpack.c.l.b16 %v3055_v5  ;;  %v3033_v20 = vmax.f32 %v3031_v41, %v3032_v28 }
 0x2f1   :  { %v3194_v12 = vsel %vm3173_vm2, %v5603_v59, %v3157_v38  ;;  %v3027_v62 = vrot.slane %v3026_v0, 2 }
 0x2f2   :  { %v3195_v32 = vsel %vm3175_vm14, %v5607_v24, %v3194_v12  ;;  %v3201_v46 = vsel %vm3173_vm2, %v5605_v22, %v3158_v40  ;;  %v3034_v19 = vrot.slane %v3033_v20, 2 }
 0x2f3   :  { %v3196_v44 = vsel %vm3177_vm6, %v3163_v4, %v3195_v32  ;;  %v3028_v25 = vmax.f32 %v3026_v0, %v3027_v62  ;;  %v3202_v61 = vsel %vm3175_vm14, %v5609_v48, %v3201_v46 }
 0x2f4   :  { %v3035_v43 = vmax.f32 %v3033_v20, %v3034_v19  ;;  %v3203_v59 = vsel %vm3177_vm6, %v3164_v23, %v3202_v61  ;;  %v3197_v54 = vsel %vm3179_vm7, %v3165_v8, %v3196_v44 }
 0x2f5   :  { %v3029_v63 = vrot.slane %v3028_v25, 1  ;;  %v3204_v24 = vsel %vm3179_vm7, %v3166_v37, %v3203_v59  ;;  %v3198_v22 = vsel %vm3181_vm8, %v3167_v31, %v3197_v54 }
 0x2f6   :  { %v3036_v45 = vrot.slane %v3035_v43, 1  ;;  %v3205_v16 = vsel %vm3181_vm8, %v3168_v15, %v3204_v24  ;;  %v3199_v50 = vsel %vm3183_vm9, %v3169_v10, %v3198_v22 }
 0x2f7   :  { %v3030_v6 = vmax.f32 %v3028_v25, %v3029_v63  ;;  %v3206_v48 = vsel %vm3183_vm9, %v3170_v58, %v3205_v16 }
 0x2f8   :  { %v3037_v33 = vmax.f32 %v3035_v43, %v3036_v45 }
 0x2f9   :  { %v3068_v3 = vpack.c.bf16 %v3030_v6, %v3030_v6 }
 0x2fa   :  { %v3069_v13 = vpack.c.bf16 %v3037_v33, %v3037_v33 }
 0x2fb   :  { %v3171_v51 = vunpack.c.l.b16 %v3068_v3 }
 0x2fc   :  { %v3172_v26 = vunpack.c.l.b16 %v3069_v13 }
 0x2fd   :  { %v3200_v42 = vsel %vm3185_vm10, %v3171_v51, %v3199_v50 }
 0x2fe   :  { %v3207_v7 = vsel %vm3185_vm10, %v3172_v26, %v3206_v48  ;;  %v3208_v47 = vpack.c.b16 %v3200_v42, %v5567_v27 }
 0x2ff   :  { %v3209_v39 = vpack.c.b16 %v3207_v7, %v5572_v57 }
 0x301   :  { %3340 = vmatprep.mubr.bf16.mxu1 %v3209_v39 }
 0x302   :  { %3341 = vmatmul.mubr.bf16.vlgmr.msra.gmra.mrb[28].mxu1 %v3208_v47 }
 0x3d5   :  { %v3772_v49 = vpop.f32.mrb[28].mxu1 }
 0x3d6   :  { %v3773_v30 = vpop.f32.mrb[29].mxu1 }
 0x3d7   :  { %v3774_v53 = vadd.f32 %v3773_v30, %v3772_v49  ;;  %v3775_v11 = vpop.f32.mrb[30].mxu1 }
 0x3d8   :  { %v3776_v21 = vpop.f32.mrb[31].mxu1 }
 0x3d9   :  { %v3777_v2 = vadd.f32 %v3776_v21, %v3775_v11  ;;  %v3343_v36 = vadd.f32 %v3774_v53, %v3730_v9 }
 0x3db   :  { %v3346_v52 = vadd.f32 %v3777_v2, %v3730_v9 }
 0x3dd   :  { %v3754_v1 = vpack.c.bf16 %v3346_v52, %v3343_v36 }
 0x3df   :  { %3755 = vst [vmem:[#allocation10] sm:$0xff] %v3754_v1  }
 0x3e0   :  { %3991 = shalt.err (!%p3988_p8)
}
 0x3e1   :  { %s3992_s5 = scalar_lea.hbm %s5665_s6, 128 }
 0x3e2   :  { %p3993_p9 = scmp.ne.s32.totalorder %s5665_s6, %s3992_s5  ;;  %p3996_p10 = scmp.lt.u32.totalorder %s3992_s5, %s5665_s6 }
 0x3e4   :  { %p3998_p11 = pnand %p3996_p10, %p3993_p9 }
 0x3e6   :  { %4001 = shalt.err (!%p3998_p11)
}
 0x3e7   :  { %3370 = dma.vmem_to_hbm [thread:$0]  %s3365_s27, 128, %s5665_s6, [#allocation4], %s4018_s3, %s4018_s3, %s4019_s1  }
 0x3e8   :  { %4008 = dma.done.wait [#allocation4], 128  }
 0x3e9   :  { %4009 = vsyncadd [#allocation4], 4294967168 }
 0x3ea   :  { %3374 = vsyncpa [#allocation3], 1 }
 0x3eb   :  { %3375 = vsyncpa [#allocation6], 1 }
 0x3ec   :  { %3376 = vsyncpa [#allocation9], 1 }
 0x3ed   :  { %3377 = vsyncpa [#allocation4], 1 }

</bundles_post_ra>
